<compile_context>
chip_gen: v6e
topology: v6e:2x2x1
jax: 0.10.0
libtpu: 0.0.40
codegen_flags: <defaults>
</compile_context>

<pallas_src>
import functools

import jax
import jax.numpy as jnp
from jax.experimental import pallas as pl
from jax.experimental.pallas import tpu as pltpu

CPAD = 128            # all channel-like dims padded to one full lane group
KSIZE = 5
H1, W1 = 12, 12       # conv1 pooled output grid
W1PAD = 16            # pooled-W padded to 16 so in-kernel slices stay tile friendly
H2, W2 = 8, 8         # conv2 output grid
HP2, WP2 = 4, 4       # conv2 pooled output grid


# ----------------------------------------------------------------------------
# Fused Pallas kernel: the whole network for one image per grid step
# ----------------------------------------------------------------------------
def _fused_forward_kernel(num_classes,
                          pat_ref, w1_ref, b1_ref, w2_ref, b2_ref,
                          wf1_ref, bf1_ref, wf2_ref, bf2_ref, o_ref):
    f32 = jnp.float32

    # ---- conv1 + bias + maxpool(2) + ReLU --------------------------------
    # pat rows are pool-slab-major: slab s=(dh,dw) occupies rows [s*192,(s+1)*192),
    # row within slab = ho*16 + wo.  One matmul feeds all four slabs (weights are
    # pushed once); pooling is then a max of four aligned contiguous row blocks.
    pat = pat_ref[0]                                                   # (768, K1) bf16
    y1 = jnp.dot(pat, w1_ref[...], preferred_element_type=f32)         # (768, 128)
    blk = H1 * W1PAD                                                   # 192
    y1 = jnp.maximum(jnp.maximum(y1[0 * blk:1 * blk], y1[1 * blk:2 * blk]),
                     jnp.maximum(y1[2 * blk:3 * blk], y1[3 * blk:4 * blk]))
    h1 = jnp.maximum(y1 + b1_ref[...], 0.0)                            # (192, 128) f32
    # h1 row = ho*16 + wo; wo in [0,12) valid, [12,16) is padding (never read).

    # ---- conv2 + bias + maxpool(2) + ReLU --------------------------------
    # im2col LHS (64, 25*128) assembled from unit-stride slices of VMEM-resident h1.
    row_blocks = []
    for ho2 in range(H2):
        taps = []
        for kh in range(KSIZE):
            base = (ho2 + kh) * W1PAD
            for kw in range(KSIZE):
                taps.append(h1[base + kw: base + kw + W2, :])          # (8, 128)
        row_blocks.append(jnp.concatenate(taps, axis=1))               # (8, 3200)
    lhs = jnp.concatenate(row_blocks, axis=0).astype(jnp.bfloat16)     # (64, 3200)
    y2 = jnp.dot(lhs, w2_ref[...], preferred_element_type=f32)         # (64, 128)
    # y2 row = ho2*8 + wo2

    # maxpool(2): emit the 16 pooled pixels directly in flattened (h, w, c) order,
    # lane-concatenated into the fc1 input layout (no flatten/reshape needed).
    pieces = []
    for ho3 in range(HP2):
        for wo3 in range(WP2):
            r0 = (2 * ho3) * W2 + 2 * wo3
            r1 = (2 * ho3 + 1) * W2 + 2 * wo3
            pieces.append(jnp.maximum(
                jnp.maximum(y2[r0:r0 + 1], y2[r0 + 1:r0 + 2]),
                jnp.maximum(y2[r1:r1 + 1], y2[r1 + 1:r1 + 2])))         # (1, 128)
    h2 = jnp.concatenate(pieces, axis=1)                                # (1, 2048)
    h2 = jnp.maximum(h2 + b2_ref[...], 0.0)                             # bias tiled per pixel
    # TODO(synk): Dropout2d / F.dropout are identity (inference); not reproduced.

    # ---- fc1 + ReLU + fc2 + log_softmax ----------------------------------
    h3 = jnp.dot(h2.astype(jnp.bfloat16), wf1_ref[...],
                 preferred_element_type=f32)                            # (1, 128)
    h3 = jnp.maximum(h3 + bf1_ref[...], 0.0)
    logits = jnp.dot(h3.astype(jnp.bfloat16), wf2_ref[...],
                     preferred_element_type=f32) + bf2_ref[...]         # (1, 128)
    col = jax.lax.broadcasted_iota(jnp.int32, logits.shape, 1)
    logits = jnp.where(col < num_classes, logits, -1e30)                # mask lane padding
    mx = jnp.max(logits, axis=-1, keepdims=True)
    s = logits - mx
    lse = jnp.log(jnp.sum(jnp.exp(s), axis=-1, keepdims=True))
    o_ref[0] = (s - lse).astype(o_ref.dtype)                            # lane-dense (1,128)


# ----------------------------------------------------------------------------
# One-time weight repack (hoisted out of the hot path)
# ----------------------------------------------------------------------------
def prepare_params(params, num_classes=10):
    assert num_classes <= CPAD
    cin = params["conv1_w"].shape[1]
    # conv1: (10, Cin, 5, 5) -> rows (kh, kw, ci), cols co padded to 128
    w1 = jnp.transpose(params["conv1_w"], (2, 3, 1, 0)).reshape(25 * cin, 10)
    w1 = jnp.pad(w1, ((0, 0), (0, CPAD - 10))).astype(jnp.bfloat16)
    b1 = jnp.pad(params["conv1_b"], (0, CPAD - 10)).reshape(1, CPAD).astype(jnp.float32)
    # conv2: rows ((kh*5+kw)*128 + ci), cols co; both channel dims padded to 128
    w2 = jnp.transpose(params["conv2_w"], (2, 3, 1, 0))                 # (5,5,10,20)
    w2 = jnp.pad(w2, ((0, 0), (0, 0), (0, CPAD - 10), (0, CPAD - 20)))
    w2 = w2.reshape(25 * CPAD, CPAD).astype(jnp.bfloat16)
    b2 = jnp.pad(params["conv2_b"], (0, CPAD - 20)).reshape(1, CPAD).astype(jnp.float32)
    b2 = jnp.tile(b2, (1, HP2 * WP2))                                   # (1, 2048)
    # fc1: PyTorch flattens NCHW (idx = c*16 + h*4 + w); kernel flat layout is
    # (h*4+w)*128 + c  ->  permute + zero-pad the weight rows once here.
    wf1 = params["fc1_w"].reshape(50, 20, HP2, WP2)                     # (f, c, h, w)
    wf1 = jnp.transpose(wf1, (2, 3, 1, 0))                              # (h, w, c, f)
    wf1 = jnp.pad(wf1, ((0, 0), (0, 0), (0, CPAD - 20), (0, CPAD - 50)))
    wf1 = wf1.reshape(HP2 * WP2 * CPAD, CPAD).astype(jnp.bfloat16)      # (2048, 128)
    bf1 = jnp.pad(params["fc1_b"], (0, CPAD - 50)).reshape(1, CPAD).astype(jnp.float32)
    # fc2
    nc = params["fc2_w"].shape[0]
    wf2 = jnp.pad(params["fc2_w"].T,
                  ((0, CPAD - 50), (0, CPAD - nc))).astype(jnp.bfloat16)
    bf2 = jnp.pad(params["fc2_b"], (0, CPAD - nc)).reshape(1, CPAD).astype(jnp.float32)
    return dict(w1=w1, b1=b1, w2=w2, b2=b2, wf1=wf1, bf1=bf1, wf2=wf2, bf2=bf2)


# ----------------------------------------------------------------------------
# Minimal wrapper-side input prep (bf16 im2col for conv1, pool-slab row order)
# ----------------------------------------------------------------------------
def _conv1_patches(x_nchw):
    n, cin, h, w = x_nchw.shape
    assert (h, w) == (28, 28), "architecture requires 28x28 input (fc1 expects 320)"
    x = jnp.transpose(x_nchw, (0, 2, 3, 1)).astype(jnp.bfloat16)        # cast BEFORE 25x expansion
    ho, wo = h - KSIZE + 1, w - KSIZE + 1                               # 24, 24
    taps = [x[:, kh:kh + ho, kw:kw + wo, :]
            for kh in range(KSIZE) for kw in range(KSIZE)]
    pat = jnp.stack(taps, axis=3).reshape(n, ho, wo, KSIZE * KSIZE * cin)
    slabs = []
    for dh in range(2):
        for dw in range(2):
            s = pat[:, dh::2, dw::2, :]                                  # (n, 12, 12, K1)
            s = jnp.pad(s, ((0, 0), (0, 0), (0, W1PAD - W1), (0, 0)))
            slabs.append(s.reshape(n, H1 * W1PAD, KSIZE * KSIZE * cin))
    return jnp.stack(slabs, axis=1).reshape(n, 4 * H1 * W1PAD, KSIZE * KSIZE * cin)


def cnn_fashion_mnist_forward(x_nchw, packed, num_classes=10):
    n, cin = x_nchw.shape[0], x_nchw.shape[1]
    k1 = KSIZE * KSIZE * cin
    m_rows = 4 * H1 * W1PAD                                              # 768
    pat = _conv1_patches(x_nchw)                                         # (n, 768, k1) bf16

    full = lambda i: (0, 0)                                              # weights stay VMEM-resident
    out = pl.pallas_call(
        functools.partial(_fused_forward_kernel, num_classes),
        out_shape=jax.ShapeDtypeStruct((n, 1, CPAD), jnp.float32),
        grid_spec=pltpu.PrefetchScalarGridSpec(
            num_scalar_prefetch=0,
            grid=(n,),                                  # one image per step
            in_specs=[
                pl.BlockSpec((1, m_rows, k1), lambda i: (i, 0, 0)),
                pl.BlockSpec((k1, CPAD), full),
                pl.BlockSpec((1, CPAD), full),
                pl.BlockSpec((25 * CPAD, CPAD), full),
                pl.BlockSpec((1, HP2 * WP2 * CPAD), full),
                pl.BlockSpec((HP2 * WP2 * CPAD, CPAD), full),
                pl.BlockSpec((1, CPAD), full),
                pl.BlockSpec((CPAD, CPAD), full),
                pl.BlockSpec((1, CPAD), full),
            ],
            out_specs=pl.BlockSpec((1, 1, CPAD), lambda i: (i, 0, 0)),
        ),
        compiler_params=pltpu.CompilerParams(
            dimension_semantics=("parallel",)),          # v7x: images split across TCs
    )(pat, packed["w1"], packed["b1"], packed["w2"], packed["b2"],
      packed["wf1"], packed["bf1"], packed["wf2"], packed["bf2"])
    return out.reshape(n, CPAD)[:, :num_classes]


# ----------------------------------------------------------------------------
# Deterministic synthetic params (PyTorch-style uniform) + f32 reference
# ----------------------------------------------------------------------------
def init_params(key, num_channels=1, num_classes=10):
    ks = jax.random.split(key, 8)

    def u(k, shape, fan_in):
        bound = 1.0 / (fan_in ** 0.5)
        return jax.random.uniform(k, shape, jnp.float32, -bound, bound)

    return dict(
        conv1_w=u(ks[0], (10, num_channels, 5, 5), 25 * num_channels),
        conv1_b=u(ks[1], (10,), 25 * num_channels),
        conv2_w=u(ks[2], (20, 10, 5, 5), 25 * 10),
        conv2_b=u(ks[3], (20,), 25 * 10),
        fc1_w=u(ks[4], (50, 320), 320),
        fc1_b=u(ks[5], (50,), 320),
        fc2_w=u(ks[6], (num_classes, 50), 50),
        fc2_b=u(ks[7], (num_classes,), 50),
    )


def reference_forward(x_nchw, params):
    x = x_nchw.astype(jnp.float32)
    dn = ("NCHW", "OIHW", "NCHW")

    def conv(y, w, b):
        y = jax.lax.conv_general_dilated(y, w, (1, 1), "VALID", dimension_numbers=dn)
        return y + b.reshape(1, -1, 1, 1)

    def pool(y):
        n, c, h, w = y.shape
        return y.reshape(n, c, h // 2, 2, w // 2, 2).max(axis=5).max(axis=3)

    y = jax.nn.relu(pool(conv(x, params["conv1_w"], params["conv1_b"])))
    y = jax.nn.relu(pool(conv(y, params["conv2_w"], params["conv2_b"])))
    y = y.reshape(y.shape[0], -1)
    y = jax.nn.relu(y @ params["fc1_w"].T + params["fc1_b"])
    y = y @ params["fc2_w"].T + params["fc2_b"]
    return jax.nn.log_softmax(y, axis=1)


if __name__ == "__main__":
    key = jax.random.PRNGKey(0)
    kx, kp = jax.random.split(key)
    # 28x28 is required so the flattened conv2 output is exactly 320 (nn.Linear(320,50)).
    x = jax.random.normal(kx, (2, 1, 28, 28), jnp.float32)
    params = init_params(kp, num_channels=1, num_classes=10)

    packed = prepare_params(params, num_classes=10)      # one-time weight repack
    fwd = jax.jit(cnn_fashion_mnist_forward, static_argnames=("num_classes",))
    out = jax.block_until_ready(fwd(x, packed, num_classes=10))

    assert out.shape == (2, 10) and out.dtype == jnp.float32
    # log_softmax sanity: rows exponentiate to a probability distribution.
    assert bool(jnp.allclose(jnp.exp(out).sum(axis=1), 1.0, atol=1e-3))
    # bf16-matmul kernel vs. f32 XLA reference.
    ref = reference_forward(x, params)
    assert bool(jnp.max(jnp.abs(out - ref)) < 0.1), "mismatch vs f32 reference"
    print("KERNEL_OK")
</pallas_src>

<mosaic_0001>
module attributes {stable_mosaic.version = 11 : i64} {
  func.func @_fused_forward_kernel(%arg0: i32, %arg1: memref<1x768x25xbf16, #tpu.memory_space<vmem>>, %arg2: memref<25x128xbf16, #tpu.memory_space<vmem>>, %arg3: memref<1x128xf32, #tpu.memory_space<vmem>>, %arg4: memref<3200x128xbf16, #tpu.memory_space<vmem>>, %arg5: memref<1x2048xf32, #tpu.memory_space<vmem>>, %arg6: memref<2048x128xbf16, #tpu.memory_space<vmem>>, %arg7: memref<1x128xf32, #tpu.memory_space<vmem>>, %arg8: memref<128x128xbf16, #tpu.memory_space<vmem>>, %arg9: memref<1x128xf32, #tpu.memory_space<vmem>>, %arg10: memref<1x1x128xf32, #tpu.memory_space<vmem>>) attributes {dimension_semantics = [#tpu.dimension_semantics<parallel>], iteration_bounds = array<i64: 2>, scalar_prefetch = 0 : i64, scratch_operands = 0 : i64, tpu.core_type = #tpu.core_type<tc>, window_params = [{transform_indices = @transform_0, window_bounds = array<i64: 1, 768, 25>}, {pipeline_mode = #tpu.pipeline_mode<synchronous>, transform_indices = @transform_1, window_bounds = array<i64: 25, 128>}, {pipeline_mode = #tpu.pipeline_mode<synchronous>, transform_indices = @transform_2, window_bounds = array<i64: 1, 128>}, {pipeline_mode = #tpu.pipeline_mode<synchronous>, transform_indices = @transform_3, window_bounds = array<i64: 3200, 128>}, {pipeline_mode = #tpu.pipeline_mode<synchronous>, transform_indices = @transform_4, window_bounds = array<i64: 1, 2048>}, {pipeline_mode = #tpu.pipeline_mode<synchronous>, transform_indices = @transform_5, window_bounds = array<i64: 2048, 128>}, {pipeline_mode = #tpu.pipeline_mode<synchronous>, transform_indices = @transform_6, window_bounds = array<i64: 1, 128>}, {pipeline_mode = #tpu.pipeline_mode<synchronous>, transform_indices = @transform_7, window_bounds = array<i64: 128, 128>}, {pipeline_mode = #tpu.pipeline_mode<synchronous>, transform_indices = @transform_8, window_bounds = array<i64: 1, 128>}, {transform_indices = @transform_9, window_bounds = array<i64: 1, 1, 128>}]} {
    %c0 = arith.constant 0 : index
    %c0_0 = arith.constant 0 : index
    %c0_1 = arith.constant 0 : index
    %0 = vector.load %arg1[%c0, %c0_0, %c0_1] : memref<1x768x25xbf16, #tpu.memory_space<vmem>>, vector<1x768x25xbf16>
    %1 = vector.shape_cast %0 : vector<1x768x25xbf16> to vector<768x25xbf16>
    %c0_2 = arith.constant 0 : index
    %c0_3 = arith.constant 0 : index
    %2 = vector.load %arg2[%c0_2, %c0_3] : memref<25x128xbf16, #tpu.memory_space<vmem>>, vector<25x128xbf16>
    %cst = arith.constant dense<0.000000e+00> : vector<768x128xf32>
    %3 = tpu.matmul %1, %2, %cst {dimension_numbers = #tpu.dot_dimension_numbers<[1], [0], [0], [1], [0, 0, 1, 1], [], []>} : vector<768x25xbf16>, vector<25x128xbf16>, vector<768x128xf32> -> vector<768x128xf32>
    %4 = vector.extract_strided_slice %3 {offsets = [0, 0], sizes = [192, 128], strides = [1, 1]} : vector<768x128xf32> to vector<192x128xf32>
    %5 = vector.extract_strided_slice %3 {offsets = [192, 0], sizes = [192, 128], strides = [1, 1]} : vector<768x128xf32> to vector<192x128xf32>
    %6 = arith.maximumf %4, %5 : vector<192x128xf32>
    %7 = vector.extract_strided_slice %3 {offsets = [384, 0], sizes = [192, 128], strides = [1, 1]} : vector<768x128xf32> to vector<192x128xf32>
    %8 = vector.extract_strided_slice %3 {offsets = [576, 0], sizes = [192, 128], strides = [1, 1]} : vector<768x128xf32> to vector<192x128xf32>
    %9 = arith.maximumf %7, %8 : vector<192x128xf32>
    %10 = arith.maximumf %6, %9 : vector<192x128xf32>
    %c0_4 = arith.constant 0 : index
    %c0_5 = arith.constant 0 : index
    %11 = vector.load %arg3[%c0_4, %c0_5] : memref<1x128xf32, #tpu.memory_space<vmem>>, vector<1x128xf32>
    %12 = vector.broadcast %11 : vector<1x128xf32> to vector<192x128xf32>
    %13 = arith.addf %10, %12 : vector<192x128xf32>
    %cst_6 = arith.constant 0.000000e+00 : f32
    %14 = vector.broadcast %cst_6 : f32 to vector<192x128xf32>
    %15 = arith.maximumf %13, %14 : vector<192x128xf32>
    %16 = vector.extract_strided_slice %15 {offsets = [0, 0], sizes = [8, 128], strides = [1, 1]} : vector<192x128xf32> to vector<8x128xf32>
    %17 = vector.extract_strided_slice %15 {offsets = [1, 0], sizes = [8, 128], strides = [1, 1]} : vector<192x128xf32> to vector<8x128xf32>
    %18 = vector.extract_strided_slice %15 {offsets = [2, 0], sizes = [8, 128], strides = [1, 1]} : vector<192x128xf32> to vector<8x128xf32>
    %19 = vector.extract_strided_slice %15 {offsets = [3, 0], sizes = [8, 128], strides = [1, 1]} : vector<192x128xf32> to vector<8x128xf32>
    %20 = vector.extract_strided_slice %15 {offsets = [4, 0], sizes = [8, 128], strides = [1, 1]} : vector<192x128xf32> to vector<8x128xf32>
    %21 = vector.extract_strided_slice %15 {offsets = [16, 0], sizes = [8, 128], strides = [1, 1]} : vector<192x128xf32> to vector<8x128xf32>
    %22 = vector.extract_strided_slice %15 {offsets = [17, 0], sizes = [8, 128], strides = [1, 1]} : vector<192x128xf32> to vector<8x128xf32>
    %23 = vector.extract_strided_slice %15 {offsets = [18, 0], sizes = [8, 128], strides = [1, 1]} : vector<192x128xf32> to vector<8x128xf32>
    %24 = vector.extract_strided_slice %15 {offsets = [19, 0], sizes = [8, 128], strides = [1, 1]} : vector<192x128xf32> to vector<8x128xf32>
    %25 = vector.extract_strided_slice %15 {offsets = [20, 0], sizes = [8, 128], strides = [1, 1]} : vector<192x128xf32> to vector<8x128xf32>
    %26 = vector.extract_strided_slice %15 {offsets = [32, 0], sizes = [8, 128], strides = [1, 1]} : vector<192x128xf32> to vector<8x128xf32>
    %27 = vector.extract_strided_slice %15 {offsets = [33, 0], sizes = [8, 128], strides = [1, 1]} : vector<192x128xf32> to vector<8x128xf32>
    %28 = vector.extract_strided_slice %15 {offsets = [34, 0], sizes = [8, 128], strides = [1, 1]} : vector<192x128xf32> to vector<8x128xf32>
    %29 = vector.extract_strided_slice %15 {offsets = [35, 0], sizes = [8, 128], strides = [1, 1]} : vector<192x128xf32> to vector<8x128xf32>
    %30 = vector.extract_strided_slice %15 {offsets = [36, 0], sizes = [8, 128], strides = [1, 1]} : vector<192x128xf32> to vector<8x128xf32>
    %31 = vector.extract_strided_slice %15 {offsets = [48, 0], sizes = [8, 128], strides = [1, 1]} : vector<192x128xf32> to vector<8x128xf32>
    %32 = vector.extract_strided_slice %15 {offsets = [49, 0], sizes = [8, 128], strides = [1, 1]} : vector<192x128xf32> to vector<8x128xf32>
    %33 = vector.extract_strided_slice %15 {offsets = [50, 0], sizes = [8, 128], strides = [1, 1]} : vector<192x128xf32> to vector<8x128xf32>
    %34 = vector.extract_strided_slice %15 {offsets = [51, 0], sizes = [8, 128], strides = [1, 1]} : vector<192x128xf32> to vector<8x128xf32>
    %35 = vector.extract_strided_slice %15 {offsets = [52, 0], sizes = [8, 128], strides = [1, 1]} : vector<192x128xf32> to vector<8x128xf32>
    %36 = vector.extract_strided_slice %15 {offsets = [64, 0], sizes = [8, 128], strides = [1, 1]} : vector<192x128xf32> to vector<8x128xf32>
    %37 = vector.extract_strided_slice %15 {offsets = [65, 0], sizes = [8, 128], strides = [1, 1]} : vector<192x128xf32> to vector<8x128xf32>
    %38 = vector.extract_strided_slice %15 {offsets = [66, 0], sizes = [8, 128], strides = [1, 1]} : vector<192x128xf32> to vector<8x128xf32>
    %39 = vector.extract_strided_slice %15 {offsets = [67, 0], sizes = [8, 128], strides = [1, 1]} : vector<192x128xf32> to vector<8x128xf32>
    %40 = vector.extract_strided_slice %15 {offsets = [68, 0], sizes = [8, 128], strides = [1, 1]} : vector<192x128xf32> to vector<8x128xf32>
    %41 = tpu.concatenate %16, %17, %18, %19, %20, %21, %22, %23, %24, %25, %26, %27, %28, %29, %30, %31 in 1 : vector<8x128xf32>, vector<8x128xf32>, vector<8x128xf32>, vector<8x128xf32>, vector<8x128xf32>, vector<8x128xf32>, vector<8x128xf32>, vector<8x128xf32>, vector<8x128xf32>, vector<8x128xf32>, vector<8x128xf32>, vector<8x128xf32>, vector<8x128xf32>, vector<8x128xf32>, vector<8x128xf32>, vector<8x128xf32> -> vector<8x2048xf32>
    %42 = tpu.concatenate %32, %33, %34, %35, %36, %37, %38, %39, %40 in 1 : vector<8x128xf32>, vector<8x128xf32>, vector<8x128xf32>, vector<8x128xf32>, vector<8x128xf32>, vector<8x128xf32>, vector<8x128xf32>, vector<8x128xf32>, vector<8x128xf32> -> vector<8x1152xf32>
    %43 = tpu.concatenate %41, %42 in 1 : vector<8x2048xf32>, vector<8x1152xf32> -> vector<8x3200xf32>
    %44 = vector.extract_strided_slice %15 {offsets = [16, 0], sizes = [8, 128], strides = [1, 1]} : vector<192x128xf32> to vector<8x128xf32>
    %45 = vector.extract_strided_slice %15 {offsets = [17, 0], sizes = [8, 128], strides = [1, 1]} : vector<192x128xf32> to vector<8x128xf32>
    %46 = vector.extract_strided_slice %15 {offsets = [18, 0], sizes = [8, 128], strides = [1, 1]} : vector<192x128xf32> to vector<8x128xf32>
    %47 = vector.extract_strided_slice %15 {offsets = [19, 0], sizes = [8, 128], strides = [1, 1]} : vector<192x128xf32> to vector<8x128xf32>
    %48 = vector.extract_strided_slice %15 {offsets = [20, 0], sizes = [8, 128], strides = [1, 1]} : vector<192x128xf32> to vector<8x128xf32>
    %49 = vector.extract_strided_slice %15 {offsets = [32, 0], sizes = [8, 128], strides = [1, 1]} : vector<192x128xf32> to vector<8x128xf32>
    %50 = vector.extract_strided_slice %15 {offsets = [33, 0], sizes = [8, 128], strides = [1, 1]} : vector<192x128xf32> to vector<8x128xf32>
    %51 = vector.extract_strided_slice %15 {offsets = [34, 0], sizes = [8, 128], strides = [1, 1]} : vector<192x128xf32> to vector<8x128xf32>
    %52 = vector.extract_strided_slice %15 {offsets = [35, 0], sizes = [8, 128], strides = [1, 1]} : vector<192x128xf32> to vector<8x128xf32>
    %53 = vector.extract_strided_slice %15 {offsets = [36, 0], sizes = [8, 128], strides = [1, 1]} : vector<192x128xf32> to vector<8x128xf32>
    %54 = vector.extract_strided_slice %15 {offsets = [48, 0], sizes = [8, 128], strides = [1, 1]} : vector<192x128xf32> to vector<8x128xf32>
    %55 = vector.extract_strided_slice %15 {offsets = [49, 0], sizes = [8, 128], strides = [1, 1]} : vector<192x128xf32> to vector<8x128xf32>
    %56 = vector.extract_strided_slice %15 {offsets = [50, 0], sizes = [8, 128], strides = [1, 1]} : vector<192x128xf32> to vector<8x128xf32>
    %57 = vector.extract_strided_slice %15 {offsets = [51, 0], sizes = [8, 128], strides = [1, 1]} : vector<192x128xf32> to vector<8x128xf32>
    %58 = vector.extract_strided_slice %15 {offsets = [52, 0], sizes = [8, 128], strides = [1, 1]} : vector<192x128xf32> to vector<8x128xf32>
    %59 = vector.extract_strided_slice %15 {offsets = [64, 0], sizes = [8, 128], strides = [1, 1]} : vector<192x128xf32> to vector<8x128xf32>
    %60 = vector.extract_strided_slice %15 {offsets = [65, 0], sizes = [8, 128], strides = [1, 1]} : vector<192x128xf32> to vector<8x128xf32>
    %61 = vector.extract_strided_slice %15 {offsets = [66, 0], sizes = [8, 128], strides = [1, 1]} : vector<192x128xf32> to vector<8x128xf32>
    %62 = vector.extract_strided_slice %15 {offsets = [67, 0], sizes = [8, 128], strides = [1, 1]} : vector<192x128xf32> to vector<8x128xf32>
    %63 = vector.extract_strided_slice %15 {offsets = [68, 0], sizes = [8, 128], strides = [1, 1]} : vector<192x128xf32> to vector<8x128xf32>
    %64 = vector.extract_strided_slice %15 {offsets = [80, 0], sizes = [8, 128], strides = [1, 1]} : vector<192x128xf32> to vector<8x128xf32>
    %65 = vector.extract_strided_slice %15 {offsets = [81, 0], sizes = [8, 128], strides = [1, 1]} : vector<192x128xf32> to vector<8x128xf32>
    %66 = vector.extract_strided_slice %15 {offsets = [82, 0], sizes = [8, 128], strides = [1, 1]} : vector<192x128xf32> to vector<8x128xf32>
    %67 = vector.extract_strided_slice %15 {offsets = [83, 0], sizes = [8, 128], strides = [1, 1]} : vector<192x128xf32> to vector<8x128xf32>
    %68 = vector.extract_strided_slice %15 {offsets = [84, 0], sizes = [8, 128], strides = [1, 1]} : vector<192x128xf32> to vector<8x128xf32>
    %69 = tpu.concatenate %44, %45, %46, %47, %48, %49, %50, %51, %52, %53, %54, %55, %56, %57, %58, %59 in 1 : vector<8x128xf32>, vector<8x128xf32>, vector<8x128xf32>, vector<8x128xf32>, vector<8x128xf32>, vector<8x128xf32>, vector<8x128xf32>, vector<8x128xf32>, vector<8x128xf32>, vector<8x128xf32>, vector<8x128xf32>, vector<8x128xf32>, vector<8x128xf32>, vector<8x128xf32>, vector<8x128xf32>, vector<8x128xf32> -> vector<8x2048xf32>
    %70 = tpu.concatenate %60, %61, %62, %63, %64, %65, %66, %67, %68 in 1 : vector<8x128xf32>, vector<8x128xf32>, vector<8x128xf32>, vector<8x128xf32>, vector<8x128xf32>, vector<8x128xf32>, vector<8x128xf32>, vector<8x128xf32>, vector<8x128xf32> -> vector<8x1152xf32>
    %71 = tpu.concatenate %69, %70 in 1 : vector<8x2048xf32>, vector<8x1152xf32> -> vector<8x3200xf32>
    %72 = vector.extract_strided_slice %15 {offsets = [32, 0], sizes = [8, 128], strides = [1, 1]} : vector<192x128xf32> to vector<8x128xf32>
    %73 = vector.extract_strided_slice %15 {offsets = [33, 0], sizes = [8, 128], strides = [1, 1]} : vector<192x128xf32> to vector<8x128xf32>
    %74 = vector.extract_strided_slice %15 {offsets = [34, 0], sizes = [8, 128], strides = [1, 1]} : vector<192x128xf32> to vector<8x128xf32>
    %75 = vector.extract_strided_slice %15 {offsets = [35, 0], sizes = [8, 128], strides = [1, 1]} : vector<192x128xf32> to vector<8x128xf32>
    %76 = vector.extract_strided_slice %15 {offsets = [36, 0], sizes = [8, 128], strides = [1, 1]} : vector<192x128xf32> to vector<8x128xf32>
    %77 = vector.extract_strided_slice %15 {offsets = [48, 0], sizes = [8, 128], strides = [1, 1]} : vector<192x128xf32> to vector<8x128xf32>
    %78 = vector.extract_strided_slice %15 {offsets = [49, 0], sizes = [8, 128], strides = [1, 1]} : vector<192x128xf32> to vector<8x128xf32>
    %79 = vector.extract_strided_slice %15 {offsets = [50, 0], sizes = [8, 128], strides = [1, 1]} : vector<192x128xf32> to vector<8x128xf32>
    %80 = vector.extract_strided_slice %15 {offsets = [51, 0], sizes = [8, 128], strides = [1, 1]} : vector<192x128xf32> to vector<8x128xf32>
    %81 = vector.extract_strided_slice %15 {offsets = [52, 0], sizes = [8, 128], strides = [1, 1]} : vector<192x128xf32> to vector<8x128xf32>
    %82 = vector.extract_strided_slice %15 {offsets = [64, 0], sizes = [8, 128], strides = [1, 1]} : vector<192x128xf32> to vector<8x128xf32>
    %83 = vector.extract_strided_slice %15 {offsets = [65, 0], sizes = [8, 128], strides = [1, 1]} : vector<192x128xf32> to vector<8x128xf32>
    %84 = vector.extract_strided_slice %15 {offsets = [66, 0], sizes = [8, 128], strides = [1, 1]} : vector<192x128xf32> to vector<8x128xf32>
    %85 = vector.extract_strided_slice %15 {offsets = [67, 0], sizes = [8, 128], strides = [1, 1]} : vector<192x128xf32> to vector<8x128xf32>
    %86 = vector.extract_strided_slice %15 {offsets = [68, 0], sizes = [8, 128], strides = [1, 1]} : vector<192x128xf32> to vector<8x128xf32>
    %87 = vector.extract_strided_slice %15 {offsets = [80, 0], sizes = [8, 128], strides = [1, 1]} : vector<192x128xf32> to vector<8x128xf32>
    %88 = vector.extract_strided_slice %15 {offsets = [81, 0], sizes = [8, 128], strides = [1, 1]} : vector<192x128xf32> to vector<8x128xf32>
    %89 = vector.extract_strided_slice %15 {offsets = [82, 0], sizes = [8, 128], strides = [1, 1]} : vector<192x128xf32> to vector<8x128xf32>
    %90 = vector.extract_strided_slice %15 {offsets = [83, 0], sizes = [8, 128], strides = [1, 1]} : vector<192x128xf32> to vector<8x128xf32>
    %91 = vector.extract_strided_slice %15 {offsets = [84, 0], sizes = [8, 128], strides = [1, 1]} : vector<192x128xf32> to vector<8x128xf32>
    %92 = vector.extract_strided_slice %15 {offsets = [96, 0], sizes = [8, 128], strides = [1, 1]} : vector<192x128xf32> to vector<8x128xf32>
    %93 = vector.extract_strided_slice %15 {offsets = [97, 0], sizes = [8, 128], strides = [1, 1]} : vector<192x128xf32> to vector<8x128xf32>
    %94 = vector.extract_strided_slice %15 {offsets = [98, 0], sizes = [8, 128], strides = [1, 1]} : vector<192x128xf32> to vector<8x128xf32>
    %95 = vector.extract_strided_slice %15 {offsets = [99, 0], sizes = [8, 128], strides = [1, 1]} : vector<192x128xf32> to vector<8x128xf32>
    %96 = vector.extract_strided_slice %15 {offsets = [100, 0], sizes = [8, 128], strides = [1, 1]} : vector<192x128xf32> to vector<8x128xf32>
    %97 = tpu.concatenate %72, %73, %74, %75, %76, %77, %78, %79, %80, %81, %82, %83, %84, %85, %86, %87 in 1 : vector<8x128xf32>, vector<8x128xf32>, vector<8x128xf32>, vector<8x128xf32>, vector<8x128xf32>, vector<8x128xf32>, vector<8x128xf32>, vector<8x128xf32>, vector<8x128xf32>, vector<8x128xf32>, vector<8x128xf32>, vector<8x128xf32>, vector<8x128xf32>, vector<8x128xf32>, vector<8x128xf32>, vector<8x128xf32> -> vector<8x2048xf32>
    %98 = tpu.concatenate %88, %89, %90, %91, %92, %93, %94, %95, %96 in 1 : vector<8x128xf32>, vector<8x128xf32>, vector<8x128xf32>, vector<8x128xf32>, vector<8x128xf32>, vector<8x128xf32>, vector<8x128xf32>, vector<8x128xf32>, vector<8x128xf32> -> vector<8x1152xf32>
    %99 = tpu.concatenate %97, %98 in 1 : vector<8x2048xf32>, vector<8x1152xf32> -> vector<8x3200xf32>
    %100 = vector.extract_strided_slice %15 {offsets = [48, 0], sizes = [8, 128], strides = [1, 1]} : vector<192x128xf32> to vector<8x128xf32>
    %101 = vector.extract_strided_slice %15 {offsets = [49, 0], sizes = [8, 128], strides = [1, 1]} : vector<192x128xf32> to vector<8x128xf32>
    %102 = vector.extract_strided_slice %15 {offsets = [50, 0], sizes = [8, 128], strides = [1, 1]} : vector<192x128xf32> to vector<8x128xf32>
    %103 = vector.extract_strided_slice %15 {offsets = [51, 0], sizes = [8, 128], strides = [1, 1]} : vector<192x128xf32> to vector<8x128xf32>
    %104 = vector.extract_strided_slice %15 {offsets = [52, 0], sizes = [8, 128], strides = [1, 1]} : vector<192x128xf32> to vector<8x128xf32>
    %105 = vector.extract_strided_slice %15 {offsets = [64, 0], sizes = [8, 128], strides = [1, 1]} : vector<192x128xf32> to vector<8x128xf32>
    %106 = vector.extract_strided_slice %15 {offsets = [65, 0], sizes = [8, 128], strides = [1, 1]} : vector<192x128xf32> to vector<8x128xf32>
    %107 = vector.extract_strided_slice %15 {offsets = [66, 0], sizes = [8, 128], strides = [1, 1]} : vector<192x128xf32> to vector<8x128xf32>
    %108 = vector.extract_strided_slice %15 {offsets = [67, 0], sizes = [8, 128], strides = [1, 1]} : vector<192x128xf32> to vector<8x128xf32>
    %109 = vector.extract_strided_slice %15 {offsets = [68, 0], sizes = [8, 128], strides = [1, 1]} : vector<192x128xf32> to vector<8x128xf32>
    %110 = vector.extract_strided_slice %15 {offsets = [80, 0], sizes = [8, 128], strides = [1, 1]} : vector<192x128xf32> to vector<8x128xf32>
    %111 = vector.extract_strided_slice %15 {offsets = [81, 0], sizes = [8, 128], strides = [1, 1]} : vector<192x128xf32> to vector<8x128xf32>
    %112 = vector.extract_strided_slice %15 {offsets = [82, 0], sizes = [8, 128], strides = [1, 1]} : vector<192x128xf32> to vector<8x128xf32>
    %113 = vector.extract_strided_slice %15 {offsets = [83, 0], sizes = [8, 128], strides = [1, 1]} : vector<192x128xf32> to vector<8x128xf32>
    %114 = vector.extract_strided_slice %15 {offsets = [84, 0], sizes = [8, 128], strides = [1, 1]} : vector<192x128xf32> to vector<8x128xf32>
    %115 = vector.extract_strided_slice %15 {offsets = [96, 0], sizes = [8, 128], strides = [1, 1]} : vector<192x128xf32> to vector<8x128xf32>
    %116 = vector.extract_strided_slice %15 {offsets = [97, 0], sizes = [8, 128], strides = [1, 1]} : vector<192x128xf32> to vector<8x128xf32>
    %117 = vector.extract_strided_slice %15 {offsets = [98, 0], sizes = [8, 128], strides = [1, 1]} : vector<192x128xf32> to vector<8x128xf32>
    %118 = vector.extract_strided_slice %15 {offsets = [99, 0], sizes = [8, 128], strides = [1, 1]} : vector<192x128xf32> to vector<8x128xf32>
    %119 = vector.extract_strided_slice %15 {offsets = [100, 0], sizes = [8, 128], strides = [1, 1]} : vector<192x128xf32> to vector<8x128xf32>
    %120 = vector.extract_strided_slice %15 {offsets = [112, 0], sizes = [8, 128], strides = [1, 1]} : vector<192x128xf32> to vector<8x128xf32>
    %121 = vector.extract_strided_slice %15 {offsets = [113, 0], sizes = [8, 128], strides = [1, 1]} : vector<192x128xf32> to vector<8x128xf32>
    %122 = vector.extract_strided_slice %15 {offsets = [114, 0], sizes = [8, 128], strides = [1, 1]} : vector<192x128xf32> to vector<8x128xf32>
    %123 = vector.extract_strided_slice %15 {offsets = [115, 0], sizes = [8, 128], strides = [1, 1]} : vector<192x128xf32> to vector<8x128xf32>
    %124 = vector.extract_strided_slice %15 {offsets = [116, 0], sizes = [8, 128], strides = [1, 1]} : vector<192x128xf32> to vector<8x128xf32>
    %125 = tpu.concatenate %100, %101, %102, %103, %104, %105, %106, %107, %108, %109, %110, %111, %112, %113, %114, %115 in 1 : vector<8x128xf32>, vector<8x128xf32>, vector<8x128xf32>, vector<8x128xf32>, vector<8x128xf32>, vector<8x128xf32>, vector<8x128xf32>, vector<8x128xf32>, vector<8x128xf32>, vector<8x128xf32>, vector<8x128xf32>, vector<8x128xf32>, vector<8x128xf32>, vector<8x128xf32>, vector<8x128xf32>, vector<8x128xf32> -> vector<8x2048xf32>
    %126 = tpu.concatenate %116, %117, %118, %119, %120, %121, %122, %123, %124 in 1 : vector<8x128xf32>, vector<8x128xf32>, vector<8x128xf32>, vector<8x128xf32>, vector<8x128xf32>, vector<8x128xf32>, vector<8x128xf32>, vector<8x128xf32>, vector<8x128xf32> -> vector<8x1152xf32>
    %127 = tpu.concatenate %125, %126 in 1 : vector<8x2048xf32>, vector<8x1152xf32> -> vector<8x3200xf32>
    %128 = vector.extract_strided_slice %15 {offsets = [64, 0], sizes = [8, 128], strides = [1, 1]} : vector<192x128xf32> to vector<8x128xf32>
    %129 = vector.extract_strided_slice %15 {offsets = [65, 0], sizes = [8, 128], strides = [1, 1]} : vector<192x128xf32> to vector<8x128xf32>
    %130 = vector.extract_strided_slice %15 {offsets = [66, 0], sizes = [8, 128], strides = [1, 1]} : vector<192x128xf32> to vector<8x128xf32>
    %131 = vector.extract_strided_slice %15 {offsets = [67, 0], sizes = [8, 128], strides = [1, 1]} : vector<192x128xf32> to vector<8x128xf32>
    %132 = vector.extract_strided_slice %15 {offsets = [68, 0], sizes = [8, 128], strides = [1, 1]} : vector<192x128xf32> to vector<8x128xf32>
    %133 = vector.extract_strided_slice %15 {offsets = [80, 0], sizes = [8, 128], strides = [1, 1]} : vector<192x128xf32> to vector<8x128xf32>
    %134 = vector.extract_strided_slice %15 {offsets = [81, 0], sizes = [8, 128], strides = [1, 1]} : vector<192x128xf32> to vector<8x128xf32>
    %135 = vector.extract_strided_slice %15 {offsets = [82, 0], sizes = [8, 128], strides = [1, 1]} : vector<192x128xf32> to vector<8x128xf32>
    %136 = vector.extract_strided_slice %15 {offsets = [83, 0], sizes = [8, 128], strides = [1, 1]} : vector<192x128xf32> to vector<8x128xf32>
    %137 = vector.extract_strided_slice %15 {offsets = [84, 0], sizes = [8, 128], strides = [1, 1]} : vector<192x128xf32> to vector<8x128xf32>
    %138 = vector.extract_strided_slice %15 {offsets = [96, 0], sizes = [8, 128], strides = [1, 1]} : vector<192x128xf32> to vector<8x128xf32>
    %139 = vector.extract_strided_slice %15 {offsets = [97, 0], sizes = [8, 128], strides = [1, 1]} : vector<192x128xf32> to vector<8x128xf32>
    %140 = vector.extract_strided_slice %15 {offsets = [98, 0], sizes = [8, 128], strides = [1, 1]} : vector<192x128xf32> to vector<8x128xf32>
    %141 = vector.extract_strided_slice %15 {offsets = [99, 0], sizes = [8, 128], strides = [1, 1]} : vector<192x128xf32> to vector<8x128xf32>
    %142 = vector.extract_strided_slice %15 {offsets = [100, 0], sizes = [8, 128], strides = [1, 1]} : vector<192x128xf32> to vector<8x128xf32>
    %143 = vector.extract_strided_slice %15 {offsets = [112, 0], sizes = [8, 128], strides = [1, 1]} : vector<192x128xf32> to vector<8x128xf32>
    %144 = vector.extract_strided_slice %15 {offsets = [113, 0], sizes = [8, 128], strides = [1, 1]} : vector<192x128xf32> to vector<8x128xf32>
    %145 = vector.extract_strided_slice %15 {offsets = [114, 0], sizes = [8, 128], strides = [1, 1]} : vector<192x128xf32> to vector<8x128xf32>
    %146 = vector.extract_strided_slice %15 {offsets = [115, 0], sizes = [8, 128], strides = [1, 1]} : vector<192x128xf32> to vector<8x128xf32>
    %147 = vector.extract_strided_slice %15 {offsets = [116, 0], sizes = [8, 128], strides = [1, 1]} : vector<192x128xf32> to vector<8x128xf32>
    %148 = vector.extract_strided_slice %15 {offsets = [128, 0], sizes = [8, 128], strides = [1, 1]} : vector<192x128xf32> to vector<8x128xf32>
    %149 = vector.extract_strided_slice %15 {offsets = [129, 0], sizes = [8, 128], strides = [1, 1]} : vector<192x128xf32> to vector<8x128xf32>
    %150 = vector.extract_strided_slice %15 {offsets = [130, 0], sizes = [8, 128], strides = [1, 1]} : vector<192x128xf32> to vector<8x128xf32>
    %151 = vector.extract_strided_slice %15 {offsets = [131, 0], sizes = [8, 128], strides = [1, 1]} : vector<192x128xf32> to vector<8x128xf32>
    %152 = vector.extract_strided_slice %15 {offsets = [132, 0], sizes = [8, 128], strides = [1, 1]} : vector<192x128xf32> to vector<8x128xf32>
    %153 = tpu.concatenate %128, %129, %130, %131, %132, %133, %134, %135, %136, %137, %138, %139, %140, %141, %142, %143 in 1 : vector<8x128xf32>, vector<8x128xf32>, vector<8x128xf32>, vector<8x128xf32>, vector<8x128xf32>, vector<8x128xf32>, vector<8x128xf32>, vector<8x128xf32>, vector<8x128xf32>, vector<8x128xf32>, vector<8x128xf32>, vector<8x128xf32>, vector<8x128xf32>, vector<8x128xf32>, vector<8x128xf32>, vector<8x128xf32> -> vector<8x2048xf32>
    %154 = tpu.concatenate %144, %145, %146, %147, %148, %149, %150, %151, %152 in 1 : vector<8x128xf32>, vector<8x128xf32>, vector<8x128xf32>, vector<8x128xf32>, vector<8x128xf32>, vector<8x128xf32>, vector<8x128xf32>, vector<8x128xf32>, vector<8x128xf32> -> vector<8x1152xf32>
    %155 = tpu.concatenate %153, %154 in 1 : vector<8x2048xf32>, vector<8x1152xf32> -> vector<8x3200xf32>
    %156 = vector.extract_strided_slice %15 {offsets = [80, 0], sizes = [8, 128], strides = [1, 1]} : vector<192x128xf32> to vector<8x128xf32>
    %157 = vector.extract_strided_slice %15 {offsets = [81, 0], sizes = [8, 128], strides = [1, 1]} : vector<192x128xf32> to vector<8x128xf32>
    %158 = vector.extract_strided_slice %15 {offsets = [82, 0], sizes = [8, 128], strides = [1, 1]} : vector<192x128xf32> to vector<8x128xf32>
    %159 = vector.extract_strided_slice %15 {offsets = [83, 0], sizes = [8, 128], strides = [1, 1]} : vector<192x128xf32> to vector<8x128xf32>
    %160 = vector.extract_strided_slice %15 {offsets = [84, 0], sizes = [8, 128], strides = [1, 1]} : vector<192x128xf32> to vector<8x128xf32>
    %161 = vector.extract_strided_slice %15 {offsets = [96, 0], sizes = [8, 128], strides = [1, 1]} : vector<192x128xf32> to vector<8x128xf32>
    %162 = vector.extract_strided_slice %15 {offsets = [97, 0], sizes = [8, 128], strides = [1, 1]} : vector<192x128xf32> to vector<8x128xf32>
    %163 = vector.extract_strided_slice %15 {offsets = [98, 0], sizes = [8, 128], strides = [1, 1]} : vector<192x128xf32> to vector<8x128xf32>
    %164 = vector.extract_strided_slice %15 {offsets = [99, 0], sizes = [8, 128], strides = [1, 1]} : vector<192x128xf32> to vector<8x128xf32>
    %165 = vector.extract_strided_slice %15 {offsets = [100, 0], sizes = [8, 128], strides = [1, 1]} : vector<192x128xf32> to vector<8x128xf32>
    %166 = vector.extract_strided_slice %15 {offsets = [112, 0], sizes = [8, 128], strides = [1, 1]} : vector<192x128xf32> to vector<8x128xf32>
    %167 = vector.extract_strided_slice %15 {offsets = [113, 0], sizes = [8, 128], strides = [1, 1]} : vector<192x128xf32> to vector<8x128xf32>
    %168 = vector.extract_strided_slice %15 {offsets = [114, 0], sizes = [8, 128], strides = [1, 1]} : vector<192x128xf32> to vector<8x128xf32>
    %169 = vector.extract_strided_slice %15 {offsets = [115, 0], sizes = [8, 128], strides = [1, 1]} : vector<192x128xf32> to vector<8x128xf32>
    %170 = vector.extract_strided_slice %15 {offsets = [116, 0], sizes = [8, 128], strides = [1, 1]} : vector<192x128xf32> to vector<8x128xf32>
    %171 = vector.extract_strided_slice %15 {offsets = [128, 0], sizes = [8, 128], strides = [1, 1]} : vector<192x128xf32> to vector<8x128xf32>
    %172 = vector.extract_strided_slice %15 {offsets = [129, 0], sizes = [8, 128], strides = [1, 1]} : vector<192x128xf32> to vector<8x128xf32>
    %173 = vector.extract_strided_slice %15 {offsets = [130, 0], sizes = [8, 128], strides = [1, 1]} : vector<192x128xf32> to vector<8x128xf32>
    %174 = vector.extract_strided_slice %15 {offsets = [131, 0], sizes = [8, 128], strides = [1, 1]} : vector<192x128xf32> to vector<8x128xf32>
    %175 = vector.extract_strided_slice %15 {offsets = [132, 0], sizes = [8, 128], strides = [1, 1]} : vector<192x128xf32> to vector<8x128xf32>
    %176 = vector.extract_strided_slice %15 {offsets = [144, 0], sizes = [8, 128], strides = [1, 1]} : vector<192x128xf32> to vector<8x128xf32>
    %177 = vector.extract_strided_slice %15 {offsets = [145, 0], sizes = [8, 128], strides = [1, 1]} : vector<192x128xf32> to vector<8x128xf32>
    %178 = vector.extract_strided_slice %15 {offsets = [146, 0], sizes = [8, 128], strides = [1, 1]} : vector<192x128xf32> to vector<8x128xf32>
    %179 = vector.extract_strided_slice %15 {offsets = [147, 0], sizes = [8, 128], strides = [1, 1]} : vector<192x128xf32> to vector<8x128xf32>
    %180 = vector.extract_strided_slice %15 {offsets = [148, 0], sizes = [8, 128], strides = [1, 1]} : vector<192x128xf32> to vector<8x128xf32>
    %181 = tpu.concatenate %156, %157, %158, %159, %160, %161, %162, %163, %164, %165, %166, %167, %168, %169, %170, %171 in 1 : vector<8x128xf32>, vector<8x128xf32>, vector<8x128xf32>, vector<8x128xf32>, vector<8x128xf32>, vector<8x128xf32>, vector<8x128xf32>, vector<8x128xf32>, vector<8x128xf32>, vector<8x128xf32>, vector<8x128xf32>, vector<8x128xf32>, vector<8x128xf32>, vector<8x128xf32>, vector<8x128xf32>, vector<8x128xf32> -> vector<8x2048xf32>
    %182 = tpu.concatenate %172, %173, %174, %175, %176, %177, %178, %179, %180 in 1 : vector<8x128xf32>, vector<8x128xf32>, vector<8x128xf32>, vector<8x128xf32>, vector<8x128xf32>, vector<8x128xf32>, vector<8x128xf32>, vector<8x128xf32>, vector<8x128xf32> -> vector<8x1152xf32>
    %183 = tpu.concatenate %181, %182 in 1 : vector<8x2048xf32>, vector<8x1152xf32> -> vector<8x3200xf32>
    %184 = vector.extract_strided_slice %15 {offsets = [96, 0], sizes = [8, 128], strides = [1, 1]} : vector<192x128xf32> to vector<8x128xf32>
    %185 = vector.extract_strided_slice %15 {offsets = [97, 0], sizes = [8, 128], strides = [1, 1]} : vector<192x128xf32> to vector<8x128xf32>
    %186 = vector.extract_strided_slice %15 {offsets = [98, 0], sizes = [8, 128], strides = [1, 1]} : vector<192x128xf32> to vector<8x128xf32>
    %187 = vector.extract_strided_slice %15 {offsets = [99, 0], sizes = [8, 128], strides = [1, 1]} : vector<192x128xf32> to vector<8x128xf32>
    %188 = vector.extract_strided_slice %15 {offsets = [100, 0], sizes = [8, 128], strides = [1, 1]} : vector<192x128xf32> to vector<8x128xf32>
    %189 = vector.extract_strided_slice %15 {offsets = [112, 0], sizes = [8, 128], strides = [1, 1]} : vector<192x128xf32> to vector<8x128xf32>
    %190 = vector.extract_strided_slice %15 {offsets = [113, 0], sizes = [8, 128], strides = [1, 1]} : vector<192x128xf32> to vector<8x128xf32>
    %191 = vector.extract_strided_slice %15 {offsets = [114, 0], sizes = [8, 128], strides = [1, 1]} : vector<192x128xf32> to vector<8x128xf32>
    %192 = vector.extract_strided_slice %15 {offsets = [115, 0], sizes = [8, 128], strides = [1, 1]} : vector<192x128xf32> to vector<8x128xf32>
    %193 = vector.extract_strided_slice %15 {offsets = [116, 0], sizes = [8, 128], strides = [1, 1]} : vector<192x128xf32> to vector<8x128xf32>
    %194 = vector.extract_strided_slice %15 {offsets = [128, 0], sizes = [8, 128], strides = [1, 1]} : vector<192x128xf32> to vector<8x128xf32>
    %195 = vector.extract_strided_slice %15 {offsets = [129, 0], sizes = [8, 128], strides = [1, 1]} : vector<192x128xf32> to vector<8x128xf32>
    %196 = vector.extract_strided_slice %15 {offsets = [130, 0], sizes = [8, 128], strides = [1, 1]} : vector<192x128xf32> to vector<8x128xf32>
    %197 = vector.extract_strided_slice %15 {offsets = [131, 0], sizes = [8, 128], strides = [1, 1]} : vector<192x128xf32> to vector<8x128xf32>
    %198 = vector.extract_strided_slice %15 {offsets = [132, 0], sizes = [8, 128], strides = [1, 1]} : vector<192x128xf32> to vector<8x128xf32>
    %199 = vector.extract_strided_slice %15 {offsets = [144, 0], sizes = [8, 128], strides = [1, 1]} : vector<192x128xf32> to vector<8x128xf32>
    %200 = vector.extract_strided_slice %15 {offsets = [145, 0], sizes = [8, 128], strides = [1, 1]} : vector<192x128xf32> to vector<8x128xf32>
    %201 = vector.extract_strided_slice %15 {offsets = [146, 0], sizes = [8, 128], strides = [1, 1]} : vector<192x128xf32> to vector<8x128xf32>
    %202 = vector.extract_strided_slice %15 {offsets = [147, 0], sizes = [8, 128], strides = [1, 1]} : vector<192x128xf32> to vector<8x128xf32>
    %203 = vector.extract_strided_slice %15 {offsets = [148, 0], sizes = [8, 128], strides = [1, 1]} : vector<192x128xf32> to vector<8x128xf32>
    %204 = vector.extract_strided_slice %15 {offsets = [160, 0], sizes = [8, 128], strides = [1, 1]} : vector<192x128xf32> to vector<8x128xf32>
    %205 = vector.extract_strided_slice %15 {offsets = [161, 0], sizes = [8, 128], strides = [1, 1]} : vector<192x128xf32> to vector<8x128xf32>
    %206 = vector.extract_strided_slice %15 {offsets = [162, 0], sizes = [8, 128], strides = [1, 1]} : vector<192x128xf32> to vector<8x128xf32>
    %207 = vector.extract_strided_slice %15 {offsets = [163, 0], sizes = [8, 128], strides = [1, 1]} : vector<192x128xf32> to vector<8x128xf32>
    %208 = vector.extract_strided_slice %15 {offsets = [164, 0], sizes = [8, 128], strides = [1, 1]} : vector<192x128xf32> to vector<8x128xf32>
    %209 = tpu.concatenate %184, %185, %186, %187, %188, %189, %190, %191, %192, %193, %194, %195, %196, %197, %198, %199 in 1 : vector<8x128xf32>, vector<8x128xf32>, vector<8x128xf32>, vector<8x128xf32>, vector<8x128xf32>, vector<8x128xf32>, vector<8x128xf32>, vector<8x128xf32>, vector<8x128xf32>, vector<8x128xf32>, vector<8x128xf32>, vector<8x128xf32>, vector<8x128xf32>, vector<8x128xf32>, vector<8x128xf32>, vector<8x128xf32> -> vector<8x2048xf32>
    %210 = tpu.concatenate %200, %201, %202, %203, %204, %205, %206, %207, %208 in 1 : vector<8x128xf32>, vector<8x128xf32>, vector<8x128xf32>, vector<8x128xf32>, vector<8x128xf32>, vector<8x128xf32>, vector<8x128xf32>, vector<8x128xf32>, vector<8x128xf32> -> vector<8x1152xf32>
    %211 = tpu.concatenate %209, %210 in 1 : vector<8x2048xf32>, vector<8x1152xf32> -> vector<8x3200xf32>
    %212 = vector.extract_strided_slice %15 {offsets = [112, 0], sizes = [8, 128], strides = [1, 1]} : vector<192x128xf32> to vector<8x128xf32>
    %213 = vector.extract_strided_slice %15 {offsets = [113, 0], sizes = [8, 128], strides = [1, 1]} : vector<192x128xf32> to vector<8x128xf32>
    %214 = vector.extract_strided_slice %15 {offsets = [114, 0], sizes = [8, 128], strides = [1, 1]} : vector<192x128xf32> to vector<8x128xf32>
    %215 = vector.extract_strided_slice %15 {offsets = [115, 0], sizes = [8, 128], strides = [1, 1]} : vector<192x128xf32> to vector<8x128xf32>
    %216 = vector.extract_strided_slice %15 {offsets = [116, 0], sizes = [8, 128], strides = [1, 1]} : vector<192x128xf32> to vector<8x128xf32>
    %217 = vector.extract_strided_slice %15 {offsets = [128, 0], sizes = [8, 128], strides = [1, 1]} : vector<192x128xf32> to vector<8x128xf32>
    %218 = vector.extract_strided_slice %15 {offsets = [129, 0], sizes = [8, 128], strides = [1, 1]} : vector<192x128xf32> to vector<8x128xf32>
    %219 = vector.extract_strided_slice %15 {offsets = [130, 0], sizes = [8, 128], strides = [1, 1]} : vector<192x128xf32> to vector<8x128xf32>
    %220 = vector.extract_strided_slice %15 {offsets = [131, 0], sizes = [8, 128], strides = [1, 1]} : vector<192x128xf32> to vector<8x128xf32>
    %221 = vector.extract_strided_slice %15 {offsets = [132, 0], sizes = [8, 128], strides = [1, 1]} : vector<192x128xf32> to vector<8x128xf32>
    %222 = vector.extract_strided_slice %15 {offsets = [144, 0], sizes = [8, 128], strides = [1, 1]} : vector<192x128xf32> to vector<8x128xf32>
    %223 = vector.extract_strided_slice %15 {offsets = [145, 0], sizes = [8, 128], strides = [1, 1]} : vector<192x128xf32> to vector<8x128xf32>
    %224 = vector.extract_strided_slice %15 {offsets = [146, 0], sizes = [8, 128], strides = [1, 1]} : vector<192x128xf32> to vector<8x128xf32>
    %225 = vector.extract_strided_slice %15 {offsets = [147, 0], sizes = [8, 128], strides = [1, 1]} : vector<192x128xf32> to vector<8x128xf32>
    %226 = vector.extract_strided_slice %15 {offsets = [148, 0], sizes = [8, 128], strides = [1, 1]} : vector<192x128xf32> to vector<8x128xf32>
    %227 = vector.extract_strided_slice %15 {offsets = [160, 0], sizes = [8, 128], strides = [1, 1]} : vector<192x128xf32> to vector<8x128xf32>
    %228 = vector.extract_strided_slice %15 {offsets = [161, 0], sizes = [8, 128], strides = [1, 1]} : vector<192x128xf32> to vector<8x128xf32>
    %229 = vector.extract_strided_slice %15 {offsets = [162, 0], sizes = [8, 128], strides = [1, 1]} : vector<192x128xf32> to vector<8x128xf32>
    %230 = vector.extract_strided_slice %15 {offsets = [163, 0], sizes = [8, 128], strides = [1, 1]} : vector<192x128xf32> to vector<8x128xf32>
    %231 = vector.extract_strided_slice %15 {offsets = [164, 0], sizes = [8, 128], strides = [1, 1]} : vector<192x128xf32> to vector<8x128xf32>
    %232 = vector.extract_strided_slice %15 {offsets = [176, 0], sizes = [8, 128], strides = [1, 1]} : vector<192x128xf32> to vector<8x128xf32>
    %233 = vector.extract_strided_slice %15 {offsets = [177, 0], sizes = [8, 128], strides = [1, 1]} : vector<192x128xf32> to vector<8x128xf32>
    %234 = vector.extract_strided_slice %15 {offsets = [178, 0], sizes = [8, 128], strides = [1, 1]} : vector<192x128xf32> to vector<8x128xf32>
    %235 = vector.extract_strided_slice %15 {offsets = [179, 0], sizes = [8, 128], strides = [1, 1]} : vector<192x128xf32> to vector<8x128xf32>
    %236 = vector.extract_strided_slice %15 {offsets = [180, 0], sizes = [8, 128], strides = [1, 1]} : vector<192x128xf32> to vector<8x128xf32>
    %237 = tpu.concatenate %212, %213, %214, %215, %216, %217, %218, %219, %220, %221, %222, %223, %224, %225, %226, %227 in 1 : vector<8x128xf32>, vector<8x128xf32>, vector<8x128xf32>, vector<8x128xf32>, vector<8x128xf32>, vector<8x128xf32>, vector<8x128xf32>, vector<8x128xf32>, vector<8x128xf32>, vector<8x128xf32>, vector<8x128xf32>, vector<8x128xf32>, vector<8x128xf32>, vector<8x128xf32>, vector<8x128xf32>, vector<8x128xf32> -> vector<8x2048xf32>
    %238 = tpu.concatenate %228, %229, %230, %231, %232, %233, %234, %235, %236 in 1 : vector<8x128xf32>, vector<8x128xf32>, vector<8x128xf32>, vector<8x128xf32>, vector<8x128xf32>, vector<8x128xf32>, vector<8x128xf32>, vector<8x128xf32>, vector<8x128xf32> -> vector<8x1152xf32>
    %239 = tpu.concatenate %237, %238 in 1 : vector<8x2048xf32>, vector<8x1152xf32> -> vector<8x3200xf32>
    %240 = tpu.concatenate %43, %71, %99, %127, %155, %183, %211, %239 in 0 : vector<8x3200xf32>, vector<8x3200xf32>, vector<8x3200xf32>, vector<8x3200xf32>, vector<8x3200xf32>, vector<8x3200xf32>, vector<8x3200xf32>, vector<8x3200xf32> -> vector<64x3200xf32>
    %241 = arith.truncf %240 : vector<64x3200xf32> to vector<64x3200xbf16>
    %c0_7 = arith.constant 0 : index
    %c0_8 = arith.constant 0 : index
    %242 = vector.load %arg4[%c0_7, %c0_8] : memref<3200x128xbf16, #tpu.memory_space<vmem>>, vector<3200x128xbf16>
    %cst_9 = arith.constant dense<0.000000e+00> : vector<64x128xf32>
    %243 = tpu.matmul %241, %242, %cst_9 {dimension_numbers = #tpu.dot_dimension_numbers<[1], [0], [0], [1], [0, 0, 1, 1], [], []>} : vector<64x3200xbf16>, vector<3200x128xbf16>, vector<64x128xf32> -> vector<64x128xf32>
    %244 = vector.extract_strided_slice %243 {offsets = [0, 0], sizes = [1, 128], strides = [1, 1]} : vector<64x128xf32> to vector<1x128xf32>
    %245 = vector.extract_strided_slice %243 {offsets = [1, 0], sizes = [1, 128], strides = [1, 1]} : vector<64x128xf32> to vector<1x128xf32>
    %246 = arith.maximumf %244, %245 : vector<1x128xf32>
    %247 = vector.extract_strided_slice %243 {offsets = [8, 0], sizes = [1, 128], strides = [1, 1]} : vector<64x128xf32> to vector<1x128xf32>
    %248 = vector.extract_strided_slice %243 {offsets = [9, 0], sizes = [1, 128], strides = [1, 1]} : vector<64x128xf32> to vector<1x128xf32>
    %249 = arith.maximumf %247, %248 : vector<1x128xf32>
    %250 = arith.maximumf %246, %249 : vector<1x128xf32>
    %251 = vector.extract_strided_slice %243 {offsets = [2, 0], sizes = [1, 128], strides = [1, 1]} : vector<64x128xf32> to vector<1x128xf32>
    %252 = vector.extract_strided_slice %243 {offsets = [3, 0], sizes = [1, 128], strides = [1, 1]} : vector<64x128xf32> to vector<1x128xf32>
    %253 = arith.maximumf %251, %252 : vector<1x128xf32>
    %254 = vector.extract_strided_slice %243 {offsets = [10, 0], sizes = [1, 128], strides = [1, 1]} : vector<64x128xf32> to vector<1x128xf32>
    %255 = vector.extract_strided_slice %243 {offsets = [11, 0], sizes = [1, 128], strides = [1, 1]} : vector<64x128xf32> to vector<1x128xf32>
    %256 = arith.maximumf %254, %255 : vector<1x128xf32>
    %257 = arith.maximumf %253, %256 : vector<1x128xf32>
    %258 = vector.extract_strided_slice %243 {offsets = [4, 0], sizes = [1, 128], strides = [1, 1]} : vector<64x128xf32> to vector<1x128xf32>
    %259 = vector.extract_strided_slice %243 {offsets = [5, 0], sizes = [1, 128], strides = [1, 1]} : vector<64x128xf32> to vector<1x128xf32>
    %260 = arith.maximumf %258, %259 : vector<1x128xf32>
    %261 = vector.extract_strided_slice %243 {offsets = [12, 0], sizes = [1, 128], strides = [1, 1]} : vector<64x128xf32> to vector<1x128xf32>
    %262 = vector.extract_strided_slice %243 {offsets = [13, 0], sizes = [1, 128], strides = [1, 1]} : vector<64x128xf32> to vector<1x128xf32>
    %263 = arith.maximumf %261, %262 : vector<1x128xf32>
    %264 = arith.maximumf %260, %263 : vector<1x128xf32>
    %265 = vector.extract_strided_slice %243 {offsets = [6, 0], sizes = [1, 128], strides = [1, 1]} : vector<64x128xf32> to vector<1x128xf32>
    %266 = vector.extract_strided_slice %243 {offsets = [7, 0], sizes = [1, 128], strides = [1, 1]} : vector<64x128xf32> to vector<1x128xf32>
    %267 = arith.maximumf %265, %266 : vector<1x128xf32>
    %268 = vector.extract_strided_slice %243 {offsets = [14, 0], sizes = [1, 128], strides = [1, 1]} : vector<64x128xf32> to vector<1x128xf32>
    %269 = vector.extract_strided_slice %243 {offsets = [15, 0], sizes = [1, 128], strides = [1, 1]} : vector<64x128xf32> to vector<1x128xf32>
    %270 = arith.maximumf %268, %269 : vector<1x128xf32>
    %271 = arith.maximumf %267, %270 : vector<1x128xf32>
    %272 = vector.extract_strided_slice %243 {offsets = [16, 0], sizes = [1, 128], strides = [1, 1]} : vector<64x128xf32> to vector<1x128xf32>
    %273 = vector.extract_strided_slice %243 {offsets = [17, 0], sizes = [1, 128], strides = [1, 1]} : vector<64x128xf32> to vector<1x128xf32>
    %274 = arith.maximumf %272, %273 : vector<1x128xf32>
    %275 = vector.extract_strided_slice %243 {offsets = [24, 0], sizes = [1, 128], strides = [1, 1]} : vector<64x128xf32> to vector<1x128xf32>
    %276 = vector.extract_strided_slice %243 {offsets = [25, 0], sizes = [1, 128], strides = [1, 1]} : vector<64x128xf32> to vector<1x128xf32>
    %277 = arith.maximumf %275, %276 : vector<1x128xf32>
    %278 = arith.maximumf %274, %277 : vector<1x128xf32>
    %279 = vector.extract_strided_slice %243 {offsets = [18, 0], sizes = [1, 128], strides = [1, 1]} : vector<64x128xf32> to vector<1x128xf32>
    %280 = vector.extract_strided_slice %243 {offsets = [19, 0], sizes = [1, 128], strides = [1, 1]} : vector<64x128xf32> to vector<1x128xf32>
    %281 = arith.maximumf %279, %280 : vector<1x128xf32>
    %282 = vector.extract_strided_slice %243 {offsets = [26, 0], sizes = [1, 128], strides = [1, 1]} : vector<64x128xf32> to vector<1x128xf32>
    %283 = vector.extract_strided_slice %243 {offsets = [27, 0], sizes = [1, 128], strides = [1, 1]} : vector<64x128xf32> to vector<1x128xf32>
    %284 = arith.maximumf %282, %283 : vector<1x128xf32>
    %285 = arith.maximumf %281, %284 : vector<1x128xf32>
    %286 = vector.extract_strided_slice %243 {offsets = [20, 0], sizes = [1, 128], strides = [1, 1]} : vector<64x128xf32> to vector<1x128xf32>
    %287 = vector.extract_strided_slice %243 {offsets = [21, 0], sizes = [1, 128], strides = [1, 1]} : vector<64x128xf32> to vector<1x128xf32>
    %288 = arith.maximumf %286, %287 : vector<1x128xf32>
    %289 = vector.extract_strided_slice %243 {offsets = [28, 0], sizes = [1, 128], strides = [1, 1]} : vector<64x128xf32> to vector<1x128xf32>
    %290 = vector.extract_strided_slice %243 {offsets = [29, 0], sizes = [1, 128], strides = [1, 1]} : vector<64x128xf32> to vector<1x128xf32>
    %291 = arith.maximumf %289, %290 : vector<1x128xf32>
    %292 = arith.maximumf %288, %291 : vector<1x128xf32>
    %293 = vector.extract_strided_slice %243 {offsets = [22, 0], sizes = [1, 128], strides = [1, 1]} : vector<64x128xf32> to vector<1x128xf32>
    %294 = vector.extract_strided_slice %243 {offsets = [23, 0], sizes = [1, 128], strides = [1, 1]} : vector<64x128xf32> to vector<1x128xf32>
    %295 = arith.maximumf %293, %294 : vector<1x128xf32>
    %296 = vector.extract_strided_slice %243 {offsets = [30, 0], sizes = [1, 128], strides = [1, 1]} : vector<64x128xf32> to vector<1x128xf32>
    %297 = vector.extract_strided_slice %243 {offsets = [31, 0], sizes = [1, 128], strides = [1, 1]} : vector<64x128xf32> to vector<1x128xf32>
    %298 = arith.maximumf %296, %297 : vector<1x128xf32>
    %299 = arith.maximumf %295, %298 : vector<1x128xf32>
    %300 = vector.extract_strided_slice %243 {offsets = [32, 0], sizes = [1, 128], strides = [1, 1]} : vector<64x128xf32> to vector<1x128xf32>
    %301 = vector.extract_strided_slice %243 {offsets = [33, 0], sizes = [1, 128], strides = [1, 1]} : vector<64x128xf32> to vector<1x128xf32>
    %302 = arith.maximumf %300, %301 : vector<1x128xf32>
    %303 = vector.extract_strided_slice %243 {offsets = [40, 0], sizes = [1, 128], strides = [1, 1]} : vector<64x128xf32> to vector<1x128xf32>
    %304 = vector.extract_strided_slice %243 {offsets = [41, 0], sizes = [1, 128], strides = [1, 1]} : vector<64x128xf32> to vector<1x128xf32>
    %305 = arith.maximumf %303, %304 : vector<1x128xf32>
    %306 = arith.maximumf %302, %305 : vector<1x128xf32>
    %307 = vector.extract_strided_slice %243 {offsets = [34, 0], sizes = [1, 128], strides = [1, 1]} : vector<64x128xf32> to vector<1x128xf32>
    %308 = vector.extract_strided_slice %243 {offsets = [35, 0], sizes = [1, 128], strides = [1, 1]} : vector<64x128xf32> to vector<1x128xf32>
    %309 = arith.maximumf %307, %308 : vector<1x128xf32>
    %310 = vector.extract_strided_slice %243 {offsets = [42, 0], sizes = [1, 128], strides = [1, 1]} : vector<64x128xf32> to vector<1x128xf32>
    %311 = vector.extract_strided_slice %243 {offsets = [43, 0], sizes = [1, 128], strides = [1, 1]} : vector<64x128xf32> to vector<1x128xf32>
    %312 = arith.maximumf %310, %311 : vector<1x128xf32>
    %313 = arith.maximumf %309, %312 : vector<1x128xf32>
    %314 = vector.extract_strided_slice %243 {offsets = [36, 0], sizes = [1, 128], strides = [1, 1]} : vector<64x128xf32> to vector<1x128xf32>
    %315 = vector.extract_strided_slice %243 {offsets = [37, 0], sizes = [1, 128], strides = [1, 1]} : vector<64x128xf32> to vector<1x128xf32>
    %316 = arith.maximumf %314, %315 : vector<1x128xf32>
    %317 = vector.extract_strided_slice %243 {offsets = [44, 0], sizes = [1, 128], strides = [1, 1]} : vector<64x128xf32> to vector<1x128xf32>
    %318 = vector.extract_strided_slice %243 {offsets = [45, 0], sizes = [1, 128], strides = [1, 1]} : vector<64x128xf32> to vector<1x128xf32>
    %319 = arith.maximumf %317, %318 : vector<1x128xf32>
    %320 = arith.maximumf %316, %319 : vector<1x128xf32>
    %321 = vector.extract_strided_slice %243 {offsets = [38, 0], sizes = [1, 128], strides = [1, 1]} : vector<64x128xf32> to vector<1x128xf32>
    %322 = vector.extract_strided_slice %243 {offsets = [39, 0], sizes = [1, 128], strides = [1, 1]} : vector<64x128xf32> to vector<1x128xf32>
    %323 = arith.maximumf %321, %322 : vector<1x128xf32>
    %324 = vector.extract_strided_slice %243 {offsets = [46, 0], sizes = [1, 128], strides = [1, 1]} : vector<64x128xf32> to vector<1x128xf32>
    %325 = vector.extract_strided_slice %243 {offsets = [47, 0], sizes = [1, 128], strides = [1, 1]} : vector<64x128xf32> to vector<1x128xf32>
    %326 = arith.maximumf %324, %325 : vector<1x128xf32>
    %327 = arith.maximumf %323, %326 : vector<1x128xf32>
    %328 = vector.extract_strided_slice %243 {offsets = [48, 0], sizes = [1, 128], strides = [1, 1]} : vector<64x128xf32> to vector<1x128xf32>
    %329 = vector.extract_strided_slice %243 {offsets = [49, 0], sizes = [1, 128], strides = [1, 1]} : vector<64x128xf32> to vector<1x128xf32>
    %330 = arith.maximumf %328, %329 : vector<1x128xf32>
    %331 = vector.extract_strided_slice %243 {offsets = [56, 0], sizes = [1, 128], strides = [1, 1]} : vector<64x128xf32> to vector<1x128xf32>
    %332 = vector.extract_strided_slice %243 {offsets = [57, 0], sizes = [1, 128], strides = [1, 1]} : vector<64x128xf32> to vector<1x128xf32>
    %333 = arith.maximumf %331, %332 : vector<1x128xf32>
    %334 = arith.maximumf %330, %333 : vector<1x128xf32>
    %335 = vector.extract_strided_slice %243 {offsets = [50, 0], sizes = [1, 128], strides = [1, 1]} : vector<64x128xf32> to vector<1x128xf32>
    %336 = vector.extract_strided_slice %243 {offsets = [51, 0], sizes = [1, 128], strides = [1, 1]} : vector<64x128xf32> to vector<1x128xf32>
    %337 = arith.maximumf %335, %336 : vector<1x128xf32>
    %338 = vector.extract_strided_slice %243 {offsets = [58, 0], sizes = [1, 128], strides = [1, 1]} : vector<64x128xf32> to vector<1x128xf32>
    %339 = vector.extract_strided_slice %243 {offsets = [59, 0], sizes = [1, 128], strides = [1, 1]} : vector<64x128xf32> to vector<1x128xf32>
    %340 = arith.maximumf %338, %339 : vector<1x128xf32>
    %341 = arith.maximumf %337, %340 : vector<1x128xf32>
    %342 = vector.extract_strided_slice %243 {offsets = [52, 0], sizes = [1, 128], strides = [1, 1]} : vector<64x128xf32> to vector<1x128xf32>
    %343 = vector.extract_strided_slice %243 {offsets = [53, 0], sizes = [1, 128], strides = [1, 1]} : vector<64x128xf32> to vector<1x128xf32>
    %344 = arith.maximumf %342, %343 : vector<1x128xf32>
    %345 = vector.extract_strided_slice %243 {offsets = [60, 0], sizes = [1, 128], strides = [1, 1]} : vector<64x128xf32> to vector<1x128xf32>
    %346 = vector.extract_strided_slice %243 {offsets = [61, 0], sizes = [1, 128], strides = [1, 1]} : vector<64x128xf32> to vector<1x128xf32>
    %347 = arith.maximumf %345, %346 : vector<1x128xf32>
    %348 = arith.maximumf %344, %347 : vector<1x128xf32>
    %349 = vector.extract_strided_slice %243 {offsets = [54, 0], sizes = [1, 128], strides = [1, 1]} : vector<64x128xf32> to vector<1x128xf32>
    %350 = vector.extract_strided_slice %243 {offsets = [55, 0], sizes = [1, 128], strides = [1, 1]} : vector<64x128xf32> to vector<1x128xf32>
    %351 = arith.maximumf %349, %350 : vector<1x128xf32>
    %352 = vector.extract_strided_slice %243 {offsets = [62, 0], sizes = [1, 128], strides = [1, 1]} : vector<64x128xf32> to vector<1x128xf32>
    %353 = vector.extract_strided_slice %243 {offsets = [63, 0], sizes = [1, 128], strides = [1, 1]} : vector<64x128xf32> to vector<1x128xf32>
    %354 = arith.maximumf %352, %353 : vector<1x128xf32>
    %355 = arith.maximumf %351, %354 : vector<1x128xf32>
    %356 = tpu.concatenate %250, %257, %264, %271, %278, %285, %292, %299, %306, %313, %320, %327, %334, %341, %348, %355 in 1 : vector<1x128xf32>, vector<1x128xf32>, vector<1x128xf32>, vector<1x128xf32>, vector<1x128xf32>, vector<1x128xf32>, vector<1x128xf32>, vector<1x128xf32>, vector<1x128xf32>, vector<1x128xf32>, vector<1x128xf32>, vector<1x128xf32>, vector<1x128xf32>, vector<1x128xf32>, vector<1x128xf32>, vector<1x128xf32> -> vector<1x2048xf32>
    %c0_10 = arith.constant 0 : index
    %c0_11 = arith.constant 0 : index
    %357 = vector.load %arg5[%c0_10, %c0_11] : memref<1x2048xf32, #tpu.memory_space<vmem>>, vector<1x2048xf32>
    %358 = arith.addf %356, %357 : vector<1x2048xf32>
    %cst_12 = arith.constant 0.000000e+00 : f32
    %359 = vector.broadcast %cst_12 : f32 to vector<1x2048xf32>
    %360 = arith.maximumf %358, %359 : vector<1x2048xf32>
    %361 = arith.truncf %360 : vector<1x2048xf32> to vector<1x2048xbf16>
    %c0_13 = arith.constant 0 : index
    %c0_14 = arith.constant 0 : index
    %362 = vector.load %arg6[%c0_13, %c0_14] : memref<2048x128xbf16, #tpu.memory_space<vmem>>, vector<2048x128xbf16>
    %cst_15 = arith.constant dense<0.000000e+00> : vector<1x128xf32>
    %363 = tpu.matmul %361, %362, %cst_15 {dimension_numbers = #tpu.dot_dimension_numbers<[1], [0], [0], [1], [0, 0, 1, 1], [], []>} : vector<1x2048xbf16>, vector<2048x128xbf16>, vector<1x128xf32> -> vector<1x128xf32>
    %c0_16 = arith.constant 0 : index
    %c0_17 = arith.constant 0 : index
    %364 = vector.load %arg7[%c0_16, %c0_17] : memref<1x128xf32, #tpu.memory_space<vmem>>, vector<1x128xf32>
    %365 = arith.addf %363, %364 : vector<1x128xf32>
    %cst_18 = arith.constant 0.000000e+00 : f32
    %366 = vector.broadcast %cst_18 : f32 to vector<1x128xf32>
    %367 = arith.maximumf %365, %366 : vector<1x128xf32>
    %368 = arith.truncf %367 : vector<1x128xf32> to vector<1x128xbf16>
    %c0_19 = arith.constant 0 : index
    %c0_20 = arith.constant 0 : index
    %369 = vector.load %arg8[%c0_19, %c0_20] : memref<128x128xbf16, #tpu.memory_space<vmem>>, vector<128x128xbf16>
    %cst_21 = arith.constant dense<0.000000e+00> : vector<1x128xf32>
    %370 = tpu.matmul %368, %369, %cst_21 {dimension_numbers = #tpu.dot_dimension_numbers<[1], [0], [0], [1], [0, 0, 1, 1], [], []>} : vector<1x128xbf16>, vector<128x128xbf16>, vector<1x128xf32> -> vector<1x128xf32>
    %c0_22 = arith.constant 0 : index
    %c0_23 = arith.constant 0 : index
    %371 = vector.load %arg9[%c0_22, %c0_23] : memref<1x128xf32, #tpu.memory_space<vmem>>, vector<1x128xf32>
    %372 = arith.addf %370, %371 : vector<1x128xf32>
    %373 = tpu.iota {dimensions = array<i32: 1>} : vector<1x128xi32>
    %c10_i32 = arith.constant 10 : i32
    %374 = vector.broadcast %c10_i32 : i32 to vector<1x128xi32>
    %375 = arith.cmpi slt, %373, %374 : vector<1x128xi32>
    %cst_24 = arith.constant -1.000000e+30 : f32
    %376 = vector.broadcast %cst_24 : f32 to vector<1x128xf32>
    %377 = arith.select %375, %372, %376 : vector<1x128xi1>, vector<1x128xf32>
    %cst_25 = arith.constant dense<0xFF800000> : vector<1xf32>
    %378 = vector.multi_reduction <maximumf>, %377, %cst_25 [1] : vector<1x128xf32> to vector<1xf32>
    %379 = vector.shape_cast %378 : vector<1xf32> to vector<1x1xf32>
    %380 = vector.broadcast %379 : vector<1x1xf32> to vector<1x128xf32>
    %381 = arith.subf %377, %380 : vector<1x128xf32>
    %382 = math.exp %381 : vector<1x128xf32>
    %cst_26 = arith.constant dense<0.000000e+00> : vector<1xf32>
    %383 = vector.multi_reduction <add>, %382, %cst_26 [1] : vector<1x128xf32> to vector<1xf32>
    %384 = vector.shape_cast %383 : vector<1xf32> to vector<1x1xf32>
    %385 = math.log %384 : vector<1x1xf32>
    %386 = vector.broadcast %385 : vector<1x1xf32> to vector<1x128xf32>
    %387 = arith.subf %381, %386 : vector<1x128xf32>
    %c0_27 = arith.constant 0 : index
    %c0_28 = arith.constant 0 : index
    %c0_29 = arith.constant 0 : index
    %388 = vector.load %arg10[%c0_27, %c0_28, %c0_29] : memref<1x1x128xf32, #tpu.memory_space<vmem>>, vector<1x1x128xf32>
    %389 = vector.shape_cast %388 : vector<1x1x128xf32> to vector<1x128xf32>
    %390 = vector.shape_cast %387 : vector<1x128xf32> to vector<1x1x128xf32>
    tpu.vector_store %arg10[%c0_27, %c0_28, %c0_29], %390 {strides = array<i32>} : memref<1x1x128xf32, #tpu.memory_space<vmem>>, vector<1x1x128xf32>,
    return
  }
  func.func @transform_0(%arg0: i32) -> (i32, i32, i32) {
    %c0_i32 = arith.constant 0 : i32
    %c0_i32_0 = arith.constant 0 : i32
    %c0_i32_1 = arith.constant 0 : i32
    return %arg0, %c0_i32, %c0_i32_0 : i32, i32, i32
  }
  func.func @transform_1(%arg0: i32) -> (i32, i32) {
    %c0_i32 = arith.constant 0 : i32
    %c0_i32_0 = arith.constant 0 : i32
    %c0_i32_1 = arith.constant 0 : i32
    return %c0_i32, %c0_i32_0 : i32, i32
  }
  func.func @transform_2(%arg0: i32) -> (i32, i32) {
    %c0_i32 = arith.constant 0 : i32
    %c0_i32_0 = arith.constant 0 : i32
    %c0_i32_1 = arith.constant 0 : i32
    return %c0_i32, %c0_i32_0 : i32, i32
  }
  func.func @transform_3(%arg0: i32) -> (i32, i32) {
    %c0_i32 = arith.constant 0 : i32
    %c0_i32_0 = arith.constant 0 : i32
    %c0_i32_1 = arith.constant 0 : i32
    return %c0_i32, %c0_i32_0 : i32, i32
  }
  func.func @transform_4(%arg0: i32) -> (i32, i32) {
    %c0_i32 = arith.constant 0 : i32
    %c0_i32_0 = arith.constant 0 : i32
    %c0_i32_1 = arith.constant 0 : i32
    return %c0_i32, %c0_i32_0 : i32, i32
  }
  func.func @transform_5(%arg0: i32) -> (i32, i32) {
    %c0_i32 = arith.constant 0 : i32
    %c0_i32_0 = arith.constant 0 : i32
    %c0_i32_1 = arith.constant 0 : i32
    return %c0_i32, %c0_i32_0 : i32, i32
  }
  func.func @transform_6(%arg0: i32) -> (i32, i32) {
    %c0_i32 = arith.constant 0 : i32
    %c0_i32_0 = arith.constant 0 : i32
    %c0_i32_1 = arith.constant 0 : i32
    return %c0_i32, %c0_i32_0 : i32, i32
  }
  func.func @transform_7(%arg0: i32) -> (i32, i32) {
    %c0_i32 = arith.constant 0 : i32
    %c0_i32_0 = arith.constant 0 : i32
    %c0_i32_1 = arith.constant 0 : i32
    return %c0_i32, %c0_i32_0 : i32, i32
  }
  func.func @transform_8(%arg0: i32) -> (i32, i32) {
    %c0_i32 = arith.constant 0 : i32
    %c0_i32_0 = arith.constant 0 : i32
    %c0_i32_1 = arith.constant 0 : i32
    return %c0_i32, %c0_i32_0 : i32, i32
  }
  func.func @transform_9(%arg0: i32) -> (i32, i32, i32) {
    %c0_i32 = arith.constant 0 : i32
    %c0_i32_0 = arith.constant 0 : i32
    %c0_i32_1 = arith.constant 0 : i32
    return %arg0, %c0_i32, %c0_i32_0 : i32, i32, i32
  }
}

</mosaic_0001>

<bundles_post_ra>
// kernel: cnn_fashion_mnist_forward.1
= control target key start
LH: loop header
LB: loop body
LE: loop exit
PB: predicated region body
PF: predicated region fallthrough
CT: control target
= control target key end

     0   :  { %14 = vsyncpa [#allocation3], 0  ;;  %s10533_s0 = inlined_call_operand.vmem [shape: bf16[2,768,25], index: 0, kind: input, shape index: {}]   ;;  %s10534_s1 = inlined_call_operand.vmem [shape: bf16[25,128], index: 1, kind: input, shape index: {}]   ;;  %s10535_s2 = inlined_call_operand.vmem [shape: f32[1,128], index: 2, kind: input, shape index: {}]   ;;  %s10536_s3 = inlined_call_operand.vmem [shape: bf16[3200,128], index: 3, kind: input, shape index: {}]   ;;  %s10537_s4 = inlined_call_operand.vmem [shape: f32[1,2048], index: 4, kind: input, shape index: {}]   ;;  %s10538_s5 = inlined_call_operand.vmem [shape: bf16[2048,128], index: 5, kind: input, shape index: {}]   ;;  %s10539_s6 = inlined_call_operand.vmem [shape: f32[1,128], index: 6, kind: input, shape index: {}]   ;;  %s10540_s7 = inlined_call_operand.vmem [shape: bf16[128,128], index: 7, kind: input, shape index: {}]   ;;  %s10541_s8 = inlined_call_operand.vmem [shape: f32[1,128], index: 8, kind: input, shape index: {}]   ;;  %s10542_s9 = inlined_call_operand.hbm [shape: f32[2,1,128], index: 9, kind: output, shape index: {}]  }
   0x1   :  { %16 = vsyncpa [#allocation3 + $0x1], 0  ;;  %s7850_s30 = smov 0   ;;  %s7852_s10 = smov 0  }
   0x2   :  { %s7854_s11 = smov 0   ;;  %s7856_s12 = smov 0  }
   0x3 LB: > { %s7871_s13 = sadd.s32 4294967295, %s7794_s12   ;;  %s5979_s14 = sadd.s32 4294967294, %s7794_s12   ;;  %s7794_s12 = sphi %s7856_s12, %s10865_s12   ;;  %s7790_s11 = sphi %s7854_s11, %s10864_s11   ;;  %s7786_s10 = sphi %s7852_s10, %s10863_s10   ;;  %s7782_s30 = sphi %s7850_s30, %s10862_s30  }
   0x4   : > { %s7875_s15 = sadd.s32 1, %s7794_s12   ;;  %s223_s16 = sadd.s32 1, %s7790_s11 }
   0x5   : > { %s220_s17 = ssub.s32 %s7794_s12, %s7875_s15  ;;  %p233_p0 = scmp.ne.s32.totalorder %s7790_s11, %s7786_s10 }
   0x6   : > { %p221_p1 = scmp.eq.s32.totalorder %s220_s17, 0  ;;  %p234_p2 = scmp.eq.s32.totalorder %s7871_s13, 1 }
   0x7   : > { %p239_p3 = scmp.ne.s32.totalorder %s7786_s10, %s7782_s30  ;;  %p240_p4 = scmp.eq.s32.totalorder %s5979_s14, 1 }
   0x8   : > { %s7886_s18 = scalar_select %p221_p1, %s7790_s11, %s223_s16  }
   0x9   : > { %p7888_p5 = por %p234_p2, %p233_p0  ;;  %p7892_p6 = por %p240_p4, %p239_p3 }
   0xa   : > { %p5982_p7 = scmp.ge.s32.totalorder %s7794_s12, 1  ;;  %p290_p8 = scmp.lt.s32.totalorder %s7794_s12, 3 }
   0xc   : > { %p291_p9 = pnand %p5982_p7, %p290_p8 }
   0xe   : > { %294 = sbr.rel (%p291_p9) target bundleno = 1709 (0x6ad), region = 56 }
  0x13   : > { %v7344_v0 = vld [vmem:[%s10534_s1 + $0x8] sm:$0x1f]   ;;  %vm827_vm0 = vcmask 1043456   ;;  %vm828_vm1 = vcmask 1044480   ;;  %v7796_v1 = vmov 65535   ;;  %p325_p10 = scmp.lt.s32.totalorder %s7871_s13, 1 }
  0x14   : > { %v829_v2 = vsel %vm827_vm0, 4294967295, %v7796_v1  ;;  %v7345_v5 = vld [vmem:[%s10534_s1] sm:$0xff]   ;;  %vm682_vm2 = vcmask 203776   ;;  %v7394_v56 = vld [vmem:[%s10536_s3 + $0x78] sm:$0xff]   ;;  %v7396_v60 = vld [vmem:[%s10536_s3 + $0x70] sm:$0xff]   ;;  %vm1380_vm3 = vcmask 1046528  }
  0x15   : > { %v830_v3 = vsel %vm828_vm1, %v829_v2, 0  ;;  %s326_s25 = scalar_select %p325_p10, %s7871_s13, 1  ;;  %v7395_v58 = vld [vmem:[%s10536_s3 + $0x38] sm:$0xff]   ;;  %6480 = vmatprep.subr.bf16.mxu1 %v7394_v56  ;;  %v7398_v63 = vld [vmem:[%s10536_s3 + $0x30] sm:$0xff]   ;;  %v7400_v2 = vld [vmem:[%s10536_s3 + $0x68] sm:$0xff]   ;;  %vm1385_vm4 = vcmask 1045504  }
  0x16   : > { %v832_v4 = vand.u32 %v7344_v0, %v830_v3  ;;  %6481 = vmatpush3.bf16.msra.mxu1 %v7395_v58  ;;  %v7397_v62 = vld [vmem:[%s10536_s3 + $0x378] sm:$0xff]   ;;  %vm7798_vm5 = vmmov 0   ;;  %vm5897_vm7 = vcmask 1040384   ;;  %s323_s28 = sand.u32 1, %s7786_s10  }
  0x17   : > { %s7301_s26 = smul.u32 384, %s326_s25  ;;  %v7399_v0 = vld [vmem:[%s10536_s3 + $0x338] sm:$0xff]   ;;  %6482 = vmatprep.subr.bf16.mxu1 %v7396_v60  ;;  %s324_s14 = scalar_lea.vmem [#allocation2], %s323_s28 }
  0x18   : > { %7157 = vmatprep.subr.bf16.mxu0 %v832_v4  ;;  %s5924_s16 = sshll.u32 %s324_s14, 4  ;;  %s5912_s23 = scalar_lea.sflag [#allocation3], %s323_s28  ;;  %s5925_s16 = int_to_ptr.vmem [resolvable:$true] %s5924_s16 }
  0x19   : > { %7158 = vmatpush3.bf16.msra.mxu0 %v832_v4  ;;  %s7911_s29 = scalar_lea.vmem %s10533_s0, %s7301_s26  ;;  %v7401_v4 = vld [vmem:[%s10536_s3 + $0x28] sm:$0xff]   ;;  %s7734_s24 = scalar_lea.vmem %s5925_s16, 16 }
  0x1a   : > { %7159 = vmatprep.subr.bf16.mxu0 %v7345_v5  ;;  %v7346_v6 = vld [vmem:[%s7911_s29] sm:$0xff]   ;;  %v7347_v7 = vld [vmem:[%s7911_s29 + $0x8] sm:$0xff]   ;;  %v7348_v8 = vld [vmem:[%s7911_s29 + $0x10] sm:$0xff]   ;;  %6483 = vmatpush3.bf16.msra.mxu1 %v7398_v63  ;;  %p7735_p11 = scmp.ne.s32.totalorder %s5925_s16, %s7734_s24  ;;  %s7799_s25 = smov [#allocation2]  }
  0x1b   : > { %7161 = vmatprep.mubr.msk.bf16.mxu0 %vm682_vm2, %v7346_v6  ;;  %v7349_v9 = vld [vmem:[%s7911_s29 + $0x18] sm:$0xff]   ;;  %v7350_v10 = vld [vmem:[%s7911_s29 + $0x20] sm:$0xff]   ;;  %v7351_v11 = vld [vmem:[%s7911_s29 + $0x28] sm:$0xff]   ;;  %6484 = vmatprep.subr.bf16.mxu1 %v7400_v2  ;;  %s7738_s26 = sshll.u32 %s7799_s25, 4  ;;  %s7739_s26 = int_to_ptr.vmem [resolvable:$false] %s7738_s26 }
  0x1c   : > { %v7352_v12 = vld [vmem:[%s7911_s29 + $0x30] sm:$0xff]   ;;  %v7353_v13 = vld [vmem:[%s7911_s29 + $0x38] sm:$0xff]   ;;  %v7354_v14 = vld [vmem:[%s7911_s29 + $0x40] sm:$0xff]   ;;  %p7736_p12 = pnand %p7735_p11, %p7888_p5  ;;  %p7741_p0 = scmp.lt.s32.totalorder %s5925_s16, %s7739_s26 }
  0x1d   : > { %7160 = vmatpush3.bf16.msra.mxu0 %v7345_v5  ;;  %v7355_v15 = vld [vmem:[%s7911_s29 + $0x48] sm:$0xff]   ;;  %v7356_v16 = vld [vmem:[%s7911_s29 + $0x50] sm:$0xff]   ;;  %v7357_v17 = vld [vmem:[%s7911_s29 + $0x58] sm:$0xff]  }
  0x1e   : > { %v7358_v18 = vld [vmem:[%s7911_s29 + $0x60] sm:$0xff]   ;;  %v7359_v19 = vld [vmem:[%s7911_s29 + $0x68] sm:$0xff]   ;;  %v7360_v20 = vld [vmem:[%s7911_s29 + $0x70] sm:$0xff]   ;;  %6720 = vmatprep.subr.bf16.mxu0 %v7397_v62  ;;  %6485 = vmatpush3.bf16.msra.mxu1 %v7401_v4  ;;  %p7737_p13 = pneg %p7736_p12 }
  0x1f   : > { %v7361_v21 = vld [vmem:[%s7911_s29 + $0x78] sm:$0xff]   ;;  %v7362_v22 = vld [vmem:[%s7911_s29 + $0x80] sm:$0xff]   ;;  %v7363_v23 = vld [vmem:[%s7911_s29 + $0x88] sm:$0xff]  }
  0x20   : > { %7162 = vmatmul.mubr.msk.bf16.vlgmr.msra.gmra.mxu0 %vm682_vm2, %v7347_v7  ;;  %v7364_v24 = vld [vmem:[%s7911_s29 + $0x90] sm:$0xff]   ;;  %v7365_v25 = vld [vmem:[%s7911_s29 + $0x98] sm:$0xff]   ;;  %v7366_v26 = vld [vmem:[%s7911_s29 + $0xa0] sm:$0xff]  }
  0x21   : > { %7165 = vmatprep.mubr.msk.bf16.mxu0 %vm682_vm2, %v7348_v8  ;;  %v7367_v27 = vld [vmem:[%s7911_s29 + $0xa8] sm:$0xff]   ;;  %v7368_v28 = vld [vmem:[%s7911_s29 + $0xb0] sm:$0xff]   ;;  %v7369_v29 = vld [vmem:[%s7911_s29 + $0xb8] sm:$0xff]   ;;  %6721 = vmatpush3.bf16.msra.mxu0 %v7399_v0 }
  0x22   : > { %v7370_v30 = vld [vmem:[%s7911_s29 + $0xc0] sm:$0xff]   ;;  %v7371_v31 = vld [vmem:[%s7911_s29 + $0xc8] sm:$0xff]   ;;  %v7372_v32 = vld [vmem:[%s7911_s29 + $0xd0] sm:$0xff]  }
  0x23   : > { %v7373_v33 = vld [vmem:[%s7911_s29 + $0xd8] sm:$0xff]   ;;  %v7374_v34 = vld [vmem:[%s7911_s29 + $0xe0] sm:$0xff]   ;;  %v7375_v35 = vld [vmem:[%s7911_s29 + $0xe8] sm:$0xff]  }
  0x24   : > { %v7376_v36 = vld [vmem:[%s7911_s29 + $0xf0] sm:$0xff]   ;;  %v7377_v37 = vld [vmem:[%s7911_s29 + $0xf8] sm:$0xff]   ;;  %v7378_v38 = vld [vmem:[%s7911_s29 + $0x100] sm:$0xff]  }
  0x25   : > { %v7379_v39 = vld [vmem:[%s7911_s29 + $0x108] sm:$0xff]   ;;  %v7380_v40 = vld [vmem:[%s7911_s29 + $0x110] sm:$0xff]   ;;  %v7381_v41 = vld [vmem:[%s7911_s29 + $0x118] sm:$0xff]  }
  0x26   : > { %v7382_v42 = vld [vmem:[%s7911_s29 + $0x120] sm:$0xff]   ;;  %v7383_v43 = vld [vmem:[%s7911_s29 + $0x128] sm:$0xff]   ;;  %v7384_v44 = vld [vmem:[%s7911_s29 + $0x130] sm:$0xff]  }
  0x27   : > { %v7385_v45 = vld [vmem:[%s7911_s29 + $0x138] sm:$0xff]   ;;  %v7386_v46 = vld [vmem:[%s7911_s29 + $0x140] sm:$0xff]   ;;  %v7387_v47 = vld [vmem:[%s7911_s29 + $0x148] sm:$0xff]  }
  0x28   : > { %7166 = vmatmul.mubr.msk.bf16.gmra.mxu0 %vm682_vm2, %v7349_v9  ;;  %v7388_v48 = vld [vmem:[%s7911_s29 + $0x150] sm:$0xff]   ;;  %v7389_v49 = vld [vmem:[%s7911_s29 + $0x158] sm:$0xff]   ;;  %v7390_v50 = vld [vmem:[%s7911_s29 + $0x160] sm:$0xff]  }
  0x29   : > { %7169 = vmatprep.mubr.msk.bf16.mxu0 %vm682_vm2, %v7350_v10  ;;  %v7391_v51 = vld [vmem:[%s7911_s29 + $0x168] sm:$0xff]   ;;  %v7392_v52 = vld [vmem:[%s7911_s29 + $0x170] sm:$0xff]   ;;  %v7393_v53 = vld [vmem:[%s7911_s29 + $0x178] sm:$0xff]   ;;  %s6427_s29 = sshll.u32 %s7871_s13, 4  ;;  %s7740_s13 = scalar_lea.vmem %s7739_s26, 32 }
  0x2a   : > { %v7402_v6 = vld [vmem:[%s10536_s3 + $0x60] sm:$0xff]   ;;  %v7404_v7 = vld [vmem:[%s10536_s3 + $0x370] sm:$0xff]   ;;  %s5922_s22 = scalar_lea.hbm %s10542_s9, %s6427_s29  ;;  %p7742_p1 = scmp.lt.s32.totalorder %s7740_s13, %s7734_s24 }
  0x2b   : > { %v7403_v9 = vld [vmem:[%s10536_s3 + $0x20] sm:$0xff]   ;;  %v7405_v10 = vld [vmem:[%s10536_s3 + $0x330] sm:$0xff]   ;;  %6486 = vmatprep.subr.bf16.mxu1 %v7402_v6  ;;  %6722 = vmatprep.subr.bf16.mxu0 %v7404_v7 }
  0x2c   : > { %6487 = vmatpush3.bf16.msra.mxu1 %v7403_v9  ;;  %6723 = vmatpush3.bf16.msra.mxu0 %v7405_v10  ;;  %p7743_p2 = por %p7742_p1, %p7741_p0 }
  0x2e   : > { %p7744_p3 = pnand %p7743_p2, %p7737_p13 }
  0x30   : > { %7170 = vmatmul.mubr.msk.bf16.gmra.mxu0 %vm682_vm2, %v7351_v11 }
  0x31   : > { %7173 = vmatprep.mubr.msk.bf16.mxu0 %vm682_vm2, %v7352_v12  ;;  %v7406_v12 = vld [vmem:[%s10536_s3 + $0x58] sm:$0xff]  }
  0x32   : > { %6488 = vmatprep.subr.bf16.mxu1 %v7406_v12 }
  0x38   : > { %7174 = vmatmul.mubr.msk.bf16.gmra.mxu0 %vm682_vm2, %v7353_v13  ;;  %v7408_v13 = vld [vmem:[%s10536_s3 + $0x368] sm:$0xff]  }
  0x39   : > { %7177 = vmatprep.mubr.msk.bf16.mxu0 %vm682_vm2, %v7354_v14  ;;  %6724 = vmatprep.subr.bf16.mxu0 %v7408_v13 }
  0x40   : > { %7178 = vmatmul.mubr.msk.bf16.gmra.mxu0 %vm682_vm2, %v7355_v15  ;;  %v7407_v15 = vld [vmem:[%s10536_s3 + $0x18] sm:$0xff]  }
  0x41   : > { %7181 = vmatprep.mubr.msk.bf16.mxu0 %vm682_vm2, %v7356_v16  ;;  %v7409_v16 = vld [vmem:[%s10536_s3 + $0x328] sm:$0xff]   ;;  %6489 = vmatpush3.bf16.msra.mxu1 %v7407_v15 }
  0x42   : > { %6725 = vmatpush3.bf16.msra.mxu0 %v7409_v16 }
  0x48   : > { %7182 = vmatmul.mubr.msk.bf16.gmra.mxu0 %vm682_vm2, %v7357_v17 }
  0x49   : > { %7185 = vmatprep.mubr.msk.bf16.mxu0 %vm682_vm2, %v7358_v18  ;;  %v7410_v18 = vld [vmem:[%s10536_s3 + $0x50] sm:$0xff]  }
  0x4a   : > { %6490 = vmatprep.subr.bf16.mxu1 %v7410_v18 }
  0x50   : > { %7186 = vmatmul.mubr.msk.bf16.gmra.mxu0 %vm682_vm2, %v7359_v19  ;;  %v7412_v19 = vld [vmem:[%s10536_s3 + $0x360] sm:$0xff]  }
  0x51   : > { %7189 = vmatprep.mubr.msk.bf16.mxu0 %vm682_vm2, %v7360_v20  ;;  %6726 = vmatprep.subr.bf16.mxu0 %v7412_v19 }
  0x58   : > { %7190 = vmatmul.mubr.msk.bf16.gmra.mxu0 %vm682_vm2, %v7361_v21  ;;  %v7411_v21 = vld [vmem:[%s10536_s3 + $0x10] sm:$0xff]  }
  0x59   : > { %7193 = vmatprep.mubr.msk.bf16.mxu0 %vm682_vm2, %v7362_v22  ;;  %v7413_v22 = vld [vmem:[%s10536_s3 + $0x320] sm:$0xff]   ;;  %6491 = vmatpush3.bf16.msra.mxu1 %v7411_v21 }
  0x5a   : > { %6727 = vmatpush3.bf16.msra.mxu0 %v7413_v22 }
  0x60   : > { %7194 = vmatmul.mubr.msk.bf16.gmra.mxu0 %vm682_vm2, %v7363_v23 }
  0x61   : > { %7197 = vmatprep.mubr.msk.bf16.mxu0 %vm682_vm2, %v7364_v24 }
  0x68   : > { %7198 = vmatmul.mubr.msk.bf16.gmra.mxu0 %vm682_vm2, %v7365_v25  ;;  %v7414_v25 = vld [vmem:[%s10536_s3 + $0x48] sm:$0xff]  }
  0x69   : > { %7201 = vmatprep.mubr.msk.bf16.mxu0 %vm682_vm2, %v7366_v26  ;;  %v7416_v26 = vld [vmem:[%s10536_s3 + $0x358] sm:$0xff]   ;;  %6492 = vmatprep.subr.bf16.mxu1 %v7414_v25 }
  0x6a   : > { %6728 = vmatprep.subr.bf16.mxu0 %v7416_v26 }
  0x70   : > { %7202 = vmatmul.mubr.msk.bf16.gmra.mxu0 %vm682_vm2, %v7367_v27  ;;  %v7415_v27 = vld [vmem:[%s10536_s3 + $0x8] sm:$0xff]  }
  0x71   : > { %7205 = vmatprep.mubr.msk.bf16.mxu0 %vm682_vm2, %v7368_v28  ;;  %v7417_v28 = vld [vmem:[%s10536_s3 + $0x318] sm:$0xff]   ;;  %6493 = vmatpush3.bf16.msra.mxu1 %v7415_v27 }
  0x72   : > { %6729 = vmatpush3.bf16.msra.mxu0 %v7417_v28 }
  0x78   : > { %7206 = vmatmul.mubr.msk.bf16.gmra.mxu0 %vm682_vm2, %v7369_v29 }
  0x79   : > { %7209 = vmatprep.mubr.msk.bf16.mxu0 %vm682_vm2, %v7370_v30 }
  0x80   : > { %7210 = vmatmul.mubr.msk.bf16.gmra.mxu0 %vm682_vm2, %v7371_v31  ;;  %v7418_v31 = vld [vmem:[%s10536_s3 + $0x40] sm:$0xff]  }
  0x81   : > { %7213 = vmatprep.mubr.msk.bf16.mxu0 %vm682_vm2, %v7372_v32  ;;  %v7420_v32 = vld [vmem:[%s10536_s3 + $0x350] sm:$0xff]   ;;  %6494 = vmatprep.subr.bf16.mxu1 %v7418_v31 }
  0x82   : > { %6730 = vmatprep.subr.bf16.mxu0 %v7420_v32 }
  0x88   : > { %7214 = vmatmul.mubr.msk.bf16.gmra.mxu0 %vm682_vm2, %v7373_v33  ;;  %v7419_v33 = vld [vmem:[%s10536_s3] sm:$0xff]  }
  0x89   : > { %7217 = vmatprep.mubr.msk.bf16.mxu0 %vm682_vm2, %v7374_v34  ;;  %v7421_v34 = vld [vmem:[%s10536_s3 + $0x310] sm:$0xff]   ;;  %6495 = vmatpush3.bf16.msra.mxu1 %v7419_v33 }
  0x8a   : > { %6731 = vmatpush3.bf16.msra.mxu0 %v7421_v34 }
  0x90   : > { %7218 = vmatmul.mubr.msk.bf16.gmra.mxu0 %vm682_vm2, %v7375_v35 }
  0x91   : > { %7221 = vmatprep.mubr.msk.bf16.mxu0 %vm682_vm2, %v7376_v36 }
  0x98   : > { %7222 = vmatmul.mubr.msk.bf16.gmra.mxu0 %vm682_vm2, %v7377_v37  ;;  %v7422_v37 = vld [vmem:[%s10536_s3 + $0xf8] sm:$0xff]  }
  0x99   : > { %7225 = vmatprep.mubr.msk.bf16.mxu0 %vm682_vm2, %v7378_v38  ;;  %v7424_v38 = vld [vmem:[%s10536_s3 + $0x348] sm:$0xff]   ;;  %6520 = vmatprep.subr.bf16.mxu1 %v7422_v37 }
  0x9a   : > { %6732 = vmatprep.subr.bf16.mxu0 %v7424_v38 }
  0xa0   : > { %7226 = vmatmul.mubr.msk.bf16.gmra.mxu0 %vm682_vm2, %v7379_v39  ;;  %v7425_v39 = vld [vmem:[%s10536_s3 + $0x308] sm:$0xff]  }
  0xa1   : > { %7229 = vmatprep.mubr.msk.bf16.mxu0 %vm682_vm2, %v7380_v40  ;;  %6733 = vmatpush3.bf16.msra.mxu0 %v7425_v39 }
  0xa8   : > { %7230 = vmatmul.mubr.msk.bf16.gmra.mxu0 %vm682_vm2, %v7381_v41 }
  0xa9   : > { %7233 = vmatprep.mubr.msk.bf16.mxu0 %vm682_vm2, %v7382_v42  ;;  %v7428_v42 = vld [vmem:[%s10536_s3 + $0x340] sm:$0xff]  }
  0xaa   : > { %6734 = vmatprep.subr.bf16.mxu0 %v7428_v42 }
  0xb0   : > { %7234 = vmatmul.mubr.msk.bf16.gmra.mxu0 %vm682_vm2, %v7383_v43  ;;  %v7429_v43 = vld [vmem:[%s10536_s3 + $0x300] sm:$0xff]  }
  0xb1   : > { %7237 = vmatprep.mubr.msk.bf16.mxu0 %vm682_vm2, %v7384_v44  ;;  %6735 = vmatpush3.bf16.msra.mxu0 %v7429_v43 }
  0xb8   : > { %7238 = vmatmul.mubr.msk.bf16.gmra.mxu0 %vm682_vm2, %v7385_v45 }
  0xb9   : > { %7241 = vmatprep.mubr.msk.bf16.mxu0 %vm682_vm2, %v7386_v46 }
  0xc0   : > { %7242 = vmatmul.mubr.msk.bf16.gmra.mxu0 %vm682_vm2, %v7387_v47 }
  0xc1   : > { %7245 = vmatprep.mubr.msk.bf16.mxu0 %vm682_vm2, %v7388_v48 }
  0xc8   : > { %7246 = vmatmul.mubr.msk.bf16.gmra.mxu0 %vm682_vm2, %v7389_v49 }
  0xc9   : > { %7249 = vmatprep.mubr.msk.bf16.mxu0 %vm682_vm2, %v7390_v50  ;;  %v7432_v50 = vld [vmem:[%s10536_s3 + $0x478] sm:$0xff]  }
  0xca   : > { %6800 = vmatprep.subr.bf16.mxu0 %v7432_v50 }
  0xd0   : > { %7250 = vmatmul.mubr.msk.bf16.gmra.mxu0 %vm682_vm2, %v7391_v51 }
  0xd1   : > { %7253 = vmatprep.mubr.msk.bf16.mxu0 %vm682_vm2, %v7392_v52 }
  0xd8   : > { %7254 = vmatmul.mubr.msk.bf16.gmra.mxu0 %vm682_vm2, %v7393_v53 }
  0xe0   : > { %v8009_v54 = vpop.f32.mrf.mxu0 }
  0xe2   : > { %v8011_v55 = vpop.f32.mrf.mxu0 }
  0xe4   : > { %v8016_v57 = vpop.f32.mrf.mxu0 }
  0xe6   : > { %v8021_v59 = vpop.f32.mrf.mxu0 }
  0xe8   : > { %v8026_v61 = vpop.f32.mrf.mxu0 }
  0xea   : > { %v8037_v1 = vpop.f32.mrf.mxu0 }
  0xec   : > { %v8042_v3 = vpop.f32.mrf.mxu0 }
  0xee   : > { %v8047_v5 = vpop.f32.mrf.mxu0 }
  0xf0   : > { %v8055_v8 = vpop.f32.mrf.mxu0 }
  0xf2   : > { %v8063_v11 = vpop.f32.mrf.mxu0 }
  0xf4   : > { %v8071_v14 = vpop.f32.mrf.mxu0 }
  0xf6   : > { %v8079_v17 = vpop.f32.mrf.mxu0 }
  0xf8   : > { %v8087_v20 = vpop.f32.mrf.mxu0 }
  0xfa   : > { %v8095_v23 = vpop.f32.mrf.mxu0 }
  0xfc   : > { %v8097_v24 = vpop.f32.mrf.mxu0 }
  0xfe   : > { %v8111_v29 = vpop.f32.mrf.mxu0 }
 0x100   : > { %v8113_v30 = vpop.f32.mrf.mxu0 }
 0x101   : > { %10620 = vst [vmem:[#allocation5_spill] sm:$0xff] %v8113_v30 }
 0x102   : > { %v8127_v35 = vpop.f32.mrf.mxu0 }
 0x103   : > { %10621 = vst [vmem:[#allocation6_spill] sm:$0xff] %v8127_v35 }
 0x104   : > { %v8129_v36 = vpop.f32.mrf.mxu0 }
 0x105   : > { %10622 = vst [vmem:[#allocation7_spill] sm:$0xff] %v8129_v36 }
 0x106   : > { %v8140_v40 = vpop.f32.mrf.mxu0 }
 0x108   : > { %v8142_v41 = vpop.f32.mrf.mxu0 }
 0x109   : > { %10623 = vst [vmem:[#allocation8_spill] sm:$0xff] %v8142_v41 }
 0x10a   : > { %v8150_v44 = vpop.f32.mrf.mxu0 }
 0x10b   : > { %10624 = vst [vmem:[#allocation9_spill] sm:$0xff] %v8150_v44 }
 0x10c   : > { %v8152_v45 = vpop.f32.mrf.mxu0 }
 0x10d   : > { %10625 = vst [vmem:[#allocation10_spill] sm:$0xff] %v8152_v45 }
 0x10e   : > { %v8154_v46 = vpop.f32.mrf.mxu0 }
 0x110   : > { %v8156_v47 = vpop.f32.mrf.mxu0 }
 0x112   : > { %v8160_v49 = vpop.f32.mrf.mxu0 }
 0x114   : > { %v8167_v52 = vpop.f32.mrf.mxu0 }
 0x116   : > { %v8171_v56 = vpop.f32.mrf.mxu0 }
 0x118   : > { %v8173_v58 = vpop.f32.mrf.mxu0 }
 0x11a   : > { %v8177_v62 = vpop.f32.mrf.mxu0 }
 0x11c   : > { %v8181_v0 = vpop.f32.mrf.mxu0 }
 0x11e   : > { %v8185_v4 = vpop.f32.mrf.mxu0 }
 0x120   : > { %v8187_v6 = vpop.f32.mrf.mxu0 }
 0x122   : > { %v8191_v9 = vpop.f32.mrf.mxu0 }
 0x124   : > { %v8195_v12 = vpop.f32.mrf.mxu0 }
 0x126   : > { %v8199_v15 = vpop.f32.mrf.mxu0 }
 0x128   : > { %v8201_v16 = vpop.f32.mrf.mxu0 }
 0x12a   : > { %v8205_v19 = vpop.f32.mrf.mxu0 }
 0x12c   : > { %v8209_v22 = vpop.f32.mrf.mxu0 }
 0x12d   : > { %10626 = vst [vmem:[#allocation11_spill] sm:$0xff] %v8209_v22 }
 0x12e   : > { %v8213_v26 = vpop.f32.mrf.mxu0 }
 0x130   : > { %v8215_v27 = vpop.f32.mrf.mxu0 }
 0x131   : > { %10627 = vst [vmem:[#allocation12_spill] sm:$0xff] %v8215_v27  ;;  %v8282_v27 = vld [vmem:[%s10535_s2] ss:$0 sm:$0xff] }
 0x132   : > { %v8219_v31 = vpop.f32.mrf.mxu0 }
 0x133   : > { %10628 = vst [vmem:[#allocation13_spill] sm:$0xff] %v8219_v31 }
 0x134   : > { %v8223_v33 = vpop.f32.mrf.mxu0 }
 0x135   : > { %10629 = vst [vmem:[#allocation14_spill] sm:$0xff] %v8223_v33 }
 0x136   : > { %v8227_v37 = vpop.f32.mrf.mxu0 }
 0x138   : > { %v8229_v38 = vpop.f32.mrf.mxu0 }
 0x139   : > { %10630 = vst [vmem:[#allocation15_spill] sm:$0xff] %v8229_v38 }
 0x13a   : > { %v8233_v42 = vpop.f32.mrf.mxu0 }
 0x13b   : > { %10631 = vst [vmem:[#allocation16_spill] sm:$0xff] %v8233_v42 }
 0x13c   : > { %v8237_v50 = vpop.f32.mrf.mxu0 }
 0x13d   : > { %10632 = vst [vmem:[#allocation17_spill] sm:$0xff] %v8237_v50 }
 0x13e   : > { %v8241_v28 = vpop.f32.mrf.mxu0 }
 0x140   : > { %v7211_v34 = vpop.f32.mrf.mxu0 }
 0x142   : > { %v1060_v25 = vpop.f32.mrf.mxu0 }
 0x144   : > { %v7212_v21 = vpop.f32.mrf.mxu0 }
 0x146   : > { %v1063_v18 = vpop.f32.mrf.mxu0 }
 0x148   : > { %v7215_v13 = vpop.f32.mrf.mxu0 }
 0x14a   : > { %v1076_v10 = vpop.f32.mrf.mxu0 }
 0x14c   : > { %v8243_v7 = vpop.f32.mrf.mxu0 }
 0x14e   : > { %v8245_v39 = vpop.f32.mrf.mxu0 }
 0x150   : > { %v8247_v2 = vpop.f32.mrf.mxu0 }
 0x152   : > { %v8249_v43 = vpop.f32.mrf.mxu0 }
 0x154   : > { %v8251_v63 = vpop.f32.mrf.mxu0 }
 0x156   : > { %v8253_v60 = vpop.f32.mrf.mxu0 }
 0x158   : > { %v8255_v32 = vpop.f32.mrf.mxu0 }
 0x15a   : > { %v8257_v53 = vpop.f32.mrf.mxu0 }
 0x15c   : > { %v8259_v51 = vpop.f32.mrf.mxu0 }
 0x15e   : > { %v8261_v48 = vpop.f32.mrf.mxu0 }
 0x15f   : > { %10633 = vst [vmem:[#allocation18_spill] sm:$0xff] %v8261_v48 }
 0x160   : > { %v8263_v50 = vpop.f32.mrf.mxu0 }
 0x161   : > { %10634 = vst [vmem:[#allocation19_spill] sm:$0xff] %v8263_v50 }
 0x162   : > { %v8265_v45 = vpop.f32.mrf.mxu0 }
 0x163   : > { %10635 = vst [vmem:[#allocation20_spill] sm:$0xff] %v8265_v45 }
 0x164   : > { %v8267_v42 = vpop.f32.mrf.mxu0 }
 0x165   : > { %10636 = vst [vmem:[#allocation21_spill] sm:$0xff] %v8267_v42  ;;  %v10642_v42 = vmax.f32 %v8009_v54, %v8156_v47  ;;  %v10644_v54 = vmax.f32 %v8016_v57, %v8167_v52 }
 0x166   : > { %v8269_v44 = vpop.f32.mrf.mxu0 }
 0x167   : > { %10637 = vst [vmem:[#allocation22_spill] sm:$0xff] %v8269_v44 }
 0x168   : > { %v8271_v38 = vpop.f32.mrf.mxu0 }
 0x169   : > { %10638 = vst [vmem:[#allocation23_spill] sm:$0xff] %v8271_v38 }
 0x16a   : > { %v8273_v41 = vpop.f32.mrf.mxu0 }
 0x16b   : > { %10639 = vst [vmem:[#allocation24_spill] sm:$0xff] %v8273_v41 }
 0x16c   : > { %v8275_v33 = vpop.f32.mrf.mxu0 }
 0x16d   : > { %10640 = vst [vmem:[#allocation25_spill] sm:$0xff] %v8275_v33  ;;  %v10643_v33 = vmax.f32 %v8011_v55, %v8160_v49  ;;  %v1260_v55 = vmax.f32 %v8079_v17, %v8199_v15 }
 0x16e   : > { %v8277_v36 = vpop.f32.mrf.mxu0 }
 0x16f   : > { %10641 = vst [vmem:[#allocation26_spill] sm:$0xff] %v8277_v36 }
 0x170   : > { %v7235_v31 = vpop.f32.mrf.mxu0 }
 0x171   : > { %v1277_v35 = vmax.f32 %v7211_v34, %v7235_v31  ;;  %v1252_v31 = vmax.f32 %v8021_v59, %v8171_v56 }
 0x172   : > { %v1156_v45 = vpop.f32.mrf.mxu0 }
 0x173   : > { %v1301_v44 = vmax.f32 %v10642_v42, %v1277_v35  ;;  %v1275_v30 = vmax.f32 %v1060_v25, %v1156_v45 }
 0x174   : > { %v7236_v38 = vpop.f32.mrf.mxu0 }
 0x175   : > { %v1332_v41 = vadd.f32 %v8282_v27, %v1301_v44  ;;  %v1299_v36 = vmax.f32 %v10643_v33, %v1275_v30  ;;  %v1278_v50 = vmax.f32 %v7212_v21, %v7236_v38  ;;  %v1256_v44 = vmax.f32 %v8047_v5, %v8185_v4 }
 0x176   : > { %v1159_v34 = vpop.f32.mrf.mxu0  ;;  %v10645_v21 = vmax.f32 %v8026_v61, %v8173_v58  ;;  %v10646_v58 = vmax.f32 %v8037_v1, %v8177_v62  ;;  %v10647_v1 = vmax.f32 %v8042_v3, %v8181_v0 }
 0x177   : > { %v8293_v48 = vmax.f32 %v1332_v41, 0.0  ;;  %v1330_v22 = vadd.f32 %v8282_v27, %v1299_v36  ;;  %v1302_v35 = vmax.f32 %v10644_v54, %v1278_v50  ;;  %v1276_v45 = vmax.f32 %v1063_v18, %v1159_v34 }
 0x178   : > { %v7239_v30 = vpop.f32.mrf.mxu0  ;;  %v1264_v36 = vmax.f32 %v8111_v29, %v8213_v26  ;;  %v10667_v26 = vld [vmem:[#allocation20_spill] sm:$0xff] }
 0x179   : > { %v8303_v47 = vmax.f32 %v1330_v22, 0.0  ;;  %v1333_v59 = vadd.f32 %v8282_v27, %v1302_v35  ;;  %v1300_v41 = vmax.f32 %v1252_v31, %v1276_v45  ;;  %v1281_v49 = vmax.f32 %v7215_v13, %v7239_v30 }
 0x17a   : > { %v1172_v52 = vpop.f32.mrf.mxu0  ;;  %v1400_v56 = vrot.slane %v8293_v48, 1 }
 0x17b   : > { %v8313_v4 = vmax.f32 %v1333_v59, 0.0  ;;  %v1331_v18 = vadd.f32 %v8282_v27, %v1300_v41  ;;  %v1305_v13 = vmax.f32 %v10645_v21, %v1281_v49  ;;  %v1279_v22 = vmax.f32 %v1076_v10, %v1172_v52  ;;  %v7446_v59 = vld [vmem:[%s10536_s3 + $0xc8] sm:$0xff]  }
 0x17c   : > { %v7240_v25 = vpop.f32.mrf.mxu0  ;;  %v1724_v33 = vpack.c.bf16 %v8293_v48, %v8303_v47  ;;  %v1381_v54 = vrot.slane %v8303_v47, 1 }
 0x17d   : > { %v8324_v31 = vmax.f32 %v1331_v18, 0.0  ;;  %v1336_v34 = vadd.f32 %v8282_v27, %v1305_v13  ;;  %v1303_v10 = vmax.f32 %v10646_v58, %v1279_v22  ;;  %v1282_v35 = vmax.f32 %v8243_v7, %v7240_v25 }
 0x17e   : > { %v1175_v45 = vpop.f32.mrf.mxu0  ;;  %v1401_v30 = vrot.slane %v8313_v4, 1 }
 0x17f   : > { %v8337_v52 = vmax.f32 %v1336_v34, 0.0  ;;  %v1280_v18 = vmax.f32 %v8245_v39, %v1175_v45  ;;  %v1334_v21 = vadd.f32 %v8282_v27, %v1303_v10  ;;  %v1306_v62 = vmax.f32 %v10647_v1, %v1282_v35 }
 0x180   : > { %v7243_v7 = vpop.f32.mrf.mxu0  ;;  %v1382_v13 = vrot.slane %v8324_v31, 1  ;;  %v8346_v22 = vsel %vm1380_vm3, %v1400_v56, %v1401_v30  ;;  %v10649_v56 = vmax.f32 %v8055_v8, %v8187_v6 }
 0x181   : > { %10648 = vst [vmem:[#allocation27_spill] sm:$0xff] %v8346_v22  ;;  %v1304_v58 = vmax.f32 %v1256_v44, %v1280_v18  ;;  %v1285_v34 = vmax.f32 %v8247_v2, %v7243_v7  ;;  %v8352_v10 = vmax.f32 %v1334_v21, 0.0  ;;  %v1337_v3 = vadd.f32 %v8282_v27, %v1306_v62  ;;  %v7423_v18 = vld [vmem:[%s10536_s3 + $0xb8] sm:$0xff]  }
 0x182   : > { %v1188_v0 = vpop.f32.mrf.mxu0  ;;  %v1383_v35 = vsel %vm1380_vm3, %v1381_v54, %v1382_v13  ;;  %v7426_v54 = vld [vmem:[%s10536_s3 + $0xf0] sm:$0xff]   ;;  %v1436_v62 = vrot.slane %v8337_v52, 1  ;;  %v1442_v8 = vrot.slane %v8337_v52, 3  ;;  %v10651_v13 = vmax.f32 %v8063_v11, %v8191_v9 }
 0x183   : > { %v1335_v45 = vadd.f32 %v8282_v27, %v1304_v58  ;;  %v1309_v30 = vmax.f32 %v10649_v56, %v1285_v34  ;;  %v1283_v44 = vmax.f32 %v8249_v43, %v1188_v0  ;;  %v1725_v2 = vpack.c.bf16 %v8346_v22, %v1383_v35  ;;  %v7427_v9 = vld [vmem:[%s10536_s3 + $0xb0] sm:$0xff]  }
 0x184   : > { %v8365_v21 = vmax.f32 %v1337_v3, 0.0  ;;  %v7244_v1 = vpop.f32.mrf.mxu0  ;;  %v8374_v6 = vpack.c.bf16 %v8337_v52, %v8352_v10  ;;  %v1418_v3 = vrot.slane %v8352_v10, 1  ;;  %v1426_v56 = vrot.slane %v8352_v10, 3 }
 0x185   : > { %v8376_v43 = vmax.f32 %v1335_v45, 0.0  ;;  %v1340_v7 = vadd.f32 %v8282_v27, %v1309_v30  ;;  %v1307_v58 = vmax.f32 %v10651_v13, %v1283_v44  ;;  %v1286_v34 = vmax.f32 %v8251_v63, %v7244_v1  ;;  %3432 = vmatprep.mubr.bf16.mxu1 %v1725_v2 }
 0x186   : > { %10650 = vst [vmem:[#allocation28_spill] sm:$0xff] %v8374_v6  ;;  %3433 = vmatmul.mubr.bf16.vlgmr.msra.gmra.mxu1 %v1724_v33  ;;  %v1191_v0 = vpop.f32.mrf.mxu0  ;;  %v10556_v35 = vrot.slane %v8365_v21, 1  ;;  %v1439_v45 = vrot.slane %v8337_v52, 2  ;;  %v1440_v30 = vrot.slane %v8365_v21, 2  ;;  %v10652_v11 = vmax.f32 %v8071_v14, %v8195_v12  ;;  %v7430_v14 = vld [vmem:[%s10536_s3 + $0xe8] sm:$0xff]  }
 0x187   : > { %v1338_v39 = vadd.f32 %v8282_v27, %v1307_v58  ;;  %6521 = vmatpush3.bf16.msra.mxu1 %v7423_v18  ;;  %v10557_v33 = vrot.slane %v8365_v21, 3  ;;  %v1419_v44 = vrot.slane %v8376_v43, 1  ;;  %v1284_v2 = vmax.f32 %v8253_v60, %v1191_v0 }
 0x188   : > { %v1310_v63 = vmax.f32 %v10652_v11, %v1286_v34  ;;  %v7247_v1 = vpop.f32.mrf.mxu0  ;;  %6522 = vmatprep.subr.bf16.mxu1 %v7426_v54  ;;  %v8401_v13 = vsel %vm1380_vm3, %v1436_v62, %v10556_v35  ;;  %v1422_v12 = vrot.slane %v8352_v10, 2  ;;  %v1423_v18 = vrot.slane %v8376_v43, 2 }
 0x189   : > { %v8408_v58 = vmax.f32 %v1340_v7, 0.0  ;;  %v1289_v60 = vmax.f32 %v8255_v32, %v7247_v1  ;;  %v8412_v54 = vmax.f32 %v1338_v39, 0.0  ;;  %v8415_v0 = vsel %vm1380_vm3, %v1418_v3, %v1419_v44  ;;  %v10664_v7 = vld [vmem:[#allocation5_spill] sm:$0xff] }
 0x18a   : > { %v1341_v34 = vadd.f32 %v8282_v27, %v1310_v63  ;;  %10653 = vst [vmem:[#allocation29_spill] sm:$0xff] %v8415_v0  ;;  %v1308_v62 = vmax.f32 %v1260_v55, %v1284_v2  ;;  %v1204_v11 = vpop.f32.mrf.mxu0  ;;  %v1427_v49 = vrot.slane %v8376_v43, 3  ;;  %v10654_v63 = vmax.f32 %v8087_v20, %v8201_v16 }
 0x18b   : > { %6523 = vmatpush3.bf16.msra.mxu1 %v7427_v9  ;;  %v1287_v32 = vmax.f32 %v8257_v53, %v1204_v11  ;;  %v8430_v39 = vsel %vm828_vm1, %v1442_v8, %v10557_v33  ;;  %v8437_v3 = vpack.c.bf16 %v8401_v13, %v8415_v0  ;;  %v7431_v53 = vld [vmem:[%s10536_s3 + $0xa8] sm:$0xff]   ;;  %v10658_v8 = vmax.f32 %v8095_v23, %v8205_v19  ;;  %v10665_v11 = vld [vmem:[#allocation12_spill] sm:$0xff] }
 0x18c   : > { %v1313_v35 = vmax.f32 %v10654_v63, %v1289_v60  ;;  %10655 = vst [vmem:[#allocation30_spill] sm:$0xff] %v8430_v39  ;;  %v8432_v17 = vmax.f32 %v1341_v34, 0.0  ;;  %v1339_v15 = vadd.f32 %v8282_v27, %v1308_v62  ;;  %v7248_v55 = vpop.f32.mrf.mxu0  ;;  %6524 = vmatprep.subr.bf16.mxu1 %v7430_v14  ;;  %v8440_v20 = vsel %vm828_vm1, %v1426_v56, %v1427_v49  ;;  %v7434_v49 = vld [vmem:[%s10536_s3 + $0xe0] sm:$0xff]   ;;  %v10660_v14 = vld [vmem:[#allocation11_spill] sm:$0xff] }
 0x18d   : > { %10656 = vst [vmem:[#allocation31_spill] sm:$0xff] %v8437_v3  ;;  %10657 = vst [vmem:[#allocation32_spill] sm:$0xff] %v8440_v20  ;;  %v1311_v9 = vmax.f32 %v10658_v8, %v1287_v32  ;;  %v1290_v44 = vmax.f32 %v8259_v51, %v7248_v55  ;;  %v8452_v2 = vpack.c.bf16 %v8430_v39, %v8440_v20  ;;  %v8457_v56 = vrot.slane %v1440_v30, 1  ;;  %v7435_v63 = vld [vmem:[%s10536_s3 + $0xa0] sm:$0xff]   ;;  %v7436_v32 = vld [vmem:[%s10536_s3 + $0x470] sm:$0xff]  }
 0x18e   : > { %v1344_v16 = vadd.f32 %v8282_v27, %v1313_v35  ;;  %v8459_v1 = vmax.f32 %v1339_v15, 0.0  ;;  %3440 = vmatprep.mubr.bf16.mxu1 %v8437_v3  ;;  %v8463_v35 = vsel %vm1385_vm4, %v1422_v12, %v1423_v18  ;;  %v8466_v23 = vsel %vm1385_vm4, %v1439_v45, %v1440_v30  ;;  %v1207_v51 = vpop.f32.mrf.mxu0  ;;  %v7433_v45 = vld [vmem:[%s10536_s3 + $0x438] sm:$0xff]   ;;  %v10662_v12 = vld [vmem:[#allocation18_spill] sm:$0xff] }
 0x18f   : > { %10659 = vst [vmem:[#allocation33_spill] sm:$0xff] %v8466_v23  ;;  %v1342_v19 = vadd.f32 %v8282_v27, %v1311_v9  ;;  %v10661_v34 = vmax.f32 %v8097_v24, %v10660_v14  ;;  %3822 = vmatprep.mubr.bf16.mxu0 %v8452_v2  ;;  %3441 = vmatmul.mubr.bf16.gmra.mxu1 %v8374_v6  ;;  %v1448_v15 = vrot.slane %v8412_v54, 1  ;;  %v10663_v9 = vld [vmem:[#allocation19_spill] sm:$0xff]  ;;  %v1499_v5 = vrot.slane %v8432_v17, 2 }
 0x190   : > { %6525 = vmatpush3.bf16.msra.mxu1 %v7431_v53  ;;  %v8481_v30 = vpack.c.bf16 %v8466_v23, %v8463_v35  ;;  %v1288_v24 = vmax.f32 %v10662_v12, %v1207_v51  ;;  %v7251_v18 = vpop.f32.mrf.mxu0  ;;  %v10559_v55 = vrot.slane %v8459_v1, 1  ;;  %v8492_v53 = vmax.f32 %v1344_v16, 0.0  ;;  %v7438_v14 = vld [vmem:[%s10536_s3 + $0xd8] sm:$0xff]  }
 0x191   : > { %v1314_v60 = vmax.f32 %v10661_v34, %v1290_v44  ;;  %v1293_v44 = vmax.f32 %v10663_v9, %v7251_v18  ;;  %6526 = vmatprep.subr.bf16.mxu1 %v7434_v49  ;;  %v10558_v51 = vrot.slane %v8432_v17, 1  ;;  %v1495_v49 = vrot.slane %v8408_v58, 1  ;;  %v7449_v0 = vld [vmem:[%s10536_s3 + $0x418] sm:$0xff]  }
 0x192   : > { %3823 = vmatmul.mubr.bf16.vlgmr.msra.gmra.mxu0 %v8481_v30  ;;  %v1312_v34 = vmax.f32 %v1264_v36, %v1288_v24  ;;  %v1220_v12 = vpop.f32.mrf.mxu0  ;;  %v8507_v16 = vsel %vm1380_vm3, %v1448_v15, %v10559_v55  ;;  %v8511_v18 = vmax.f32 %v1342_v19, 0.0  ;;  %v1460_v9 = vrot.slane %v8466_v23, 1  ;;  %v7437_v24 = vld [vmem:[%s10536_s3 + $0x430] sm:$0xff]  }
 0x193   : > { %v1345_v8 = vadd.f32 %v8282_v27, %v1314_v60  ;;  %v10561_v60 = vrot.slane %v8459_v1, 3  ;;  %6801 = vmatpush3.bf16.msra.mxu0 %v7433_v45  ;;  %v10666_v33 = vmax.f32 %v10664_v7, %v10665_v11  ;;  %v1291_v36 = vmax.f32 %v10667_v26, %v1220_v12  ;;  %v7439_v11 = vld [vmem:[%s10536_s3 + $0x98] sm:$0xff]   ;;  %v7442_v55 = vld [vmem:[%s10536_s3 + $0xd0] sm:$0xff]  }
 0x194   : > { %v1343_v15 = vadd.f32 %v8282_v27, %v1312_v34  ;;  %6527 = vmatpush3.bf16.msra.mxu1 %v7435_v63  ;;  %6802 = vmatprep.subr.bf16.mxu0 %v7436_v32  ;;  %v7252_v62 = vpop.f32.mrf.mxu0  ;;  %v8525_v19 = vsel %vm1380_vm3, %v1495_v49, %v10558_v51  ;;  %v8529_v7 = vpack.c.bf16 %v8507_v16, %v8401_v13  ;;  %v10669_v32 = vld [vmem:[#allocation6_spill] sm:$0xff]  ;;  %v10672_v49 = vld [vmem:[#allocation21_spill] sm:$0xff]  ;;  %v10718_v20 = vrot.slane %v8313_v4, 2 }
 0x195   : > { %v1317_v29 = vmax.f32 %v10666_v33, %v1293_v44  ;;  %v1454_v33 = vrot.slane %v8412_v54, 3  ;;  %v8535_v45 = vmax.f32 %v1345_v8, 0.0  ;;  %v10670_v44 = vld [vmem:[#allocation13_spill] sm:$0xff]  ;;  %v1294_v26 = vmax.f32 %v10672_v49, %v7252_v62  ;;  %6528 = vmatprep.subr.bf16.mxu1 %v7438_v14  ;;  %v10676_v49 = vld [vmem:[#allocation14_spill] sm:$0xff] }
 0x196   : > { %10668 = vst [vmem:[#allocation11_spill] sm:$0xff] %v8529_v7  ;;  %v10671_v34 = vmax.f32 %v10669_v32, %v10670_v44  ;;  %v7440_v51 = vld [vmem:[%s10536_s3 + $0x468] sm:$0xff]   ;;  %v8550_v8 = vpack.c.bf16 %v8525_v19, %v8507_v16  ;;  %v1501_v62 = vrot.slane %v8408_v58, 3  ;;  %v10560_v14 = vrot.slane %v8432_v17, 3 }
 0x197   : > { %v1348_v63 = vadd.f32 %v8282_v27, %v1317_v29  ;;  %v8555_v29 = vsel %vm828_vm1, %v1454_v33, %v10561_v60  ;;  %v8559_v32 = vmax.f32 %v1343_v15, 0.0  ;;  %6803 = vmatpush3.bf16.msra.mxu0 %v7437_v24  ;;  %v7441_v33 = vld [vmem:[%s10536_s3 + $0x428] sm:$0xff]   ;;  %v8577_v24 = vpack.c.bf16 %v8408_v58, %v8412_v54 }
 0x198   : > { %v1315_v12 = vmax.f32 %v10671_v34, %v1291_v36  ;;  %10673 = vst [vmem:[#allocation18_spill] sm:$0xff] %v8550_v8  ;;  %10674 = vst [vmem:[#allocation19_spill] sm:$0xff] %v8555_v29  ;;  %v1223_v36 = vpop.f32.mrf.mxu0  ;;  %v10675_v34 = vld [vmem:[#allocation7_spill] sm:$0xff]  ;;  %3448 = vmatprep.mubr.bf16.mxu1 %v8550_v8  ;;  %v8573_v15 = vsel %vm828_vm1, %v1501_v62, %v10560_v14  ;;  %6529 = vmatpush3.bf16.msra.mxu1 %v7439_v11 }
 0x199   : > { %v10677_v42 = vmax.f32 %v10675_v34, %v10676_v49  ;;  %10678 = vst [vmem:[#allocation5_spill] sm:$0xff] %v8573_v15  ;;  %10679 = vst [vmem:[#allocation12_spill] sm:$0xff] %v8577_v24  ;;  %v7443_v34 = vld [vmem:[%s10536_s3 + $0x90] sm:$0xff]   ;;  %v7444_v49 = vld [vmem:[%s10536_s3 + $0x460] sm:$0xff]   ;;  %v8587_v62 = vmax.f32 %v1348_v63, 0.0  ;;  %v8593_v11 = vpack.c.bf16 %v8573_v15, %v8555_v29  ;;  %6804 = vmatprep.subr.bf16.mxu0 %v7440_v51  ;;  %6530 = vmatprep.subr.bf16.mxu1 %v7442_v55 }
 0x19a   : > { %v1346_v44 = vadd.f32 %v8282_v27, %v1315_v12  ;;  %v1452_v12 = vrot.slane %v8459_v1, 2  ;;  %3449 = vmatmul.mubr.bf16.gmra.mxu1 %v8577_v24  ;;  %v8605_v60 = vsel %vm1380_vm3, %v1460_v9, %v8457_v56  ;;  %v1498_v51 = vrot.slane %v8408_v58, 2  ;;  %v10683_v56 = vld [vmem:[#allocation23_spill] sm:$0xff] }
 0x19b   : > { %v1318_v41 = vmax.f32 %v10677_v42, %v1294_v26  ;;  %v1451_v42 = vrot.slane %v8412_v54, 2  ;;  %v7255_v26 = vpop.f32.mrf.mxu0  ;;  %10680 = vst [vmem:[#allocation20_spill] sm:$0xff] %v8587_v62  ;;  %10681 = vst [vmem:[#allocation6_spill] sm:$0xff] %v8605_v60  ;;  %3830 = vmatprep.mubr.bf16.mxu0 %v8593_v11  ;;  %6805 = vmatpush3.bf16.msra.mxu0 %v7441_v33  ;;  %v10691_v33 = vld [vmem:[#allocation16_spill] sm:$0xff]  ;;  %v10726_v15 = vrot.slane %v8507_v16, 1 }
 0x19c   : > { %v1472_v14 = vrot.slane %v1452_v12, 1  ;;  %v8615_v50 = vmax.f32 %v1346_v44, 0.0  ;;  %v1297_v9 = vmax.f32 %v10683_v56, %v7255_v26  ;;  %6531 = vmatpush3.bf16.msra.mxu1 %v7443_v34  ;;  %6806 = vmatprep.subr.bf16.mxu0 %v7444_v49  ;;  %v8628_v44 = vsel %vm1385_vm4, %v1498_v51, %v1499_v5  ;;  %v7450_v49 = vld [vmem:[%s10536_s3 + $0xc0] sm:$0xff]   ;;  %v10688_v56 = vld [vmem:[#allocation15_spill] sm:$0xff] }
 0x19d   : > { %v1349_v25 = vadd.f32 %v8282_v27, %v1318_v41  ;;  %v8601_v63 = vsel %vm1385_vm4, %v1451_v42, %v1452_v12  ;;  %v1236_v61 = vpop.f32.mrf.mxu0  ;;  %v10682_v41 = vld [vmem:[#allocation22_spill] sm:$0xff]  ;;  %v7445_v42 = vld [vmem:[%s10536_s3 + $0x420] sm:$0xff]   ;;  %v10686_v26 = vmax.f32 %v8140_v40, %v8227_v37  ;;  %6532 = vmatprep.subr.bf16.mxu1 %v7446_v59 }
 0x19e   : > { %v1471_v55 = vrot.slane %v8601_v63, 1  ;;  %v1292_v38 = vmax.f32 %v10682_v41, %v1223_v36  ;;  %v10684_v12 = vld [vmem:[#allocation24_spill] sm:$0xff]  ;;  %v7447_v36 = vld [vmem:[%s10536_s3 + $0x88] sm:$0xff]  }
 0x19f   : > { %v1295_v57 = vmax.f32 %v10684_v12, %v1236_v61  ;;  %v7256_v6 = vpop.f32.mrf.mxu0  ;;  %v7448_v61 = vld [vmem:[%s10536_s3 + $0x458] sm:$0xff]   ;;  %v8649_v59 = vmax.f32 %v1349_v25, 0.0  ;;  %6807 = vmatpush3.bf16.msra.mxu0 %v7445_v42  ;;  %v10694_v25 = vrot.slane %v8559_v32, 1 }
 0x1a0   : > { %v8625_v41 = vsel %vm1380_vm3, %v1471_v55, %v1472_v14  ;;  %v1316_v34 = vmax.f32 %v10686_v26, %v1292_v38  ;;  %v8643_v55 = vpack.c.bf16 %v8628_v44, %v8601_v63  ;;  %v10687_v51 = vld [vmem:[#allocation8_spill] sm:$0xff]  ;;  %v1529_v38 = vrot.slane %v8511_v18, 1  ;;  %v10690_v26 = vld [vmem:[#allocation9_spill] sm:$0xff]  ;;  %6533 = vmatpush3.bf16.msra.mxu1 %v7447_v36  ;;  %6808 = vmatprep.subr.bf16.mxu0 %v7448_v61 }
 0x1a1   : > { %10685 = vst [vmem:[#allocation13_spill] sm:$0xff] %v8625_v41  ;;  %v10689_v40 = vmax.f32 %v10687_v51, %v10688_v56  ;;  %v10692_v3 = vmax.f32 %v10690_v26, %v10691_v33  ;;  %v10693_v14 = vld [vmem:[#allocation25_spill] sm:$0xff]  ;;  %v8675_v33 = vrot.slane %v1499_v5, 1  ;;  %v10696_v56 = vld [vmem:[#allocation10_spill] sm:$0xff]  ;;  %6534 = vmatprep.subr.bf16.mxu1 %v7450_v49  ;;  %v7454_v36 = vld [vmem:[%s10536_s3 + $0x178] sm:$0xff]   ;;  %v1535_v5 = vrot.slane %v8511_v18, 3 }
 0x1a2   : > { %v1347_v12 = vadd.f32 %v8282_v27, %v1316_v34  ;;  %v1298_v60 = vmax.f32 %v10693_v14, %v7256_v6  ;;  %3831 = vmatmul.mubr.bf16.gmra.mxu0 %v8643_v55  ;;  %v8664_v51 = vsel %vm1380_vm3, %v1529_v38, %v10694_v25  ;;  %v1563_v34 = vrot.slane %v8492_v53, 1  ;;  %v7451_v6 = vld [vmem:[%s10536_s3 + $0x80] sm:$0xff]  }
 0x1a3   : > { %v1321_v37 = vmax.f32 %v10689_v40, %v1297_v9  ;;  %v1319_v22 = vmax.f32 %v10692_v3, %v1295_v57  ;;  %v10567_v57 = vrot.slane %v8535_v45, 1  ;;  %v7452_v3 = vld [vmem:[%s10536_s3 + $0x450] sm:$0xff]   ;;  %10695 = vst [vmem:[#allocation21_spill] sm:$0xff] %v8675_v33  ;;  %v10697_v40 = vld [vmem:[#allocation17_spill] sm:$0xff]  ;;  %6809 = vmatpush3.bf16.msra.mxu0 %v7449_v0  ;;  %v10706_v41 = vrot.slane %v8293_v48, 3 }
 0x1a4   : > { %6535 = vmatpush3.bf16.msra.mxu1 %v7451_v6  ;;  %6810 = vmatprep.subr.bf16.mxu0 %v7452_v3  ;;  %v1570_v6 = vrot.slane %v8535_v45, 3  ;;  %v8723_v3 = vpack.c.bf16 %v8492_v53, %v8511_v18  ;;  %v10704_v0 = vld [vmem:[#allocation26_spill] sm:$0xff] }
 0x1a5   : > { %v1352_v9 = vadd.f32 %v8282_v27, %v1321_v37  ;;  %v1350_v14 = vadd.f32 %v8282_v27, %v1319_v22  ;;  %v10698_v37 = vmax.f32 %v10696_v56, %v10697_v40  ;;  %v8689_v25 = vsel %vm1380_vm3, %v1563_v34, %v10567_v57  ;;  %6560 = vmatprep.subr.bf16.mxu1 %v7454_v36  ;;  %v1239_v36 = vpop.f32.mrf.mxu0 }
 0x1a6   : > { %v1536_v22 = vrot.slane %v8559_v32, 3  ;;  %v8699_v49 = vpack.c.bf16 %v8689_v25, %v8664_v51  ;;  %v8704_v34 = vmax.f32 %v1347_v12, 0.0  ;;  %v1569_v40 = vrot.slane %v8492_v53, 3  ;;  %10701 = vst [vmem:[#allocation22_spill] sm:$0xff] %v8723_v3 }
 0x1a7   : > { %v1322_v38 = vmax.f32 %v10698_v37, %v1298_v60  ;;  %v8684_v26 = vmax.f32 %v1352_v9, 0.0  ;;  %v8693_v42 = vmax.f32 %v1350_v14, 0.0  ;;  %v7453_v9 = vld [vmem:[%s10536_s3 + $0x410] sm:$0xff]   ;;  %v7456_v37 = vld [vmem:[%s10536_s3 + $0x448] sm:$0xff]   ;;  %v1532_v57 = vrot.slane %v8511_v18, 2 }
 0x1a8   : > { %10699 = vst [vmem:[#allocation7_spill] sm:$0xff] %v8699_v49  ;;  %v8707_v56 = vsel %vm828_vm1, %v1535_v5, %v1536_v22  ;;  %v1547_v14 = vrot.slane %v1536_v22, 1  ;;  %3456 = vmatprep.mubr.bf16.mxu1 %v8699_v49  ;;  %v1533_v22 = vrot.slane %v8559_v32, 2  ;;  %6811 = vmatpush3.bf16.msra.mxu0 %v7453_v9  ;;  %v7457_v5 = vld [vmem:[%s10536_s3 + $0x408] sm:$0xff]   ;;  %v8738_v8 = vsel %vm828_vm1, %v1569_v40, %v1570_v6 }
 0x1a9   : > { %v1353_v60 = vadd.f32 %v8282_v27, %v1322_v38  ;;  %10700 = vst [vmem:[#allocation14_spill] sm:$0xff] %v8707_v56  ;;  %v1546_v12 = vrot.slane %v8707_v56, 1  ;;  %10703 = vst [vmem:[#allocation24_spill] sm:$0xff] %v8738_v8  ;;  %3457 = vmatmul.mubr.bf16.gmra.mxu1 %v8723_v3  ;;  %6812 = vmatprep.subr.bf16.mxu0 %v7456_v37  ;;  %v1580_v9 = vrot.slane %v8738_v8, 1  ;;  %v1566_v40 = vrot.slane %v8492_v53, 2 }
 0x1aa   : > { %v8750_v49 = vsel %vm1385_vm4, %v1532_v57, %v1533_v22  ;;  %v1296_v24 = vmax.f32 %v10704_v0, %v1239_v36  ;;  %v1391_v37 = vrot.slane %v8324_v31, 3  ;;  %v10705_v3 = vrot.slane %v8313_v4, 3 }
 0x1ab   : > { %v8714_v38 = vmax.f32 %v1353_v60, 0.0  ;;  %v8729_v61 = vsel %vm1380_vm3, %v1546_v12, %v1547_v14  ;;  %v1581_v60 = vrot.slane %v1570_v6, 1  ;;  %v7460_v14 = vld [vmem:[%s10536_s3 + $0x440] sm:$0xff]   ;;  %v8747_v12 = vpack.c.bf16 %v8738_v8, %v8707_v56 }
 0x1ac   : > { %10702 = vst [vmem:[#allocation23_spill] sm:$0xff] %v8729_v61  ;;  %v1567_v6 = vrot.slane %v8535_v45, 2  ;;  %v8761_v33 = vsel %vm828_vm1, %v10706_v41, %v10705_v3  ;;  %v1603_v56 = vrot.slane %v8615_v50, 3  ;;  %v10584_v0 = vrot.slane %v8704_v34, 3  ;;  %6813 = vmatpush3.bf16.msra.mxu0 %v7457_v5 }
 0x1ad   : > { %10707 = vst [vmem:[#allocation8_spill] sm:$0xff] %v8761_v33  ;;  %v8764_v8 = vsel %vm1380_vm3, %v1580_v9, %v1581_v60  ;;  %3838 = vmatprep.mubr.bf16.mxu0 %v8747_v12  ;;  %v8773_v39 = vrot.slane %v1533_v22, 1  ;;  %v10710_v3 = vmax.f32 %v8154_v46, %v8241_v28  ;;  %6814 = vmatprep.subr.bf16.mxu0 %v7460_v14  ;;  %v7461_v9 = vld [vmem:[%s10536_s3 + $0x400] sm:$0xff]   ;;  %v10711_v57 = vrot.slane %v8714_v38, 3  ;;  %v7464_v28 = vld [vmem:[%s10536_s3 + $0x578] sm:$0xff]  }
 0x1ae   : > { %10708 = vst [vmem:[#allocation15_spill] sm:$0xff] %v8764_v8  ;;  %v8776_v41 = vsel %vm1385_vm4, %v1566_v40, %v1567_v6  ;;  %v10714_v40 = vrot.slane %v8303_v47, 3  ;;  %v8798_v46 = vsel %vm828_vm1, %v1603_v56, %v10584_v0  ;;  %v10717_v56 = vrot.slane %v8303_v47, 2 }
 0x1af   : > { %10709 = vst [vmem:[#allocation9_spill] sm:$0xff] %v8773_v39  ;;  %v1320_v60 = vmax.f32 %v10710_v3, %v1296_v24  ;;  %v8786_v5 = vrot.slane %v10711_v57, 1  ;;  %v8790_v22 = vpack.c.bf16 %v8776_v41, %v8750_v49  ;;  %10715 = vst [vmem:[#allocation10_spill] sm:$0xff] %v8798_v46  ;;  %v1637_v3 = vrot.slane %v8587_v62, 3 }
 0x1b0   : > { %v1392_v36 = vsel %vm828_vm1, %v10714_v40, %v1391_v37  ;;  %v10716_v40 = vrot.slane %v8324_v31, 2  ;;  %v10719_v24 = vrot.slane %v8293_v48, 2  ;;  %6815 = vmatpush3.bf16.msra.mxu0 %v7461_v9 }
 0x1b1   : > { %10712 = vst [vmem:[#allocation16_spill] sm:$0xff] %v8786_v5  ;;  %10713 = vst [vmem:[#allocation25_spill] sm:$0xff] %v8790_v22  ;;  %v1351_v14 = vadd.f32 %v8282_v27, %v1320_v60  ;;  %v1727_v57 = vpack.c.bf16 %v8761_v33, %v1392_v36  ;;  %3839 = vmatmul.mubr.bf16.gmra.mxu0 %v8790_v22  ;;  %v7455_v36 = vld [vmem:[%s10536_s3 + $0x138] sm:$0xff]   ;;  %v1600_v60 = vrot.slane %v8615_v50, 2  ;;  %6880 = vmatprep.subr.bf16.mxu0 %v7464_v28 }
 0x1b2   : > { %v1388_v0 = vsel %vm1385_vm4, %v10717_v56, %v10716_v40  ;;  %v8819_v27 = vsel %vm1385_vm4, %v10719_v24, %v10718_v20  ;;  %v1601_v40 = vrot.slane %v8704_v34, 2  ;;  %v1634_v56 = vrot.slane %v8587_v62, 2  ;;  %v7458_v20 = vld [vmem:[%s10536_s3 + $0x170] sm:$0xff]  }
 0x1b3   : > { %v8825_v37 = vmax.f32 %v1351_v14, 0.0  ;;  %3497 = vmatprep.mubr.bf16.mxu1 %v1727_v57  ;;  %v1726_v33 = vpack.c.bf16 %v8819_v27, %v1388_v0  ;;  %v10720_v24 = vrot.slane %v8649_v59, 3  ;;  %v10595_v14 = vrot.slane %v8649_v59, 2 }
 0x1b4   : > { %v10721_v57 = vrot.slane %v8365_v21, 1  ;;  %v10722_v0 = vrot.slane %v8459_v1, 1  ;;  %v8844_v22 = vrot.slane %v1567_v6, 1  ;;  %v10725_v6 = vrot.slane %v8401_v13, 1  ;;  %v7463_v13 = vld [vmem:[%s10536_s3 + $0x128] sm:$0xff]  }
 0x1b5   : > { %v8836_v8 = vsel %vm828_vm1, %v1637_v3, %v10720_v24  ;;  %v10594_v9 = vrot.slane %v8825_v37, 3  ;;  %3498 = vmatmul.mubr.bf16.vlgmr.msra.gmra.mxu1 %v1726_v33  ;;  %v1666_v3 = vrot.slane %v8825_v37, 1  ;;  %v8857_v28 = vsel %vm1385_vm4, %v1634_v56, %v10595_v14  ;;  %v7459_v33 = vld [vmem:[%s10536_s3 + $0x130] sm:$0xff]   ;;  %v7462_v56 = vld [vmem:[%s10536_s3 + $0x168] sm:$0xff]  }
 0x1b6   : > { %v1458_v39 = vrot.slane %v10721_v57, 1  ;;  %v1469_v61 = vrot.slane %v10722_v0, 1  ;;  %10723 = vst [vmem:[#allocation17_spill] sm:$0xff] %v8844_v22  ;;  %v1788_v24 = vpack.c.bf16 %v8836_v8, %v8798_v46  ;;  %6561 = vmatpush3.bf16.msra.mxu1 %v7455_v36  ;;  %v8852_v57 = vsel %vm1385_vm4, %v1600_v60, %v1601_v40  ;;  %3505 = vmatprep.mubr.bf16.mxu1 %v8452_v2 }
 0x1b7   : > { %v8866_v0 = vrot.slane %v10594_v9, 1  ;;  %v8869_v60 = vrot.slane %v1601_v40, 1  ;;  %6562 = vmatprep.subr.bf16.mxu1 %v7458_v20  ;;  %v1787_v5 = vpack.c.bf16 %v8857_v28, %v8852_v57  ;;  %v10728_v36 = vrot.slane %v8432_v17, 1 }
 0x1b8   : > { %3846 = vmatprep.mubr.bf16.mxu0 %v1788_v24  ;;  %v1459_v9 = vsel %vm1380_vm3, %v10725_v6, %v1458_v39  ;;  %v8883_v40 = vsel %vm1380_vm3, %v10726_v15, %v1469_v61  ;;  %v10729_v24 = vrot.slane %v8559_v32, 1  ;;  %v10731_v39 = vrot.slane %v8535_v45, 1 }
 0x1b9   : > { %10724 = vst [vmem:[#allocation26_spill] sm:$0xff] %v8869_v60  ;;  %10727 = vst [vmem:[#allocation34_spill] sm:$0xff] %v8883_v40  ;;  %v1741_v20 = vpack.c.bf16 %v8883_v40, %v1459_v9  ;;  %v1507_v14 = vrot.slane %v10728_v36, 1  ;;  %v8892_v60 = vpack.c.bf16 %v8664_v51, %v8525_v19  ;;  %3847 = vmatmul.mubr.bf16.gmra.mxu0 %v1787_v5  ;;  %v1597_v15 = vrot.slane %v8615_v50, 1 }
 0x1ba   : > { %v1541_v2 = vrot.slane %v10729_v24, 1  ;;  %6563 = vmatpush3.bf16.msra.mxu1 %v7459_v33  ;;  %v1575_v16 = vrot.slane %v10731_v39, 1  ;;  %v1598_v61 = vrot.slane %v8704_v34, 1  ;;  %v10732_v6 = vrot.slane %v8525_v19, 1  ;;  %v7466_v24 = vld [vmem:[%s10536_s3 + $0x160] sm:$0xff]  }
 0x1bb   : > { %10730 = vst [vmem:[#allocation35_spill] sm:$0xff] %v8892_v60  ;;  %3952 = vmatprep.mubr.bf16.mxu0 %v1741_v20  ;;  %6564 = vmatprep.subr.bf16.mxu1 %v7462_v56  ;;  %v10734_v33 = vrot.slane %v8664_v51, 1  ;;  %v1631_v39 = vrot.slane %v8587_v62, 1  ;;  %v1632_v9 = vrot.slane %v8649_v59, 1  ;;  %v10739_v56 = vrot.slane %v8313_v4, 4 }
 0x1bc   : > { %v8906_v5 = vsel %vm1380_vm3, %v10732_v6, %v1507_v14  ;;  %v10736_v14 = vrot.slane %v8689_v25, 1  ;;  %v1609_v6 = vrot.slane %v1598_v61, 1  ;;  %v8970_v4 = vpack.c.bf16 %v8412_v54, %v8337_v52 }
 0x1bd   : > { %10733 = vst [vmem:[#allocation36_spill] sm:$0xff] %v8906_v5  ;;  %v8911_v36 = vsel %vm1380_vm3, %v10734_v33, %v1541_v2  ;;  %v1599_v2 = vsel %vm1380_vm3, %v1597_v15, %v1598_v61  ;;  %3506 = vmatmul.mubr.bf16.gmra.mxu1 %v8481_v30  ;;  %v1643_v15 = vrot.slane %v1632_v9, 1  ;;  %v1665_v30 = vrot.slane %v8693_v42, 1  ;;  %v7465_v33 = vld [vmem:[%s10536_s3 + $0x538] sm:$0xff]  }
 0x1be   : > { %10735 = vst [vmem:[#allocation37_spill] sm:$0xff] %v8911_v36  ;;  %v1758_v19 = vpack.c.bf16 %v8911_v36, %v8906_v5  ;;  %v8925_v51 = vsel %vm1380_vm3, %v10736_v14, %v1575_v16  ;;  %v1608_v20 = vrot.slane %v1599_v2, 1  ;;  %v8932_v22 = vpack.c.bf16 %v1599_v2, %v8689_v25  ;;  %6565 = vmatpush3.bf16.msra.mxu1 %v7463_v13  ;;  %v7467_v16 = vld [vmem:[%s10536_s3 + $0x120] sm:$0xff]   ;;  %v7468_v36 = vld [vmem:[%s10536_s3 + $0x570] sm:$0xff]  }
 0x1bf   : > { %10737 = vst [vmem:[#allocation38_spill] sm:$0xff] %v8925_v51  ;;  %3513 = vmatprep.mubr.bf16.mxu1 %v8593_v11  ;;  %v8939_v14 = vsel %vm1380_vm3, %v1631_v39, %v1632_v9  ;;  %v1677_v61 = vrot.slane %v1666_v3, 1  ;;  %6566 = vmatprep.subr.bf16.mxu1 %v7466_v24  ;;  %v1394_v13 = vrot.slane %v8303_v47, 4  ;;  %v10740_v39 = vrot.slane %v8293_v48, 4  ;;  %v7470_v24 = vld [vmem:[%s10536_s3 + $0x158] sm:$0xff]   ;;  %10741 = vst [vmem:[#allocation40_spill] sm:$0xff] %v8970_v4 }
 0x1c0   : > { %v8946_v25 = vsel %vm1380_vm3, %v1608_v20, %v1609_v6  ;;  %v1642_v11 = vrot.slane %v8939_v14, 1  ;;  %v8966_v47 = vsel %vm1380_vm3, %v1665_v30, %v1666_v3  ;;  %v10743_v40 = vrot.slane %v8324_v31, 4  ;;  %v7471_v30 = vld [vmem:[%s10536_s3 + $0x118] sm:$0xff]  }
 0x1c1   : > { %10738 = vst [vmem:[#allocation39_spill] sm:$0xff] %v8946_v25  ;;  %v8955_v9 = vsel %vm827_vm0, %v10740_v39, %v10739_v56  ;;  %v1775_v20 = vpack.c.bf16 %v8946_v25, %v8925_v51  ;;  %v1430_v56 = vrot.slane %v8352_v10, 4  ;;  %v1676_v39 = vrot.slane %v8966_v47, 1  ;;  %3953 = vmatmul.mubr.bf16.vlgmr.msra.gmra.mxu0 %v8529_v7  ;;  %v7480_v51 = vld [vmem:[%s10536_s3 + $0x558] sm:$0xff]  }
 0x1c2   : > { %v8974_v6 = vsel %vm1380_vm3, %v1642_v11, %v1643_v15  ;;  %v8980_v5 = vsel %vm827_vm0, %v1394_v13, %v10743_v40  ;;  %6567 = vmatpush3.bf16.msra.mxu1 %v7467_v16  ;;  %v1431_v31 = vrot.slane %v8376_v43, 4  ;;  %v1488_v40 = vrot.slane %v8337_v52, 4  ;;  %3960 = vmatprep.mubr.bf16.mxu0 %v1758_v19  ;;  %v7469_v16 = vld [vmem:[%s10536_s3 + $0x530] sm:$0xff]   ;;  %v7472_v19 = vld [vmem:[%s10536_s3 + $0x568] sm:$0xff]  }
 0x1c3   : > { %10742 = vst [vmem:[#allocation41_spill] sm:$0xff] %v8974_v6  ;;  %6881 = vmatpush3.bf16.msra.mxu0 %v7465_v33  ;;  %v7474_v13 = vld [vmem:[%s10536_s3 + $0x150] sm:$0xff]   ;;  %v9001_v3 = vsel %vm1380_vm3, %v1676_v39, %v1677_v61  ;;  %v1489_v15 = vrot.slane %v8365_v21, 4  ;;  %v9006_v43 = vpack.c.bf16 %v8511_v18, %v8408_v58  ;;  %v1522_v52 = vrot.slane %v8412_v54, 4  ;;  %6568 = vmatprep.subr.bf16.mxu1 %v7470_v24 }
 0x1c4   : > { %6882 = vmatprep.subr.bf16.mxu0 %v7468_v36  ;;  %v9015_v61 = vsel %vm827_vm0, %v1430_v56, %v1431_v31  ;;  %v1523_v39 = vrot.slane %v8459_v1, 4  ;;  %v1556_v11 = vrot.slane %v8408_v58, 4  ;;  %v1557_v36 = vrot.slane %v8432_v17, 4  ;;  %v7475_v58 = vld [vmem:[%s10536_s3 + $0x110] sm:$0xff]  }
 0x1c5   : > { %3514 = vmatmul.mubr.bf16.gmra.mxu1 %v8643_v55  ;;  %v9021_v54 = vsel %vm827_vm0, %v1488_v40, %v1489_v15  ;;  %v9026_v24 = vpack.c.bf16 %v8615_v50, %v8492_v53  ;;  %v9029_v33 = vpack.c.bf16 %v8939_v14, %v1599_v2  ;;  %v1590_v15 = vrot.slane %v8511_v18, 4  ;;  %v7476_v18 = vld [vmem:[%s10536_s3 + $0x560] sm:$0xff]  }
 0x1c6   : > { %6569 = vmatpush3.bf16.msra.mxu1 %v7471_v30  ;;  %3521 = vmatprep.mubr.bf16.mxu1 %v8747_v12  ;;  %v9037_v55 = vpack.c.bf16 %v9021_v54, %v9015_v61  ;;  %v9040_v56 = vsel %vm827_vm0, %v1522_v52, %v1523_v39  ;;  %v1591_v31 = vrot.slane %v8559_v32, 4  ;;  %v7473_v12 = vld [vmem:[%s10536_s3 + $0x528] sm:$0xff]   ;;  %v9048_v2 = vsel %vm827_vm0, %v1556_v11, %v1557_v36 }
 0x1c7   : > { %6883 = vmatpush3.bf16.msra.mxu0 %v7469_v16  ;;  %6570 = vmatprep.subr.bf16.mxu1 %v7474_v13  ;;  %v1624_v30 = vrot.slane %v8492_v53, 4  ;;  %v1625_v40 = vrot.slane %v8535_v45, 4  ;;  %v9054_v52 = vpack.c.bf16 %v8587_v62, %v8615_v50  ;;  %v7478_v32 = vld [vmem:[%s10536_s3 + $0x148] sm:$0xff]   ;;  %v9064_v11 = vpack.c.bf16 %v9048_v2, %v9040_v56 }
 0x1c8   : > { %6884 = vmatprep.subr.bf16.mxu0 %v7472_v19  ;;  %v9067_v53 = vsel %vm827_vm0, %v1590_v15, %v1591_v31  ;;  %v1699_v16 = vrot.slane %v8684_v26, 1  ;;  %v7479_v15 = vld [vmem:[%s10536_s3 + $0x108] sm:$0xff]   ;;  %v10746_v45 = vrot.slane %v8432_v17, 3  ;;  %v10747_v17 = vrot.slane %v8714_v38, 1 }
 0x1c9   : > { %v9073_v13 = vsel %vm827_vm0, %v1624_v30, %v1625_v40  ;;  %3961 = vmatmul.mubr.bf16.gmra.mxu0 %v8892_v60  ;;  %v10745_v30 = vrot.slane %v8459_v1, 3  ;;  %v7482_v1 = vld [vmem:[%s10536_s3 + $0x140] sm:$0xff]   ;;  %v10749_v19 = vrot.slane %v8649_v59, 3 }
 0x1ca   : > { %10744 = vst [vmem:[#allocation42_spill] sm:$0xff] %v9073_v13  ;;  %6571 = vmatpush3.bf16.msra.mxu1 %v7475_v58  ;;  %v9086_v31 = vpack.c.bf16 %v9073_v13, %v9067_v53  ;;  %v1513_v39 = vrot.slane %v10746_v45, 1  ;;  %3968 = vmatprep.mubr.bf16.mxu0 %v1775_v20  ;;  %v7477_v58 = vld [vmem:[%s10536_s3 + $0x520] sm:$0xff]   ;;  %v9107_v45 = vsel %vm1380_vm3, %v1699_v16, %v10747_v17  ;;  %v10751_v17 = vrot.slane %v8555_v29, 1 }
 0x1cb   : > { %v1475_v40 = vrot.slane %v10745_v30, 1  ;;  %6885 = vmatpush3.bf16.msra.mxu0 %v7473_v12  ;;  %v10748_v30 = vrot.slane %v8704_v34, 3  ;;  %v1649_v20 = vrot.slane %v10749_v19, 1  ;;  %v10750_v12 = vrot.slane %v8649_v59, 2  ;;  %6572 = vmatprep.subr.bf16.mxu1 %v7478_v32  ;;  %v10752_v60 = vld [vmem:[#allocation5_spill] sm:$0xff] }
 0x1cc   : > { %6886 = vmatprep.subr.bf16.mxu0 %v7476_v18  ;;  %v10753_v19 = vrot.slane %v10752_v60, 1  ;;  %v10755_v32 = vrot.slane %v8798_v46, 1  ;;  %v10756_v16 = vrot.slane %v8836_v8, 1  ;;  %v10791_v13 = vrot.slane %v8684_v26, 2 }
 0x1cd   : > { %v1615_v36 = vrot.slane %v10748_v30, 1  ;;  %v9115_v25 = vrot.slane %v10750_v12, 1  ;;  %v9125_v30 = vsel %vm1380_vm3, %v10751_v17, %v1475_v40  ;;  %v10754_v12 = vld [vmem:[#allocation25_spill] sm:$0xff]  ;;  %v10757_v17 = vrot.slane %v8825_v37, 3 }
 0x1ce   : > { %v9130_v7 = vsel %vm1380_vm3, %v10753_v19, %v1513_v39  ;;  %3522 = vmatmul.mubr.bf16.gmra.mxu1 %v10754_v12  ;;  %v9143_v40 = vsel %vm1380_vm3, %v10756_v16, %v1649_v20  ;;  %v10758_v39 = vrot.slane %v8693_v42, 3  ;;  %v10759_v12 = vpack.c.bf16 %v8352_v10, %v8293_v48  ;;  %v7481_v48 = vld [vmem:[%s10536_s3 + $0x518] sm:$0xff]  }
 0x1cf   : > { %v9138_v23 = vsel %vm1380_vm3, %v10755_v32, %v1615_v36  ;;  %6573 = vmatpush3.bf16.msra.mxu1 %v7479_v15  ;;  %v7483_v36 = vld [vmem:[%s10536_s3 + $0x100] sm:$0xff]   ;;  %v10760_v16 = vrot.slane %v8714_v38, 3  ;;  %v10761_v32 = vrot.slane %v8684_v26, 3  ;;  %6887 = vmatpush3.bf16.msra.mxu0 %v7477_v58  ;;  %v7484_v58 = vld [vmem:[%s10536_s3 + $0x550] sm:$0xff]   ;;  %v1659_v15 = vrot.slane %v8704_v34, 4 }
 0x1d0   : > { %v1673_v19 = vsel %vm828_vm1, %v10758_v39, %v10757_v17  ;;  %3562 = vmatprep.mubr.bf16.mxu1 %v10759_v12  ;;  %6574 = vmatprep.subr.bf16.mxu1 %v7482_v1  ;;  %v10764_v12 = vld [vmem:[#allocation16_spill] sm:$0xff]  ;;  %v1693_v34 = vrot.slane %v8649_v59, 4  ;;  %v7490_v39 = vld [vmem:[%s10536_s3 + $0x1f0] sm:$0xff]  }
 0x1d1   : > { %v1682_v20 = vrot.slane %v1673_v19, 1  ;;  %v1707_v18 = vsel %vm828_vm1, %v10761_v32, %v10760_v16  ;;  %v10762_v19 = vld [vmem:[#allocation30_spill] sm:$0xff]  ;;  %6888 = vmatprep.subr.bf16.mxu0 %v7480_v51  ;;  %v7486_v16 = vld [vmem:[%s10536_s3 + $0x1f8] sm:$0xff]   ;;  %v1658_v51 = vrot.slane %v8615_v50, 4  ;;  %3969 = vmatmul.mubr.bf16.gmra.mxu0 %v8932_v22 }
 0x1d2   : > { %v1716_v10 = vrot.slane %v1707_v18, 1  ;;  %v10763_v32 = vld [vmem:[#allocation14_spill] sm:$0xff]  ;;  %v10768_v18 = vrot.slane %v8714_v38, 1 }
 0x1d3   : > { %v9182_v1 = vsel %vm1380_vm3, %v1682_v20, %v8866_v0  ;;  %6575 = vmatpush3.bf16.msra.mxu1 %v7483_v36  ;;  %v7487_v20 = vld [vmem:[%s10536_s3 + $0x1b8] sm:$0xff]   ;;  %v10767_v0 = vpack.c.bf16 %v9001_v3, %v8974_v6  ;;  %6889 = vmatpush3.bf16.msra.mxu0 %v7481_v48  ;;  %v7485_v36 = vld [vmem:[%s10536_s3 + $0x510] sm:$0xff]   ;;  %v9220_v59 = vsel %vm827_vm0, %v1658_v51, %v1659_v15  ;;  %v10771_v6 = vld [vmem:[#allocation21_spill] sm:$0xff]  ;;  %v10772_v48 = vrot.slane %v8628_v44, 1 }
 0x1d4   : > { %v9191_v17 = vsel %vm1380_vm3, %v1716_v10, %v10764_v12  ;;  %v1692_v10 = vrot.slane %v8587_v62, 4  ;;  %v10766_v12 = vrot.slane %v8365_v21, 3  ;;  %v1711_v50 = vrot.slane %v10768_v18, 1  ;;  %10769 = vst [vmem:[#allocation5_spill] sm:$0xff] %v9220_v59  ;;  %v10770_v21 = vld [vmem:[#allocation23_spill] sm:$0xff]  ;;  %6890 = vmatprep.subr.bf16.mxu0 %v7484_v58  ;;  %6600 = vmatprep.subr.bf16.mxu1 %v7486_v16  ;;  %v7488_v62 = vld [vmem:[%s10536_s3 + $0x548] sm:$0xff]  }
 0x1d5   : > { %3976 = vmatprep.mubr.bf16.mxu0 %v10767_v0  ;;  %v9228_v0 = vsel %vm1380_vm3, %v10772_v48, %v10771_v6  ;;  %v1710_v18 = vrot.slane %v9107_v45, 1  ;;  %v10776_v6 = vpack.c.bf16 %v8955_v9, %v8980_v5  ;;  %v10777_v48 = vld [vmem:[#allocation9_spill] sm:$0xff]  ;;  %v10778_v15 = vrot.slane %v8750_v49, 1  ;;  %v7491_v5 = vld [vmem:[%s10536_s3 + $0x1b0] sm:$0xff]  }
 0x1d6   : > { %v1464_v29 = vrot.slane %v10766_v12, 1  ;;  %v9237_v51 = vsel %vm827_vm0, %v1692_v10, %v1693_v34  ;;  %v10774_v12 = vrot.slane %v10762_v19, 1  ;;  %v10779_v34 = vld [vmem:[#allocation15_spill] sm:$0xff]  ;;  %v10781_v16 = vld [vmem:[#allocation17_spill] sm:$0xff]  ;;  %v10784_v58 = vrot.slane %v8852_v57, 1 }
 0x1d7   : > { %10773 = vst [vmem:[#allocation25_spill] sm:$0xff] %v9237_v51  ;;  %3563 = vmatmul.mubr.bf16.vlgmr.msra.gmra.mxu1 %v10776_v6  ;;  %v9255_v10 = vsel %vm1380_vm3, %v10778_v15, %v10777_v48  ;;  %v10782_v15 = vrot.slane %v8776_v41, 1  ;;  %6891 = vmatpush3.bf16.msra.mxu0 %v7485_v36  ;;  %v10788_v6 = vrot.slane %v8693_v42, 2  ;;  %v9317_v59 = vsel %vm1380_vm3, %v1710_v18, %v1711_v50  ;;  %v7496_v50 = vld [vmem:[%s10536_s3 + $0x638] sm:$0xff]  }
 0x1d8   : > { %v9242_v8 = vsel %vm1380_vm3, %v10774_v12, %v1464_v29  ;;  %v10780_v12 = vrot.slane %v8825_v37, 2  ;;  %6601 = vmatpush3.bf16.msra.mxu1 %v7487_v20  ;;  %3570 = vmatprep.mubr.bf16.mxu1 %v8970_v4  ;;  %v10783_v29 = vld [vmem:[#allocation26_spill] sm:$0xff] }
 0x1d9   : > { %10775 = vst [vmem:[#allocation30_spill] sm:$0xff] %v9242_v8  ;;  %v9271_v48 = vsel %vm1380_vm3, %v10782_v15, %v10781_v16  ;;  %v9277_v20 = vsel %vm1380_vm3, %v10784_v58, %v10783_v29  ;;  %6602 = vmatprep.subr.bf16.mxu1 %v7490_v39  ;;  %v10785_v16 = vrot.slane %v8857_v28, 1  ;;  %v10786_v58 = vrot.slane %v8714_v38, 2  ;;  %6892 = vmatprep.subr.bf16.mxu0 %v7488_v62  ;;  %v7492_v39 = vld [vmem:[%s10536_s3 + $0x540] sm:$0xff]   ;;  %v7494_v29 = vld [vmem:[%s10536_s3 + $0x1e8] sm:$0xff]  }
 0x1da   : > { %v1680_v46 = vrot.slane %v10780_v12, 1  ;;  %v7489_v12 = vld [vmem:[%s10536_s3 + $0x508] sm:$0xff]   ;;  %v10787_v8 = vrot.slane %v8825_v37, 2  ;;  %v1764_v62 = vpack.c.bf16 %v9271_v48, %v9255_v10  ;;  %v1797_v38 = vpack.c.bf16 %v9317_v59, %v9001_v3 }
 0x1db   : > { %v9290_v15 = vsel %vm1380_vm3, %v10785_v16, %v9115_v25  ;;  %v1714_v36 = vrot.slane %v10786_v58, 1  ;;  %v10789_v25 = vld [vmem:[#allocation13_spill] sm:$0xff]  ;;  %v10790_v4 = vmov %v10786_v58  ;;  %6893 = vmatpush3.bf16.msra.mxu0 %v7489_v12 }
 0x1dc   : > { %v1670_v28 = vsel %vm1385_vm4, %v10788_v6, %v10787_v8  ;;  %v1747_v16 = vpack.c.bf16 %v9228_v0, %v10789_v25  ;;  %v1704_v37 = vsel %vm1385_vm4, %v10791_v13, %v10790_v4  ;;  %v10792_v8 = vpack.c.bf16 %v8966_v47, %v8939_v14  ;;  %6603 = vmatpush3.bf16.msra.mxu1 %v7491_v5  ;;  %v7495_v6 = vld [vmem:[%s10536_s3 + $0x1a8] sm:$0xff]   ;;  %v7493_v4 = vld [vmem:[%s10536_s3 + $0x500] sm:$0xff]  }
 0x1dd   : > { %v1679_v51 = vrot.slane %v1670_v28, 1  ;;  %v1713_v58 = vrot.slane %v1704_v37, 1  ;;  %v10793_v28 = vld [vmem:[#allocation18_spill] sm:$0xff]  ;;  %v7497_v14 = vld [vmem:[%s10536_s3 + $0x1e0] sm:$0xff]   ;;  %6894 = vmatprep.subr.bf16.mxu0 %v7492_v39  ;;  %6604 = vmatprep.subr.bf16.mxu1 %v7494_v29  ;;  %v7501_v29 = vld [vmem:[%s10536_s3 + $0x198] sm:$0xff]  }
 0x1de   : > { %3977 = vmatmul.mubr.bf16.gmra.mxu0 %v10792_v8  ;;  %v10794_v39 = vld [vmem:[#allocation12_spill] sm:$0xff]  ;;  %v7503_v37 = vld [vmem:[%s10536_s3 + $0x1d0] sm:$0xff]   ;;  %v7502_v8 = vld [vmem:[%s10536_s3 + $0x628] sm:$0xff]  }
 0x1df   : > { %4082 = vmatprep.mubr.bf16.mxu0 %v10793_v28  ;;  %v9335_v13 = vsel %vm1380_vm3, %v1679_v51, %v1680_v46  ;;  %v9343_v5 = vsel %vm1380_vm3, %v1713_v58, %v1714_v36  ;;  %3571 = vmatmul.mubr.bf16.gmra.mxu1 %v9037_v55  ;;  %v7498_v46 = vld [vmem:[%s10536_s3 + $0x1a0] sm:$0xff]   ;;  %v7499_v51 = vld [vmem:[%s10536_s3 + $0x630] sm:$0xff]   ;;  %v7500_v36 = vld [vmem:[%s10536_s3 + $0x1d8] sm:$0xff]  }
 0x1e0   : > { %v1793_v18 = vpack.c.bf16 %v9335_v13, %v9290_v15  ;;  %v1798_v12 = vpack.c.bf16 %v9343_v5, %v9335_v13  ;;  %6605 = vmatpush3.bf16.msra.mxu1 %v7495_v6  ;;  %3578 = vmatprep.mubr.bf16.mxu1 %v9006_v43  ;;  %v10795_v58 = vld [vmem:[#allocation7_spill] sm:$0xff] }
 0x1e1   : > { %6895 = vmatpush3.bf16.msra.mxu0 %v7493_v4  ;;  %6606 = vmatprep.subr.bf16.mxu1 %v7497_v14  ;;  %v7504_v6 = vld [vmem:[%s10536_s3 + $0x190] sm:$0xff]   ;;  %v7505_v4 = vld [vmem:[%s10536_s3 + $0x620] sm:$0xff]   ;;  %v7506_v14 = vld [vmem:[%s10536_s3 + $0x1c8] sm:$0xff]  }
 0x1e2   : > { %7257 = vmatprep.subr.bf16.mxu0 %v7496_v50 }
 0x1e4   : > { %6607 = vmatpush3.bf16.msra.mxu1 %v7498_v46  ;;  %v7507_v46 = vld [vmem:[%s10536_s3 + $0x188] sm:$0xff]  }
 0x1e5   : > { %6608 = vmatprep.subr.bf16.mxu1 %v7500_v36  ;;  %v7508_v36 = vld [vmem:[%s10536_s3 + $0x618] sm:$0xff]  }
 0x1e6   : > { %4083 = vmatmul.mubr.bf16.vlgmr.msra.gmra.mxu0 %v10794_v39 }
 0x1e7   : > { %4090 = vmatprep.mubr.bf16.mxu0 %v10795_v58  ;;  %7258 = vmatpush3.bf16.msra.mxu0 %v7496_v50  ;;  %v10796_v50 = vld [vmem:[#allocation22_spill] sm:$0xff] }
 0x1e8   : > { %7259 = vmatprep.subr.bf16.mxu0 %v7499_v51  ;;  %3579 = vmatmul.mubr.bf16.gmra.mxu1 %v9064_v11 }
 0x1e9   : > { %6609 = vmatpush3.bf16.msra.mxu1 %v7501_v29  ;;  %3586 = vmatprep.mubr.bf16.mxu1 %v9026_v24  ;;  %v10797_v29 = vpack.c.bf16 %v8463_v35, %v8819_v27  ;;  %v7513_v35 = vld [vmem:[%s10536_s3 + $0x238] sm:$0xff]   ;;  %v10798_v27 = vpack.c.bf16 %v9107_v45, %v8966_v47  ;;  %v7516_v45 = vld [vmem:[%s10536_s3 + $0x230] sm:$0xff]  }
 0x1ea   : > { %6610 = vmatprep.subr.bf16.mxu1 %v7503_v37  ;;  %v7510_v37 = vld [vmem:[%s10536_s3 + $0x180] sm:$0xff]  }
 0x1eb   : > { %7260 = vmatpush3.bf16.msra.mxu0 %v7499_v51  ;;  %v7509_v51 = vld [vmem:[%s10536_s3 + $0x1c0] sm:$0xff]  }
 0x1ec   : > { %7261 = vmatprep.subr.bf16.mxu0 %v7502_v8 }
 0x1ed   : > { %6611 = vmatpush3.bf16.msra.mxu1 %v7504_v6  ;;  %v7512_v6 = vld [vmem:[%s10536_s3 + $0x278] sm:$0xff]  }
 0x1ee   : > { %4091 = vmatmul.mubr.bf16.gmra.mxu0 %v10796_v50  ;;  %6612 = vmatprep.subr.bf16.mxu1 %v7506_v14  ;;  %v7514_v14 = vld [vmem:[%s10536_s3 + $0x608] sm:$0xff]  }
 0x1ef   : > { %4098 = vmatprep.mubr.bf16.mxu0 %v9029_v33  ;;  %7262 = vmatpush3.bf16.msra.mxu0 %v7502_v8  ;;  %v7511_v8 = vld [vmem:[%s10536_s3 + $0x610] sm:$0xff]  }
 0x1f0   : > { %7263 = vmatprep.subr.bf16.mxu0 %v7505_v4  ;;  %3587 = vmatmul.mubr.bf16.gmra.mxu1 %v9086_v31 }
 0x1f1   : > { %6613 = vmatpush3.bf16.msra.mxu1 %v7507_v46  ;;  %3627 = vmatprep.mubr.bf16.mxu1 %v10797_v29  ;;  %v10799_v46 = vld [vmem:[#allocation29_spill] sm:$0xff] }
 0x1f2   : > { %6614 = vmatprep.subr.bf16.mxu1 %v7509_v51  ;;  %v10800_v51 = vld [vmem:[#allocation27_spill] sm:$0xff] }
 0x1f3   : > { %7264 = vmatpush3.bf16.msra.mxu0 %v7505_v4  ;;  %v7515_v4 = vld [vmem:[%s10536_s3 + $0x270] sm:$0xff]   ;;  %v10801_v29 = vpack.c.bf16 %v10799_v46, %v10800_v51  ;;  %v7522_v46 = vld [vmem:[%s10536_s3 + $0x258] sm:$0xff]   ;;  %v10808_v51 = vpack.c.bf16 %v10779_v34, %v10770_v21 }
 0x1f4   : > { %7265 = vmatprep.subr.bf16.mxu0 %v7508_v36 }
 0x1f5   : > { %6615 = vmatpush3.bf16.msra.mxu1 %v7510_v37  ;;  %v10802_v37 = vld [vmem:[#allocation33_spill] sm:$0xff] }
 0x1f6   : > { %4099 = vmatmul.mubr.bf16.gmra.mxu0 %v9054_v52  ;;  %6640 = vmatprep.subr.bf16.mxu1 %v7512_v6  ;;  %v10803_v47 = vpack.c.bf16 %v8601_v63, %v10802_v37  ;;  %v7518_v6 = vld [vmem:[%s10536_s3 + $0x268] sm:$0xff]   ;;  %v10810_v37 = vld [vmem:[#allocation35_spill] sm:$0xff] }
 0x1f7   : > { %4106 = vmatprep.mubr.bf16.mxu0 %v10798_v27  ;;  %7266 = vmatpush3.bf16.msra.mxu0 %v7508_v36  ;;  %v7517_v36 = vld [vmem:[%s10536_s3 + $0x600] sm:$0xff]   ;;  %v7519_v63 = vld [vmem:[%s10536_s3 + $0x228] sm:$0xff]  }
 0x1f8   : > { %7267 = vmatprep.subr.bf16.mxu0 %v7511_v8  ;;  %3628 = vmatmul.mubr.bf16.vlgmr.msra.gmra.mxu1 %v10801_v29  ;;  %v7520_v27 = vld [vmem:[%s10536_s3 + $0x260] sm:$0xff]   ;;  %v7524_v29 = vld [vmem:[%s10536_s3 + $0x250] sm:$0xff]  }
 0x1f9   : > { %6641 = vmatpush3.bf16.msra.mxu1 %v7513_v35  ;;  %3635 = vmatprep.mubr.bf16.mxu1 %v10803_v47  ;;  %v10804_v35 = vpack.c.bf16 %v8684_v26, %v8693_v42  ;;  %v10807_v26 = vpack.c.bf16 %v8750_v49, %v8628_v44  ;;  %v7523_v44 = vld [vmem:[%s10536_s3 + $0x218] sm:$0xff]   ;;  %v10809_v49 = vpack.c.bf16 %v9143_v40, %v9138_v23 }
 0x1fa   : > { %6642 = vmatprep.subr.bf16.mxu1 %v7515_v4  ;;  %v10806_v4 = vld [vmem:[#allocation11_spill] sm:$0xff]  ;;  %v10811_v47 = vpack.c.bf16 %v8852_v57, %v8776_v41  ;;  %v7528_v41 = vld [vmem:[%s10536_s3 + $0x240] sm:$0xff]   ;;  %v10813_v57 = vpack.c.bf16 %v9015_v61, %v8955_v9 }
 0x1fb   : > { %7268 = vmatpush3.bf16.msra.mxu0 %v7511_v8  ;;  %v10805_v8 = vpack.c.bf16 %v9130_v7, %v9125_v30  ;;  %v10814_v9 = vld [vmem:[#allocation32_spill] sm:$0xff] }
 0x1fc   : > { %7269 = vmatprep.subr.bf16.mxu0 %v7514_v14  ;;  %v10815_v61 = vld [vmem:[#allocation8_spill] sm:$0xff] }
 0x1fd   : > { %6643 = vmatpush3.bf16.msra.mxu1 %v7516_v45  ;;  %v7525_v45 = vld [vmem:[%s10536_s3 + $0x210] sm:$0xff]  }
 0x1fe   : > { %4107 = vmatmul.mubr.bf16.gmra.mxu0 %v10804_v35  ;;  %6644 = vmatprep.subr.bf16.mxu1 %v7518_v6  ;;  %v10812_v6 = vpack.c.bf16 %v9191_v17, %v9182_v1  ;;  %v7527_v35 = vld [vmem:[%s10536_s3 + $0x208] sm:$0xff]   ;;  %v7529_v17 = vld [vmem:[%s10536_s3 + $0x200] sm:$0xff]  }
 0x1ff   : > { %7270 = vmatpush3.bf16.msra.mxu0 %v7514_v14  ;;  %7273 = vmatprep.mubr.bf16.mxu0 %v10805_v8  ;;  %v7521_v14 = vld [vmem:[%s10536_s3 + $0x220] sm:$0xff]   ;;  %v7531_v8 = vld [vmem:[%s10536_s3 + $0x2b8] sm:$0xff]  }
 0x200   : > { %7271 = vmatprep.subr.bf16.mxu0 %v7517_v36  ;;  %3636 = vmatmul.mubr.bf16.gmra.mxu1 %v10806_v4  ;;  %v10817_v4 = vpack.c.bf16 %v9040_v56, %v9021_v54  ;;  %v7536_v54 = vld [vmem:[%s10536_s3 + $0x2e0] sm:$0xff]   ;;  %v10818_v56 = vld [vmem:[#allocation19_spill] sm:$0xff] }
 0x201   : > { %6645 = vmatpush3.bf16.msra.mxu1 %v7519_v63  ;;  %3643 = vmatprep.mubr.bf16.mxu1 %v10807_v26  ;;  %v7530_v63 = vld [vmem:[%s10536_s3 + $0x2f8] sm:$0xff]   ;;  %v7533_v26 = vld [vmem:[%s10536_s3 + $0x2b0] sm:$0xff]  }
 0x202   : > { %6646 = vmatprep.subr.bf16.mxu1 %v7520_v27  ;;  %v10816_v27 = vpack.c.bf16 %v10814_v9, %v10815_v61  ;;  %v7548_v9 = vld [vmem:[%s10536_s3 + $0x3f0] sm:$0xff]   ;;  %v10829_v61 = vld [vmem:[#allocation28_spill] sm:$0xff] }
 0x203   : > { %7272 = vmatpush3.bf16.msra.mxu0 %v7517_v36  ;;  %v7526_v36 = vld [vmem:[%s10536_s3 + $0x248] sm:$0xff]  }
 0x205   : > { %6647 = vmatpush3.bf16.msra.mxu1 %v7521_v14  ;;  %v7534_v14 = vld [vmem:[%s10536_s3 + $0x2e8] sm:$0xff]  }
 0x206   : > { %7274 = vmatmul.mubr.bf16.vlgmr.msra.gmra.mxu0 %v10808_v51  ;;  %6648 = vmatprep.subr.bf16.mxu1 %v7522_v46  ;;  %v7535_v46 = vld [vmem:[%s10536_s3 + $0x2a8] sm:$0xff]   ;;  %v10819_v51 = vpack.c.bf16 %v10818_v56, %v10762_v19  ;;  %v7539_v19 = vld [vmem:[%s10536_s3 + $0x298] sm:$0xff]  }
 0x207   : > { %7277 = vmatprep.mubr.bf16.mxu0 %v10809_v49  ;;  %v7537_v49 = vld [vmem:[%s10536_s3 + $0x2a0] sm:$0xff]   ;;  %v7558_v56 = vld [vmem:[%s10536_s3 + $0x3c8] sm:$0xff]  }
 0x208   : > { %3644 = vmatmul.mubr.bf16.gmra.mxu1 %v10810_v37  ;;  %v10822_v37 = vld [vmem:[#allocation5_spill] sm:$0xff] }
 0x209   : > { %6649 = vmatpush3.bf16.msra.mxu1 %v7523_v44  ;;  %3651 = vmatprep.mubr.bf16.mxu1 %v10811_v47  ;;  %v10820_v44 = vpack.c.bf16 %v9067_v53, %v9048_v2  ;;  %v7540_v2 = vld [vmem:[%s10536_s3 + $0x2d0] sm:$0xff]   ;;  %v10821_v53 = vpack.c.bf16 %v10763_v32, %v10752_v60  ;;  %v7543_v60 = vld [vmem:[%s10536_s3 + $0x288] sm:$0xff]   ;;  %v7544_v32 = vld [vmem:[%s10536_s3 + $0x2c0] sm:$0xff]  }
 0x20a   : > { %6650 = vmatprep.subr.bf16.mxu1 %v7524_v29  ;;  %v7538_v29 = vld [vmem:[%s10536_s3 + $0x2d8] sm:$0xff]   ;;  %v10823_v47 = vld [vmem:[#allocation42_spill] sm:$0xff] }
 0x20d   : > { %6651 = vmatpush3.bf16.msra.mxu1 %v7525_v45  ;;  %v10824_v45 = vpack.c.bf16 %v10822_v37, %v10823_v47 }
 0x20e   : > { %7278 = vmatmul.mubr.bf16.gmra.mxu0 %v10812_v6  ;;  %6652 = vmatprep.subr.bf16.mxu1 %v7526_v36  ;;  %v7541_v36 = vld [vmem:[%s10536_s3 + $0x290] sm:$0xff]   ;;  %v7542_v6 = vld [vmem:[%s10536_s3 + $0x2c8] sm:$0xff]  }
 0x210   : > { %3652 = vmatmul.mubr.bf16.gmra.mxu1 %v8932_v22  ;;  %v7532_v22 = vld [vmem:[%s10536_s3 + $0x2f0] sm:$0xff]  }
 0x211   : > { %6653 = vmatpush3.bf16.msra.mxu1 %v7527_v35  ;;  %3692 = vmatprep.mubr.bf16.mxu1 %v10813_v57  ;;  %v10825_v35 = vld [vmem:[#allocation10_spill] sm:$0xff] }
 0x212   : > { %6654 = vmatprep.subr.bf16.mxu1 %v7528_v41  ;;  %v10826_v41 = vld [vmem:[#allocation24_spill] sm:$0xff] }
 0x213   : > { %v10827_v57 = vpack.c.bf16 %v10825_v35, %v10826_v41  ;;  %v7565_v41 = vld [vmem:[%s10536_s3 + $0x4b0] sm:$0xff]  }
 0x215   : > { %6655 = vmatpush3.bf16.msra.mxu1 %v7529_v17  ;;  %v10828_v17 = vld [vmem:[#allocation31_spill] sm:$0xff] }
 0x216   : > { %6680 = vmatprep.subr.bf16.mxu1 %v7530_v63  ;;  %v7545_v63 = vld [vmem:[%s10536_s3 + $0x280] sm:$0xff]  }
 0x218   : > { %3693 = vmatmul.mubr.bf16.vlgmr.msra.gmra.mxu1 %v10816_v27  ;;  %v7549_v27 = vld [vmem:[%s10536_s3 + $0x3b0] sm:$0xff]  }
 0x219   : > { %6681 = vmatpush3.bf16.msra.mxu1 %v7531_v8  ;;  %3700 = vmatprep.mubr.bf16.mxu1 %v10817_v4  ;;  %v7546_v8 = vld [vmem:[%s10536_s3 + $0x3f8] sm:$0xff]   ;;  %v7550_v4 = vld [vmem:[%s10536_s3 + $0x3e8] sm:$0xff]  }
 0x21a   : > { %6682 = vmatprep.subr.bf16.mxu1 %v7532_v22  ;;  %v7547_v22 = vld [vmem:[%s10536_s3 + $0x3b8] sm:$0xff]  }
 0x21d   : > { %6683 = vmatpush3.bf16.msra.mxu1 %v7533_v26  ;;  %v7551_v26 = vld [vmem:[%s10536_s3 + $0x3a8] sm:$0xff]  }
 0x21e   : > { %6684 = vmatprep.subr.bf16.mxu1 %v7534_v14  ;;  %v7552_v14 = vld [vmem:[%s10536_s3 + $0x3e0] sm:$0xff]  }
 0x220   : > { %3701 = vmatmul.mubr.bf16.gmra.mxu1 %v10819_v51 }
 0x221   : > { %6685 = vmatpush3.bf16.msra.mxu1 %v7535_v46  ;;  %3708 = vmatprep.mubr.bf16.mxu1 %v10820_v44  ;;  %v7554_v46 = vld [vmem:[%s10536_s3 + $0x3d8] sm:$0xff]   ;;  %v7559_v44 = vld [vmem:[%s10536_s3 + $0x388] sm:$0xff]  }
 0x222   : > { %6686 = vmatprep.subr.bf16.mxu1 %v7536_v54  ;;  %v7555_v54 = vld [vmem:[%s10536_s3 + $0x398] sm:$0xff]  }
 0x225   : > { %6687 = vmatpush3.bf16.msra.mxu1 %v7537_v49 }
 0x226   : > { %6688 = vmatprep.subr.bf16.mxu1 %v7538_v29 }
 0x228   : > { %3709 = vmatmul.mubr.bf16.gmra.mxu1 %v10821_v53  ;;  %v7562_v53 = vld [vmem:[%s10536_s3 + $0x4f8] sm:$0xff]  }
 0x229   : > { %6689 = vmatpush3.bf16.msra.mxu1 %v7539_v19  ;;  %3716 = vmatprep.mubr.bf16.mxu1 %v10824_v45  ;;  %v10830_v19 = vld [vmem:[#allocation40_spill] sm:$0xff] }
 0x22a   : > { %6690 = vmatprep.subr.bf16.mxu1 %v7540_v2  ;;  %v7561_v2 = vld [vmem:[%s10536_s3 + $0x380] sm:$0xff]  }
 0x22d   : > { %6691 = vmatpush3.bf16.msra.mxu1 %v7541_v36 }
 0x22e   : > { %6692 = vmatprep.subr.bf16.mxu1 %v7542_v6  ;;  %v7564_v6 = vld [vmem:[%s10536_s3 + $0x4f0] sm:$0xff]  }
 0x230   : > { %3717 = vmatmul.mubr.bf16.gmra.mxu1 %v10827_v57 }
 0x231   : > { %6693 = vmatpush3.bf16.msra.mxu1 %v7543_v60  ;;  %3757 = vmatprep.mubr.bf16.mxu1 %v10828_v17  ;;  %v7566_v17 = vld [vmem:[%s10536_s3 + $0x4e8] sm:$0xff]  }
 0x232   : > { %6694 = vmatprep.subr.bf16.mxu1 %v7544_v32 }
 0x235   : > { %6695 = vmatpush3.bf16.msra.mxu1 %v7545_v63 }
 0x236   : > { %6760 = vmatprep.subr.bf16.mxu1 %v7546_v8 }
 0x238   : > { %3758 = vmatmul.mubr.bf16.vlgmr.msra.gmra.mxu1 %v10829_v61  ;;  %v7568_v61 = vld [vmem:[%s10536_s3 + $0x4e0] sm:$0xff]  }
 0x239   : > { %6761 = vmatpush3.bf16.msra.mxu1 %v7547_v22  ;;  %3765 = vmatprep.mubr.bf16.mxu1 %v10793_v28  ;;  %v7553_v28 = vld [vmem:[%s10536_s3 + $0x3a0] sm:$0xff]  }
 0x23a   : > { %6762 = vmatprep.subr.bf16.mxu1 %v7548_v9 }
 0x23d   : > { %6763 = vmatpush3.bf16.msra.mxu1 %v7549_v27 }
 0x23e   : > { %6764 = vmatprep.subr.bf16.mxu1 %v7550_v4 }
 0x240   : > { %3766 = vmatmul.mubr.bf16.gmra.mxu1 %v10794_v39  ;;  %v7556_v39 = vld [vmem:[%s10536_s3 + $0x3d0] sm:$0xff]  }
 0x241   : > { %6765 = vmatpush3.bf16.msra.mxu1 %v7551_v26  ;;  %3773 = vmatprep.mubr.bf16.mxu1 %v10795_v58  ;;  %v7557_v58 = vld [vmem:[%s10536_s3 + $0x390] sm:$0xff]  }
 0x242   : > { %6766 = vmatprep.subr.bf16.mxu1 %v7552_v14  ;;  %v7569_v14 = vld [vmem:[%s10536_s3 + $0x4a0] sm:$0xff]  }
 0x245   : > { %6767 = vmatpush3.bf16.msra.mxu1 %v7553_v28  ;;  %v7570_v28 = vld [vmem:[%s10536_s3 + $0x4d8] sm:$0xff]  }
 0x246   : > { %6768 = vmatprep.subr.bf16.mxu1 %v7554_v46  ;;  %v6496_v51 = vpop.f32.mrf.mxu1 }
 0x248   : > { %3774 = vmatmul.mubr.bf16.gmra.mxu1 %v10796_v50  ;;  %v6497_v50 = vpop.f32.mrf.mxu1 }
 0x249   : > { %6769 = vmatpush3.bf16.msra.mxu1 %v7555_v54  ;;  %3781 = vmatprep.mubr.bf16.mxu1 %v9029_v33  ;;  %v7560_v33 = vld [vmem:[%s10536_s3 + $0x3c0] sm:$0xff]   ;;  %v9613_v49 = vadd.f32 %v6497_v50, %v6496_v51 }
 0x24a   : > { %6770 = vmatprep.subr.bf16.mxu1 %v7556_v39  ;;  %v6499_v29 = vpop.f32.mrf.mxu1 }
 0x24c   : > { %v6500_v47 = vpop.f32.mrf.mxu1 }
 0x24d   : > { %6771 = vmatpush3.bf16.msra.mxu1 %v7557_v58  ;;  %v9623_v45 = vadd.f32 %v6500_v47, %v6499_v29  ;;  %v7572_v58 = vld [vmem:[%s10536_s3 + $0x4d0] sm:$0xff]  }
 0x24e   : > { %6772 = vmatprep.subr.bf16.mxu1 %v7558_v56 }
 0x24f   : > { %v6502_v36 = vpop.f32.mrf.mxu1 }
 0x250   : > { %3782 = vmatmul.mubr.bf16.gmra.mxu1 %v9054_v52  ;;  %v7563_v52 = vld [vmem:[%s10536_s3 + $0x4b8] sm:$0xff]  }
 0x251   : > { %6773 = vmatpush3.bf16.msra.mxu1 %v7559_v44  ;;  %3887 = vmatprep.mubr.bf16.mxu1 %v10830_v19  ;;  %v6503_v60 = vpop.f32.mrf.mxu1  ;;  %v7573_v19 = vld [vmem:[%s10536_s3 + $0x490] sm:$0xff]  }
 0x252   : > { %6774 = vmatprep.subr.bf16.mxu1 %v7560_v33  ;;  %v6736_v32 = vpop.f32.mrf.mxu0  ;;  %v9632_v35 = vadd.f32 %v6503_v60, %v6502_v36  ;;  %v10831_v33 = vld [vmem:[#allocation20_spill] sm:$0xff] }
 0x253   : > { %v6505_v57 = vpop.f32.mrf.mxu1  ;;  %v10832_v50 = vpack.c.bf16 %v8693_v42, %v10831_v33  ;;  %v7575_v42 = vld [vmem:[%s10536_s3 + $0x488] sm:$0xff]   ;;  %v7576_v36 = vld [vmem:[%s10536_s3 + $0x4c0] sm:$0xff]  }
 0x254   : > { %v6737_v63 = vpop.f32.mrf.mxu0 }
 0x255   : > { %6775 = vmatpush3.bf16.msra.mxu1 %v7561_v2  ;;  %v9641_v8 = vadd.f32 %v6737_v63, %v6736_v32  ;;  %v7577_v63 = vld [vmem:[%s10536_s3 + $0x480] sm:$0xff]  }
 0x256   : > { %6840 = vmatprep.subr.bf16.mxu1 %v7562_v53  ;;  %v6739_v22 = vpop.f32.mrf.mxu0  ;;  %v7574_v53 = vld [vmem:[%s10536_s3 + $0x4c8] sm:$0xff]  }
 0x258   : > { %3888 = vmatmul.mubr.bf16.vlgmr.msra.gmra.mxu1 %v9037_v55  ;;  %v6506_v55 = vpop.f32.mrf.mxu1  ;;  %v6740_v27 = vpop.f32.mrf.mxu0 }
 0x259   : > { %6841 = vmatpush3.bf16.msra.mxu1 %v7563_v52  ;;  %3895 = vmatprep.mubr.bf16.mxu1 %v9006_v43  ;;  %v9643_v9 = vadd.f32 %v6506_v55, %v6505_v57  ;;  %v7567_v43 = vld [vmem:[%s10536_s3 + $0x4a8] sm:$0xff]   ;;  %v9651_v4 = vadd.f32 %v6740_v27, %v6739_v22  ;;  %v7578_v22 = vld [vmem:[%s10536_s3 + $0x5f8] sm:$0xff]   ;;  %v7580_v27 = vld [vmem:[%s10536_s3 + $0x5f0] sm:$0xff]  }
 0x25a   : > { %6842 = vmatprep.subr.bf16.mxu1 %v7564_v6  ;;  %v6508_v26 = vpop.f32.mrf.mxu1  ;;  %v10833_v6 = vld [vmem:[#allocation25_spill] sm:$0xff] }
 0x25b   : > { %v10834_v60 = vpack.c.bf16 %v10833_v6, %v10822_v37 }
 0x25c   : > { %v6509_v46 = vpop.f32.mrf.mxu1 }
 0x25d   : > { %6843 = vmatpush3.bf16.msra.mxu1 %v7565_v41  ;;  %v9661_v54 = vadd.f32 %v6509_v46, %v6508_v26  ;;  %v10835_v41 = vld [vmem:[#allocation30_spill] sm:$0xff] }
 0x25e   : > { %6844 = vmatprep.subr.bf16.mxu1 %v7566_v17  ;;  %v6511_v39 = vpop.f32.mrf.mxu1  ;;  %v10836_v57 = vpack.c.bf16 %v9125_v30, %v10835_v41  ;;  %v7579_v30 = vld [vmem:[%s10536_s3 + $0x5b8] sm:$0xff]   ;;  %v10837_v46 = vld [vmem:[#allocation6_spill] sm:$0xff] }
 0x260   : > { %3896 = vmatmul.mubr.bf16.gmra.mxu1 %v9064_v11  ;;  %v7571_v11 = vld [vmem:[%s10536_s3 + $0x498] sm:$0xff]   ;;  %v6512_v56 = vpop.f32.mrf.mxu1 }
 0x261   : > { %6845 = vmatpush3.bf16.msra.mxu1 %v7567_v43  ;;  %3903 = vmatprep.mubr.bf16.mxu1 %v9026_v24  ;;  %v9669_v51 = vadd.f32 %v6512_v56, %v6511_v39  ;;  %v10838_v39 = vpack.c.bf16 %v10789_v25, %v10837_v46  ;;  %v10844_v25 = vld [vmem:[#allocation36_spill] sm:$0xff] }
 0x262   : > { %6846 = vmatprep.subr.bf16.mxu1 %v7568_v61  ;;  %v6742_v24 = vpop.f32.mrf.mxu0 }
 0x264   : > { %v6743_v44 = vpop.f32.mrf.mxu0 }
 0x265   : > { %6847 = vmatpush3.bf16.msra.mxu1 %v7569_v14  ;;  %v9675_v29 = vadd.f32 %v6743_v44, %v6742_v24  ;;  %v10839_v24 = vpack.c.bf16 %v10770_v21, %v9130_v7  ;;  %v7582_v44 = vld [vmem:[%s10536_s3 + $0x5e8] sm:$0xff]  }
 0x266   : > { %6848 = vmatprep.subr.bf16.mxu1 %v7570_v28  ;;  %v6745_v2 = vpop.f32.mrf.mxu0  ;;  %v7583_v7 = vld [vmem:[%s10536_s3 + $0x5a8] sm:$0xff]  }
 0x268   : > { %3904 = vmatmul.mubr.bf16.gmra.mxu1 %v9086_v31  ;;  %v6746_v47 = vpop.f32.mrf.mxu0 }
 0x269   : > { %6849 = vmatpush3.bf16.msra.mxu1 %v7571_v11  ;;  %3911 = vmatprep.mubr.bf16.mxu1 %v10832_v50  ;;  %v9683_v31 = vadd.f32 %v6746_v47, %v6745_v2  ;;  %v6514_v52 = vpop.f32.mrf.mxu1 }
 0x26a   : > { %6850 = vmatprep.subr.bf16.mxu1 %v7572_v58  ;;  %v7581_v58 = vld [vmem:[%s10536_s3 + $0x5b0] sm:$0xff]  }
 0x26b   : > { %v6515_v32 = vpop.f32.mrf.mxu1 }
 0x26c   : > { %v9697_v17 = vadd.f32 %v6515_v32, %v6514_v52 }
 0x26d   : > { %6851 = vmatpush3.bf16.msra.mxu1 %v7573_v19  ;;  %v6517_v55 = vpop.f32.mrf.mxu1 }
 0x26e   : > { %6852 = vmatprep.subr.bf16.mxu1 %v7574_v53 }
 0x26f   : > { %v6518_v37 = vpop.f32.mrf.mxu1 }
 0x270   : > { %3912 = vmatmul.mubr.bf16.gmra.mxu1 %v10834_v60  ;;  %v9705_v61 = vadd.f32 %v6518_v37, %v6517_v55 }
 0x271   : > { %6853 = vmatpush3.bf16.msra.mxu1 %v7575_v42  ;;  %4017 = vmatprep.mubr.bf16.mxu1 %v10836_v57  ;;  %v6748_v43 = vpop.f32.mrf.mxu0  ;;  %v7584_v42 = vld [vmem:[%s10536_s3 + $0x5e0] sm:$0xff]   ;;  %v10841_v57 = vpack.c.bf16 %v9138_v23, %v10779_v34  ;;  %v7587_v34 = vld [vmem:[%s10536_s3 + $0x598] sm:$0xff]  }
 0x272   : > { %6854 = vmatprep.subr.bf16.mxu1 %v7576_v36 }
 0x273   : > { %v6749_v26 = vpop.f32.mrf.mxu0 }
 0x274   : > { %v9713_v14 = vadd.f32 %v6749_v26, %v6748_v43 }
 0x275   : > { %6855 = vmatpush3.bf16.msra.mxu1 %v7577_v63  ;;  %v6536_v28 = vpop.f32.mrf.mxu1  ;;  %v6751_v11 = vpop.f32.mrf.mxu0  ;;  %v7585_v63 = vld [vmem:[%s10536_s3 + $0x5a0] sm:$0xff]  }
 0x276   : > { %6920 = vmatprep.subr.bf16.mxu1 %v7578_v22  ;;  %v7586_v22 = vld [vmem:[%s10536_s3 + $0x5d8] sm:$0xff]  }
 0x277   : > { %v6537_v56 = vpop.f32.mrf.mxu1  ;;  %v6752_v33 = vpop.f32.mrf.mxu0 }
 0x278   : > { %4018 = vmatmul.mubr.bf16.vlgmr.msra.gmra.mxu1 %v10838_v39  ;;  %v6538_v50 = vadd.f32 %v6537_v56, %v6536_v28  ;;  %v9727_v19 = vadd.f32 %v6752_v33, %v6751_v11  ;;  %v7588_v28 = vld [vmem:[%s10536_s3 + $0x5d0] sm:$0xff]   ;;  %v10843_v56 = vpack.c.bf16 %v9182_v1, %v9143_v40  ;;  %v7591_v40 = vld [vmem:[%s10536_s3 + $0x588] sm:$0xff]  }
 0x279   : > { %6921 = vmatpush3.bf16.msra.mxu1 %v7579_v30  ;;  %4025 = vmatprep.mubr.bf16.mxu1 %v10839_v24  ;;  %v6539_v2 = vpop.f32.mrf.mxu1  ;;  %v6754_v53 = vpop.f32.mrf.mxu0  ;;  %v10842_v24 = vpack.c.bf16 %v9277_v20, %v9271_v48 }
 0x27a   : > { %6922 = vmatprep.subr.bf16.mxu1 %v7580_v27  ;;  %v9730_v47 = vadd.f32 %v6538_v50, %v9613_v49  ;;  %v10840_v49 = vpack.c.bf16 %v9255_v10, %v9228_v0  ;;  %v7590_v50 = vld [vmem:[%s10536_s3 + $0x5c8] sm:$0xff]  }
 0x27b   : > { %v6540_v21 = vpop.f32.mrf.mxu1  ;;  %v6755_v52 = vpop.f32.mrf.mxu0 }
 0x27c   : > { %v6541_v36 = vadd.f32 %v6540_v21, %v6539_v2  ;;  %v9738_v6 = vadd.f32 %v6755_v52, %v6754_v53 }
 0x27d   : > { %6923 = vmatpush3.bf16.msra.mxu1 %v7581_v58  ;;  %v6542_v60 = vpop.f32.mrf.mxu1  ;;  %v6757_v32 = vpop.f32.mrf.mxu0 }
 0x27e   : > { %6924 = vmatprep.subr.bf16.mxu1 %v7582_v44  ;;  %v9744_v41 = vadd.f32 %v6541_v36, %v9623_v45  ;;  %v7589_v44 = vld [vmem:[%s10536_s3 + $0x590] sm:$0xff]  }
 0x27f   : > { %v6543_v55 = vpop.f32.mrf.mxu1  ;;  %v6758_v37 = vpop.f32.mrf.mxu0 }
 0x280   : > { %4026 = vmatmul.mubr.bf16.gmra.mxu1 %v10840_v49  ;;  %v6544_v43 = vadd.f32 %v6543_v55, %v6542_v60  ;;  %v9755_v30 = vadd.f32 %v6758_v37, %v6757_v32  ;;  %v7593_v32 = vld [vmem:[%s10536_s3 + $0x580] sm:$0xff]  }
 0x281   : > { %6925 = vmatpush3.bf16.msra.mxu1 %v7583_v7  ;;  %4033 = vmatprep.mubr.bf16.mxu1 %v10841_v57  ;;  %v6545_v45 = vpop.f32.mrf.mxu1  ;;  %v9757_v27 = vpop.f32.mrf.mxu0 }
 0x282   : > { %6926 = vmatprep.subr.bf16.mxu1 %v7584_v42  ;;  %v9760_v23 = vadd.f32 %v6544_v43, %v9632_v35  ;;  %v7592_v42 = vld [vmem:[%s10536_s3 + $0x5c0] sm:$0xff]  }
 0x283   : > { %v6546_v26 = vpop.f32.mrf.mxu1  ;;  %v9768_v46 = vpop.f32.mrf.mxu0 }
 0x284   : > { %v6547_v39 = vadd.f32 %v6546_v26, %v6545_v45 }
 0x285   : > { %6927 = vmatpush3.bf16.msra.mxu1 %v7585_v63  ;;  %v6548_v11 = vpop.f32.mrf.mxu1  ;;  %v9773_v35 = vpop.f32.mrf.mxu0 }
 0x286   : > { %6928 = vmatprep.subr.bf16.mxu1 %v7586_v22  ;;  %v9776_v58 = vadd.f32 %v6547_v39, %v9643_v9 }
 0x287   : > { %v6549_v33 = vpop.f32.mrf.mxu1  ;;  %v9787_v2 = vpop.f32.mrf.mxu0 }
 0x288   : > { %4034 = vmatmul.mubr.bf16.gmra.mxu1 %v10842_v24  ;;  %v6550_v53 = vadd.f32 %v6549_v33, %v6548_v11 }
 0x289   : > { %6929 = vmatpush3.bf16.msra.mxu1 %v7587_v34  ;;  %4041 = vmatprep.mubr.bf16.mxu1 %v10843_v56  ;;  %v6551_v9 = vpop.f32.mrf.mxu1  ;;  %v9789_v7 = vpop.f32.mrf.mxu0 }
 0x28a   : > { %6930 = vmatprep.subr.bf16.mxu1 %v7588_v28  ;;  %v9792_v21 = vadd.f32 %v6550_v53, %v9661_v54 }
 0x28b   : > { %v6552_v1 = vpop.f32.mrf.mxu1  ;;  %v9800_v52 = vpop.f32.mrf.mxu0 }
 0x28c   : > { %v6553_v36 = vadd.f32 %v6552_v1, %v6551_v9 }
 0x28d   : > { %6931 = vmatpush3.bf16.msra.mxu1 %v7589_v44  ;;  %v9805_v54 = vpop.f32.mrf.mxu0 }
 0x28e   : > { %6932 = vmatprep.subr.bf16.mxu1 %v7590_v50  ;;  %v6554_v60 = vpop.f32.mrf.mxu1  ;;  %v9808_v49 = vadd.f32 %v6553_v36, %v9669_v51  ;;  %v10848_v36 = vld [vmem:[#allocation37_spill] sm:$0xff] }
 0x28f   : > { %v9816_v63 = vpop.f32.mrf.mxu0 }
 0x290   : > { %4042 = vmatmul.mubr.bf16.gmra.mxu1 %v1793_v18  ;;  %v6555_v57 = vpop.f32.mrf.mxu1 }
 0x291   : > { %6933 = vmatpush3.bf16.msra.mxu1 %v7591_v40  ;;  %4147 = vmatprep.mubr.bf16.mxu1 %v1747_v16  ;;  %v6556_v55 = vadd.f32 %v6555_v57, %v6554_v60  ;;  %v6828_v22 = vpop.f32.mrf.mxu0  ;;  %v10845_v16 = vld [vmem:[#allocation34_spill] sm:$0xff] }
 0x292   : > { %6934 = vmatprep.subr.bf16.mxu1 %v7592_v42  ;;  %v6557_v18 = vpop.f32.mrf.mxu1  ;;  %v10846_v26 = vpack.c.bf16 %v10844_v25, %v10845_v16  ;;  %v10852_v16 = vld [vmem:[#allocation39_spill] sm:$0xff] }
 0x293   : > { %v3524_v37 = vadd.f32 %v6556_v55, %v9697_v17  ;;  %v6829_v43 = vpop.f32.mrf.mxu0 }
 0x294   : > { %v6558_v51 = vpop.f32.mrf.mxu1  ;;  %v9819_v34 = vadd.f32 %v6829_v43, %v6828_v22 }
 0x295   : > { %6935 = vmatpush3.bf16.msra.mxu1 %v7593_v32  ;;  %v6559_v45 = vadd.f32 %v6558_v51, %v6557_v18  ;;  %v6831_v28 = vpop.f32.mrf.mxu0 }
 0x297   : > { %v6576_v0 = vpop.f32.mrf.mxu1  ;;  %v3527_v39 = vadd.f32 %v6559_v45, %v9705_v61  ;;  %v6832_v17 = vpop.f32.mrf.mxu0  ;;  %v10847_v61 = vld [vmem:[#allocation38_spill] sm:$0xff] }
 0x298   : > { %4148 = vmatmul.mubr.bf16.vlgmr.msra.gmra.mxu1 %v10846_v26  ;;  %v9828_v56 = vadd.f32 %v6832_v17, %v6831_v28  ;;  %v10849_v60 = vpack.c.bf16 %v10847_v61, %v10848_v36 }
 0x299   : > { %4155 = vmatprep.mubr.bf16.mxu1 %v1764_v62  ;;  %v6577_v11 = vpop.f32.mrf.mxu1  ;;  %v10850_v62 = vpack.c.bf16 %v9290_v15, %v9277_v20 }
 0x29a   : > { %v6578_v24 = vadd.f32 %v6577_v11, %v6576_v0 }
 0x29b   : > { %v6579_v44 = vpop.f32.mrf.mxu1 }
 0x29c   : > { %v3565_v50 = vadd.f32 %v6578_v24, %v9730_v47 }
 0x29d   : > { %v6580_v53 = vpop.f32.mrf.mxu1 }
 0x29e   : > { %v6834_v33 = vpop.f32.mrf.mxu0  ;;  %v6581_v40 = vadd.f32 %v6580_v53, %v6579_v44 }
 0x29f   : > { %v6582_v42 = vpop.f32.mrf.mxu1 }
 0x2a0   : > { %v6835_v9 = vpop.f32.mrf.mxu0  ;;  %4156 = vmatmul.mubr.bf16.gmra.mxu1 %v10849_v60  ;;  %v3568_v48 = vadd.f32 %v6581_v40, %v9744_v41  ;;  %v10851_v41 = vld [vmem:[#allocation41_spill] sm:$0xff] }
 0x2a1   : > { %v9831_v1 = vadd.f32 %v6835_v9, %v6834_v33  ;;  %4163 = vmatprep.mubr.bf16.mxu1 %v10850_v62  ;;  %v6583_v32 = vpop.f32.mrf.mxu1  ;;  %v10853_v26 = vpack.c.bf16 %v10851_v41, %v10852_v16 }
 0x2a2   : > { %v6837_v10 = vpop.f32.mrf.mxu0  ;;  %v6584_v47 = vadd.f32 %v6583_v32, %v6582_v42 }
 0x2a3   : > { %v6585_v18 = vpop.f32.mrf.mxu1 }
 0x2a4   : > { %v6838_v57 = vpop.f32.mrf.mxu0  ;;  %v3573_v51 = vadd.f32 %v6584_v47, %v9760_v23 }
 0x2a5   : > { %v9840_v55 = vadd.f32 %v6838_v57, %v6837_v10  ;;  %v6586_v43 = vpop.f32.mrf.mxu1 }
 0x2a6   : > { %v9842_v22 = vpop.f32.mrf.mxu0  ;;  %v6587_v0 = vadd.f32 %v6586_v43, %v6585_v18 }
 0x2a8   : > { %v9845_v45 = vpop.f32.mrf.mxu0  ;;  %v6588_v25 = vpop.f32.mrf.mxu1  ;;  %4164 = vmatmul.mubr.bf16.gmra.mxu1 %v10853_v26  ;;  %v3576_v15 = vadd.f32 %v6587_v0, %v9776_v58 }
 0x2a9   : > { %4171 = vmatprep.mubr.bf16.mxu1 %v1798_v12 }
 0x2aa   : > { %v9850_v20 = vpop.f32.mrf.mxu0  ;;  %v6589_v28 = vpop.f32.mrf.mxu1 }
 0x2ab   : > { %v6590_v23 = vadd.f32 %v6589_v28, %v6588_v25 }
 0x2ac   : > { %v9856_v11 = vpop.f32.mrf.mxu0  ;;  %v6591_v17 = vpop.f32.mrf.mxu1 }
 0x2ad   : > { %v3581_v44 = vadd.f32 %v6590_v23, %v9792_v21 }
 0x2ae   : > { %v9858_v24 = vpop.f32.mrf.mxu0  ;;  %v6592_v33 = vpop.f32.mrf.mxu1 }
 0x2af   : > { %v6593_v9 = vadd.f32 %v6592_v33, %v6591_v17 }
 0x2b0   : > { %v9861_v53 = vpop.f32.mrf.mxu0  ;;  %v6594_v40 = vpop.f32.mrf.mxu1  ;;  %4172 = vmatmul.mubr.bf16.gmra.mxu1 %v1797_v38 }
 0x2b1   : > { %v3584_v5 = vadd.f32 %v6593_v9, %v9808_v49 }
 0x2b2   : > { %v9866_v13 = vpop.f32.mrf.mxu0  ;;  %v6595_v12 = vpop.f32.mrf.mxu1 }
 0x2b3   : > { %v6596_v42 = vadd.f32 %v6595_v12, %v6594_v40 }
 0x2b4   : > { %v9869_v58 = vpop.f32.mrf.mxu0  ;;  %v6597_v61 = vpop.f32.mrf.mxu1 }
 0x2b5   : > { %v3589_v21 = vadd.f32 %v6596_v42, %v3524_v37 }
 0x2b6   : > { %v9871_v36 = vpop.f32.mrf.mxu0  ;;  %v6598_v60 = vpop.f32.mrf.mxu1 }
 0x2b7   : > { %v6599_v62 = vadd.f32 %v6598_v60, %v6597_v61 }
 0x2b8   : > { %v9873_v10 = vpop.f32.mrf.mxu0  ;;  %v6616_v32 = vpop.f32.mrf.mxu1 }
 0x2b9   : > { %v3592_v3 = vadd.f32 %v6599_v62, %v3527_v39 }
 0x2ba   : > { %v9875_v57 = vpop.f32.mrf.mxu0  ;;  %v6617_v59 = vpop.f32.mrf.mxu1 }
 0x2bb   : > { %v6618_v49 = vadd.f32 %v6617_v59, %v6616_v32 }
 0x2bc   : > { %v9877_v38 = vpop.f32.mrf.mxu0  ;;  %v6619_v47 = vpop.f32.mrf.mxu1 }
 0x2bd   : > { %10854 = vst [vmem:[#allocation14_spill] sm:$0xff] %v9877_v38  ;;  %v3630_v43 = vadd.f32 %v6618_v49, %v3565_v50 }
 0x2be   : > { %v6914_v18 = vpop.f32.mrf.mxu0  ;;  %v6620_v0 = vpop.f32.mrf.mxu1 }
 0x2bf   : > { %v6621_v41 = vadd.f32 %v6620_v0, %v6619_v47 }
 0x2c0   : > { %v6915_v25 = vpop.f32.mrf.mxu0  ;;  %v6622_v37 = vpop.f32.mrf.mxu1 }
 0x2c1   : > { %v9879_v16 = vadd.f32 %v6915_v25, %v6914_v18  ;;  %v3633_v28 = vadd.f32 %v6621_v41, %v3568_v48 }
 0x2c2   : > { %v6917_v26 = vpop.f32.mrf.mxu0  ;;  %v6623_v23 = vpop.f32.mrf.mxu1 }
 0x2c3   : > { %v6624_v33 = vadd.f32 %v6623_v23, %v6622_v37 }
 0x2c4   : > { %v6918_v17 = vpop.f32.mrf.mxu0  ;;  %v6625_v39 = vpop.f32.mrf.mxu1 }
 0x2c5   : > { %v9881_v9 = vadd.f32 %v6918_v17, %v6917_v26  ;;  %v3638_v40 = vadd.f32 %v6624_v33, %v3573_v51  ;;  %v7594_v51 = vld [vmem:[%s10538_s5 + $0x78] sm:$0xff]   ;;  %v7598_v33 = vld [vmem:[%s10538_s5 + $0x70] sm:$0xff]  }
 0x2c6   : > { %v6626_v12 = vpop.f32.mrf.mxu1  ;;  %6972 = vmatprep.subr.bf16.mxu1 %v7594_v51  ;;  %v7603_v51 = vld [vmem:[%s10538_s5 + $0xe8] sm:$0xff]  }
 0x2c7   : > { %v6627_v42 = vadd.f32 %v6626_v12, %v6625_v39  ;;  %v7599_v39 = vld [vmem:[%s10538_s5 + $0xf0] sm:$0xff]  }
 0x2c8   : > { %v6628_v61 = vpop.f32.mrf.mxu1  ;;  %v7600_v12 = vld [vmem:[%s10538_s5 + $0x30] sm:$0xff]  }
 0x2c9   : > { %v3641_v60 = vadd.f32 %v6627_v42, %v3576_v15  ;;  %v7595_v15 = vld [vmem:[%s10538_s5 + $0xf8] sm:$0xff]  }
 0x2ca   : > { %v6629_v50 = vpop.f32.mrf.mxu1  ;;  %6994 = vmatprep.subr.bf16.mxu0 %v7595_v15 }
 0x2cb   : > { %v6630_v62 = vadd.f32 %v6629_v50, %v6628_v61  ;;  %v7601_v61 = vld [vmem:[%s10538_s5 + $0xb0] sm:$0xff]  }
 0x2cc   : > { %v6631_v32 = vpop.f32.mrf.mxu1 }
 0x2cd   : > { %v3646_v59 = vadd.f32 %v6630_v62, %v3581_v44  ;;  %v7596_v44 = vld [vmem:[%s10538_s5 + $0x38] sm:$0xff]  }
 0x2ce   : > { %v6632_v49 = vpop.f32.mrf.mxu1  ;;  %6973 = vmatpush3.bf16.msra.mxu1 %v7596_v44 }
 0x2cf   : > { %v6633_v47 = vadd.f32 %v6632_v49, %v6631_v32  ;;  %6974 = vmatprep.subr.bf16.mxu1 %v7598_v33 }
 0x2d0   : > { %v6634_v18 = vpop.f32.mrf.mxu1 }
 0x2d1   : > { %v9883_v0 = vadd.f32 %v6633_v47, %v3584_v5  ;;  %v7597_v5 = vld [vmem:[%s10538_s5 + $0xb8] sm:$0xff]  }
 0x2d2   : > { %v6635_v48 = vpop.f32.mrf.mxu1  ;;  %6995 = vmatpush3.bf16.msra.mxu0 %v7597_v5  ;;  %6975 = vmatpush3.bf16.msra.mxu1 %v7600_v12 }
 0x2d3   : > { %v6636_v25 = vadd.f32 %v6635_v48, %v6634_v18  ;;  %6996 = vmatprep.subr.bf16.mxu0 %v7599_v39 }
 0x2d4   : > { %v6637_v41 = vpop.f32.mrf.mxu1 }
 0x2d5   : > { %v9885_v37 = vadd.f32 %v6636_v25, %v3589_v21 }
 0x2d6   : > { %v6638_v26 = vpop.f32.mrf.mxu1  ;;  %6997 = vmatpush3.bf16.msra.mxu0 %v7601_v61  ;;  %v7606_v61 = vld [vmem:[%s10538_s5 + $0x60] sm:$0xff]  }
 0x2d7   : > { %v6639_v23 = vadd.f32 %v6638_v26, %v6637_v41  ;;  %v7602_v41 = vld [vmem:[%s10538_s5 + $0x68] sm:$0xff]   ;;  %6998 = vmatprep.subr.bf16.mxu0 %v7603_v51  ;;  %v7614_v51 = vld [vmem:[%s10538_s5 + $0x50] sm:$0xff]  }
 0x2d8   : > { %v6656_v21 = vpop.f32.mrf.mxu1  ;;  %6976 = vmatprep.subr.bf16.mxu1 %v7602_v41 }
 0x2d9   : > { %v9899_v17 = vadd.f32 %v6639_v23, %v3592_v3 }
 0x2da   : > { %v6657_v42 = vpop.f32.mrf.mxu1 }
 0x2db   : > { %v6658_v50 = vadd.f32 %v6657_v42, %v6656_v21 }
 0x2dc   : > { %v6659_v3 = vpop.f32.mrf.mxu1 }
 0x2dd   : > { %v9913_v62 = vadd.f32 %v6658_v50, %v3630_v43  ;;  %v7604_v43 = vld [vmem:[%s10538_s5 + $0x28] sm:$0xff]   ;;  %v7608_v50 = vld [vmem:[%s10538_s5 + $0x20] sm:$0xff]  }
 0x2de   : > { %v6660_v32 = vpop.f32.mrf.mxu1  ;;  %6977 = vmatpush3.bf16.msra.mxu1 %v7604_v43  ;;  %v7615_v43 = vld [vmem:[%s10538_s5 + $0xd0] sm:$0xff]  }
 0x2df   : > { %v6661_v49 = vadd.f32 %v6660_v32, %v6659_v3  ;;  %v7611_v32 = vld [vmem:[%s10538_s5 + $0xd8] sm:$0xff]   ;;  %6978 = vmatprep.subr.bf16.mxu1 %v7606_v61 }
 0x2e0   : > { %v6662_v47 = vpop.f32.mrf.mxu1 }
 0x2e1   : > { %v9915_v18 = vadd.f32 %v6661_v49, %v3633_v28  ;;  %v7605_v28 = vld [vmem:[%s10538_s5 + $0xa8] sm:$0xff]  }
 0x2e2   : > { %v6663_v48 = vpop.f32.mrf.mxu1  ;;  %6999 = vmatpush3.bf16.msra.mxu0 %v7605_v28  ;;  %6979 = vmatpush3.bf16.msra.mxu1 %v7608_v50  ;;  %v7620_v50 = vld [vmem:[%s10538_s5 + $0x8] sm:$0xff]  }
 0x2e3   : > { %v6664_v25 = vadd.f32 %v6663_v48, %v6662_v47  ;;  %v7612_v48 = vld [vmem:[%s10538_s5 + $0x18] sm:$0xff]  }
 0x2e4   : > { %v6665_v15 = vpop.f32.mrf.mxu1 }
 0x2e5   : > { %v9929_v44 = vadd.f32 %v6664_v25, %v3638_v40  ;;  %v7607_v40 = vld [vmem:[%s10538_s5 + $0xe0] sm:$0xff]   ;;  %v7613_v25 = vld [vmem:[%s10538_s5 + $0x98] sm:$0xff]  }
 0x2e6   : > { %v6666_v26 = vpop.f32.mrf.mxu1  ;;  %7000 = vmatprep.subr.bf16.mxu0 %v7607_v40 }
 0x2e7   : > { %v6667_v5 = vadd.f32 %v6666_v26, %v6665_v15 }
 0x2e8   : > { %v6668_v23 = vpop.f32.mrf.mxu1 }
 0x2e9   : > { %v9931_v21 = vadd.f32 %v6667_v5, %v3641_v60  ;;  %v7609_v60 = vld [vmem:[%s10538_s5 + $0xa0] sm:$0xff]   ;;  %v7617_v5 = vld [vmem:[%s10538_s5 + $0x90] sm:$0xff]  }
 0x2ea   : > { %v6669_v33 = vpop.f32.mrf.mxu1  ;;  %7001 = vmatpush3.bf16.msra.mxu0 %v7609_v60  ;;  %v7622_v60 = vld [vmem:[%s10538_s5 + $0x40] sm:$0xff]  }
 0x2eb   : > { %v6670_v39 = vadd.f32 %v6669_v33, %v6668_v23  ;;  %7002 = vmatprep.subr.bf16.mxu0 %v7611_v32  ;;  %v7618_v33 = vld [vmem:[%s10538_s5 + $0x48] sm:$0xff]  }
 0x2ec   : > { %v6671_v12 = vpop.f32.mrf.mxu1 }
 0x2ed   : > { %v9933_v42 = vadd.f32 %v6670_v39, %v3646_v59  ;;  %v7610_v59 = vld [vmem:[%s10538_s5 + $0x58] sm:$0xff]   ;;  %v7619_v39 = vld [vmem:[%s10538_s5 + $0xc8] sm:$0xff]  }
 0x2ee   : > { %v6672_v3 = vpop.f32.mrf.mxu1  ;;  %6980 = vmatprep.subr.bf16.mxu1 %v7610_v59  ;;  %7003 = vmatpush3.bf16.msra.mxu0 %v7613_v25  ;;  %v7623_v59 = vld [vmem:[%s10538_s5 + $0xc0] sm:$0xff]  }
 0x2ef   : > { %v6673_v49 = vadd.f32 %v6672_v3, %v6671_v12  ;;  %6981 = vmatpush3.bf16.msra.mxu1 %v7612_v48  ;;  %7004 = vmatprep.subr.bf16.mxu0 %v7615_v43  ;;  %v7624_v48 = vld [vmem:[%s10538_s5] sm:$0xff]   ;;  %v7627_v43 = vld [vmem:[%s10538_s5 + $0x1f8] sm:$0xff]  }
 0x2f0   : > { %v6674_v47 = vpop.f32.mrf.mxu1  ;;  %6982 = vmatprep.subr.bf16.mxu1 %v7614_v51  ;;  %v7626_v51 = vld [vmem:[%s10538_s5 + $0x178] sm:$0xff]  }
 0x2f1   : > { %v9960_v41 = vadd.f32 %v6673_v49, %v9883_v0  ;;  %v7616_v0 = vld [vmem:[%s10538_s5 + $0x10] sm:$0xff]  }
 0x2f2   : > { %v6675_v15 = vpop.f32.mrf.mxu1  ;;  %7005 = vmatpush3.bf16.msra.mxu0 %v7617_v5 }
 0x2f3   : > { %v6676_v28 = vadd.f32 %v6675_v15, %v6674_v47  ;;  %6983 = vmatpush3.bf16.msra.mxu1 %v7616_v0  ;;  %7006 = vmatprep.subr.bf16.mxu0 %v7619_v39 }
 0x2f4   : > { %v6677_v26 = vpop.f32.mrf.mxu1  ;;  %6984 = vmatprep.subr.bf16.mxu1 %v7618_v33 }
 0x2f5   : > { %v3719_v23 = vadd.f32 %v6676_v28, %v9885_v37  ;;  %v7621_v37 = vld [vmem:[%s10538_s5 + $0x88] sm:$0xff]  }
 0x2f6   : > { %v6678_v12 = vpop.f32.mrf.mxu1  ;;  %7007 = vmatpush3.bf16.msra.mxu0 %v7621_v37 }
 0x2f7   : > { %v6679_v61 = vadd.f32 %v6678_v12, %v6677_v26  ;;  %6985 = vmatpush3.bf16.msra.mxu1 %v7620_v50  ;;  %7008 = vmatprep.subr.bf16.mxu0 %v7623_v59 }
 0x2f8   : > { %v6696_v40 = vpop.f32.mrf.mxu1  ;;  %6986 = vmatprep.subr.bf16.mxu1 %v7622_v60 }
 0x2f9   : > { %v3722_v3 = vadd.f32 %v6679_v61, %v9899_v17  ;;  %v7625_v17 = vld [vmem:[%s10538_s5 + $0x80] sm:$0xff]  }
 0x2fa   : > { %v6697_v32 = vpop.f32.mrf.mxu1  ;;  %7009 = vmatpush3.bf16.msra.mxu0 %v7625_v17 }
 0x2fb   : > { %v6698_v49 = vadd.f32 %v6697_v32, %v6696_v40  ;;  %6987 = vmatpush3.bf16.msra.mxu1 %v7624_v48  ;;  %7038 = vmatprep.subr.bf16.mxu0 %v7627_v43 }
 0x2fc   : > { %v6699_v47 = vpop.f32.mrf.mxu1  ;;  %7016 = vmatprep.subr.bf16.mxu1 %v7626_v51 }
 0x2fd   : > { %v3760_v25 = vadd.f32 %v6698_v49, %v9913_v62 }
 0x2fe   : > { %v6700_v15 = vpop.f32.mrf.mxu1 }
 0x2ff   : > { %v6701_v28 = vadd.f32 %v6700_v15, %v6699_v47  ;;  %v10008_v26 = vadd.f32 %v9641_v8, %v3760_v25 }
 0x300   : > { %v6702_v0 = vpop.f32.mrf.mxu1 }
 0x301   : > { %v3763_v62 = vadd.f32 %v6701_v28, %v9915_v18 }
 0x302   : > { %v6703_v5 = vpop.f32.mrf.mxu1 }
 0x303   : > { %v6704_v33 = vadd.f32 %v6703_v5, %v6702_v0  ;;  %v10012_v39 = vadd.f32 %v9651_v4, %v3763_v62 }
 0x304   : > { %v6705_v12 = vpop.f32.mrf.mxu1 }
 0x305   : > { %v3768_v61 = vadd.f32 %v6704_v33, %v9929_v44 }
 0x306   : > { %v6706_v40 = vpop.f32.mrf.mxu1 }
 0x307   : > { %v6707_v50 = vadd.f32 %v6706_v40, %v6705_v12  ;;  %v10016_v8 = vadd.f32 %v9675_v29, %v3768_v61 }
 0x308   : > { %v6708_v37 = vpop.f32.mrf.mxu1 }
 0x309   : > { %v3771_v60 = vadd.f32 %v6707_v50, %v9931_v21 }
 0x30a   : > { %v6709_v59 = vpop.f32.mrf.mxu1 }
 0x30b   : > { %v6710_v18 = vadd.f32 %v6709_v59, %v6708_v37  ;;  %v10020_v32 = vadd.f32 %v9683_v31, %v3771_v60 }
 0x30c   : > { %v6711_v49 = vpop.f32.mrf.mxu1 }
 0x30d   : > { %v3776_v4 = vadd.f32 %v6710_v18, %v9933_v42 }
 0x30e   : > { %v6712_v47 = vpop.f32.mrf.mxu1 }
 0x30f   : > { %v6713_v48 = vadd.f32 %v6712_v47, %v6711_v49  ;;  %v3841_v44 = vadd.f32 %v9713_v14, %v3776_v4 }
 0x310   : > { %v6714_v17 = vpop.f32.mrf.mxu1 }
 0x311   : > { %v3779_v25 = vadd.f32 %v6713_v48, %v9960_v41 }
 0x312   : > { %v6715_v29 = vpop.f32.mrf.mxu1 }
 0x313   : > { %v6716_v51 = vadd.f32 %v6715_v29, %v6714_v17  ;;  %v3844_v43 = vadd.f32 %v9727_v19, %v3779_v25 }
 0x314   : > { %v6717_v21 = vpop.f32.mrf.mxu1 }
 0x315   : > { %v3784_v15 = vadd.f32 %v6716_v51, %v3719_v23  ;;  %v10614_v51 = vlaneseq }
 0x316   : > { %v6718_v28 = vpop.f32.mrf.mxu1 }
 0x317   : > { %v6719_v0 = vadd.f32 %v6718_v28, %v6717_v21  ;;  %v3849_v31 = vadd.f32 %v9738_v6, %v3784_v15 }
 0x318   : > { %v6776_v62 = vpop.f32.mrf.mxu1 }
 0x319   : > { %v3787_v5 = vadd.f32 %v6719_v0, %v3722_v3 }
 0x31a   : > { %v6777_v42 = vpop.f32.mrf.mxu1 }
 0x31b   : > { %v3852_v33 = vadd.f32 %v9755_v30, %v3787_v5 }
 0x31c   : > { %v6779_v12 = vpop.f32.mrf.mxu1 }
 0x31e   : > { %v6780_v14 = vpop.f32.mrf.mxu1 }
 0x320   : > { %v6782_v61 = vpop.f32.mrf.mxu1 }
 0x322   : > { %v6783_v40 = vpop.f32.mrf.mxu1 }
 0x324   : > { %v6785_v41 = vpop.f32.mrf.mxu1 }
 0x326   : > { %v6786_v50 = vpop.f32.mrf.mxu1 }
 0x328   : > { %v6788_v37 = vpop.f32.mrf.mxu1 }
 0x32a   : > { %v6789_v60 = vpop.f32.mrf.mxu1 }
 0x32b   : > { %v6790_v19 = vadd.f32 %v6789_v60, %v6788_v37 }
 0x32c   : > { %v6791_v59 = vpop.f32.mrf.mxu1 }
 0x32d   : > { %v3906_v23 = vadd.f32 %v6790_v19, %v3841_v44 }
 0x32e   : > { %v6792_v18 = vpop.f32.mrf.mxu1 }
 0x32f   : > { %v6793_v49 = vadd.f32 %v6792_v18, %v6791_v59  ;;  %v10029_v6 = vadd.f32 %v9819_v34, %v3906_v23  ;;  %v10036_v34 = vshrl.u32 %v10614_v51, 7  ;;  %v6778_v18 = vadd.f32 %v6777_v42, %v6776_v62  ;;  %v7275_v42 = vpop.f32.mrf.mxu0 }
 0x330   : > { %v6794_v3 = vpop.f32.mrf.mxu1 }
 0x331   : > { %v3909_v4 = vadd.f32 %v6793_v49, %v3844_v43  ;;  %v10615_v37 = vsub.s32 6, %v10036_v34 }
 0x332   : > { %v6795_v47 = vpop.f32.mrf.mxu1 }
 0x333   : > { %v6796_v30 = vadd.f32 %v6795_v47, %v6794_v3  ;;  %v10032_v48 = vadd.f32 %v9828_v56, %v3909_v4  ;;  %v10043_v56 = vld [vmem:[%s10537_s4 + $0x8] sm:$0xff]  ;;  %v3890_v4 = vadd.f32 %v6778_v18, %v10008_v26  ;;  %v6821_v26 = vadd.f32 %v9787_v2, %v9773_v35 }
 0x334   : > { %v6797_v17 = vpop.f32.mrf.mxu1  ;;  %10855 = vst [vmem:[#allocation16_spill] sm:$0xff] %v10043_v56 }
 0x335   : > { %v3914_v25 = vadd.f32 %v6796_v30, %v3849_v31  ;;  %v6781_v30 = vadd.f32 %v6780_v14, %v6779_v12 }
 0x336   : > { %v6798_v29 = vpop.f32.mrf.mxu1 }
 0x337   : > { %v6799_v21 = vadd.f32 %v6798_v29, %v6797_v17  ;;  %v3979_v15 = vadd.f32 %v9831_v1, %v3914_v25  ;;  %v10048_v1 = vrot.slane %v10043_v56, %v10615_v37  ;;  %v6818_v17 = vadd.f32 %v9768_v46, %v9757_v27 }
 0x338   : > { %v6856_v44 = vpop.f32.mrf.mxu1  ;;  %v3893_v37 = vadd.f32 %v6781_v30, %v10012_v39  ;;  %v6898_v27 = vadd.f32 %v9845_v45, %v9842_v22  ;;  %v6787_v46 = vadd.f32 %v6786_v50, %v6785_v41 }
 0x339   : > { %v3917_v28 = vadd.f32 %v6799_v21, %v3852_v33  ;;  %10856 = vst [vmem:[#allocation23_spill] sm:$0xff] %v10048_v1  ;;  %v6784_v1 = vadd.f32 %v6783_v40, %v6782_v61 }
 0x33a   : > { %v6857_v0 = vpop.f32.mrf.mxu1  ;;  %v3958_v61 = vadd.f32 %v6821_v26, %v3893_v37  ;;  %v3901_v22 = vadd.f32 %v6787_v46, %v10020_v32  ;;  %v6904_v32 = vadd.f32 %v9861_v53, %v9858_v24 }
 0x33b   : > { %v3982_v43 = vadd.f32 %v9840_v55, %v3917_v28  ;;  %v6858_v25 = vadd.f32 %v6857_v0, %v6856_v44  ;;  %v3955_v28 = vadd.f32 %v6818_v17, %v3890_v4  ;;  %v3898_v39 = vadd.f32 %v6784_v1, %v10016_v8  ;;  %v4214_v0 = vpop.f32.mrf.mxu0 }
 0x33c   : > { %v6859_v5 = vpop.f32.mrf.mxu1  ;;  %v6901_v8 = vadd.f32 %v9856_v11, %v9850_v20  ;;  %v4315_v11 = vsub.s32 0, %v10036_v34 }
 0x33d   : > { %v4020_v56 = vadd.f32 %v6858_v25, %v3955_v28  ;;  %v6907_v25 = vadd.f32 %v9869_v58, %v9866_v13  ;;  %v4319_v13 = vsub.s32 1, %v10036_v34  ;;  %v4327_v58 = vsub.s32 3, %v10036_v34 }
 0x33e   : > { %v6860_v31 = vpop.f32.mrf.mxu1 }
 0x33f   : > { %v6861_v18 = vadd.f32 %v6860_v31, %v6859_v5  ;;  %v4085_v4 = vadd.f32 %v6898_v27, %v4020_v56 }
 0x340   : > { %v6862_v33 = vpop.f32.mrf.mxu1 }
 0x341   : > { %v4023_v2 = vadd.f32 %v6861_v18, %v3958_v61 }
 0x342   : > { %v6863_v60 = vpop.f32.mrf.mxu1 }
 0x343   : > { %v4088_v31 = vadd.f32 %v6901_v8, %v4023_v2 }
 0x344   : > { %v6865_v19 = vpop.f32.mrf.mxu1 }
 0x346   : > { %v6866_v59 = vpop.f32.mrf.mxu1 }
 0x348   : > { %v10050_v23 = vpop.f32.mrf.mxu1 }
 0x34a   : > { %v10052_v55 = vpop.f32.mrf.mxu1 }
 0x34b   : > { %v6870_v24 = vadd.f32 %v10052_v55, %v10050_v23 }
 0x34c   : > { %v10054_v49 = vpop.f32.mrf.mxu1 }
 0x34e   : > { %v10056_v3 = vpop.f32.mrf.mxu1 }
 0x350   : > { %v6874_v47 = vpop.f32.mrf.mxu1 }
 0x352   : > { %v6875_v29 = vpop.f32.mrf.mxu1 }
 0x353   : > { %v6876_v21 = vadd.f32 %v6875_v29, %v6874_v47  ;;  %v6873_v29 = vadd.f32 %v10056_v3, %v10054_v49  ;;  %v6910_v3 = vadd.f32 %v9873_v10, %v9871_v36 }
 0x354   : > { %v6877_v51 = vpop.f32.mrf.mxu1 }
 0x355   : > { %v4044_v62 = vadd.f32 %v6876_v21, %v3979_v15  ;;  %v6824_v15 = vadd.f32 %v9800_v52, %v9789_v7  ;;  %v6827_v7 = vadd.f32 %v9816_v63, %v9805_v54  ;;  %v7276_v52 = vpop.f32.mrf.mxu0  ;;  %v10086_v63 = vld [vmem:[%s10537_s4] sm:$0xff]  ;;  %v4039_v61 = vadd.f32 %v6873_v29, %v10032_v48 }
 0x356   : > { %v6878_v38 = vpop.f32.mrf.mxu1  ;;  %v4316_v18 = vrot.slane %v10086_v63, %v4315_v11  ;;  %v4320_v36 = vrot.slane %v10086_v63, %v4319_v13  ;;  %v4328_v10 = vrot.slane %v10086_v63, %v4327_v58 }
 0x357   : > { %v6879_v12 = vadd.f32 %v6878_v38, %v6877_v51  ;;  %v10065_v14 = vadd.f32 %v9879_v16, %v4044_v62  ;;  %v6864_v38 = vadd.f32 %v6863_v60, %v6862_v33  ;;  %v3963_v41 = vadd.f32 %v6824_v15, %v3898_v39  ;;  %v4217_v47 = vpop.f32.mrf.mxu0 }
 0x358   : > { %v6936_v44 = vpop.f32.mrf.mxu1  ;;  %v4323_v62 = vsub.s32 2, %v10036_v34 }
 0x359   : > { %v4047_v40 = vadd.f32 %v6879_v12, %v3982_v43  ;;  %v6867_v43 = vadd.f32 %v6866_v59, %v6865_v19  ;;  %v4028_v37 = vadd.f32 %v6864_v38, %v3963_v41  ;;  %v10095_v26 = vpop.f32.mrf.mxu0 }
 0x35a   : > { %v6937_v35 = vpop.f32.mrf.mxu1 }
 0x35b   : > { %v6938_v51 = vadd.f32 %v6937_v35, %v6936_v44  ;;  %v10073_v16 = vadd.f32 %v9881_v9, %v4047_v40  ;;  %v3966_v9 = vadd.f32 %v6827_v7, %v3901_v22  ;;  %v4093_v19 = vadd.f32 %v6904_v32, %v4028_v37  ;;  %v4230_v2 = vpop.f32.mrf.mxu0 }
 0x35c   : > { %v6939_v45 = vpop.f32.mrf.mxu1  ;;  %v4036_v44 = vadd.f32 %v6870_v24, %v10029_v6  ;;  %v4335_v6 = vsub.s32 5, %v10036_v34  ;;  %v4343_v37 = vsub.s32 7, %v10036_v34 }
 0x35d   : > { %v4150_v50 = vadd.f32 %v6938_v51, %v4085_v4  ;;  %v4031_v20 = vadd.f32 %v6867_v43, %v3966_v9  ;;  %v10857_v4 = vld [vmem:[#allocation14_spill] sm:$0xff] }
 0x35e   : > { %v6940_v5 = vpop.f32.mrf.mxu1  ;;  %v6913_v35 = vadd.f32 %v10857_v4, %v9875_v57  ;;  %v4344_v29 = vrot.slane %v10086_v63, %v4343_v37 }
 0x35f   : > { %v4215_v56 = vadd.f32 %v4214_v0, %v4150_v50  ;;  %v6941_v1 = vadd.f32 %v6940_v5, %v6939_v45  ;;  %v4096_v12 = vadd.f32 %v6907_v25, %v4031_v20  ;;  %v4324_v0 = vrot.slane %v10086_v63, %v4323_v62 }
 0x360   : > { %v6942_v33 = vpop.f32.mrf.mxu1  ;;  %v4101_v45 = vadd.f32 %v6910_v3, %v4036_v44  ;;  %v4104_v43 = vadd.f32 %v6913_v35, %v4039_v61  ;;  %v7630_v44 = vld [vmem:[%s10538_s5 + $0x170] sm:$0xff]  }
 0x361   : > { %v4153_v60 = vadd.f32 %v6941_v1, %v4088_v31  ;;  %v4246_v17 = vrot.slane %v4215_v56, 1 }
 0x362   : > { %v6943_v30 = vpop.f32.mrf.mxu1 }
 0x363   : > { %v4218_v54 = vadd.f32 %v4217_v47, %v4153_v60  ;;  %v6944_v59 = vadd.f32 %v6943_v30, %v6942_v33  ;;  %v4248_v23 = vmax.f32 %v4215_v56, %v4246_v17  ;;  %v10119_v56 = vpop.f32.mrf.mxu0 }
 0x364   : > { %v6945_v53 = vpop.f32.mrf.mxu1 }
 0x365   : > { %v4250_v21 = vrot.slane %v4218_v54, 1  ;;  %v4158_v28 = vadd.f32 %v6944_v59, %v4093_v19  ;;  %v4336_v59 = vrot.slane %v10086_v63, %v4335_v6 }
 0x366   : > { %v6946_v27 = vpop.f32.mrf.mxu1 }
 0x367   : > { %v4252_v55 = vmax.f32 %v4218_v54, %v4250_v21  ;;  %v4223_v46 = vadd.f32 %v7275_v42, %v4158_v28  ;;  %v6947_v49 = vadd.f32 %v6946_v27, %v6945_v53  ;;  %v4233_v21 = vpop.f32.mrf.mxu0 }
 0x368   : > { %v6948_v39 = vpop.f32.mrf.mxu1 }
 0x369   : > { %v4253_v40 = vmax.f32 %v4248_v23, %v4252_v55  ;;  %v4161_v15 = vadd.f32 %v6947_v49, %v4096_v12  ;;  %v4255_v51 = vrot.slane %v4223_v46, 1  ;;  %v7628_v55 = vld [vmem:[%s10538_s5 + $0x138] sm:$0xff]  }
 0x36a   : > { %v6949_v42 = vpop.f32.mrf.mxu1 }
 0x36b   : > { %v4284_v48 = vrot.slane %v4253_v40, 4  ;;  %v4393_v38 = vadd.f32 %v4316_v18, %v4253_v40  ;;  %v4226_v22 = vadd.f32 %v7276_v52, %v4161_v15  ;;  %v6950_v8 = vadd.f32 %v6949_v42, %v6948_v39  ;;  %v7631_v39 = vld [vmem:[%s10538_s5 + $0x1f0] sm:$0xff]  }
 0x36c   : > { %v6951_v41 = vpop.f32.mrf.mxu1  ;;  %v4282_v57 = vrot.slane %v4253_v40, 2  ;;  %v4286_v50 = vrot.slane %v4253_v40, 6  ;;  %v4257_v60 = vmax.f32 %v4223_v46, %v4255_v51  ;;  %v7629_v46 = vld [vmem:[%s10538_s5 + $0x1b8] sm:$0xff]  }
 0x36d   : > { %v4259_v7 = vrot.slane %v4226_v22, 1  ;;  %v4395_v5 = vadd.f32 %v4324_v0, %v4284_v48  ;;  %v4409_v31 = vmax.f32 %v4393_v38, 0.0  ;;  %v4166_v1 = vadd.f32 %v6950_v8, %v4101_v45  ;;  %v7633_v48 = vld [vmem:[%s10538_s5 + $0x1b0] sm:$0xff]   ;;  %v7635_v8 = vld [vmem:[%s10538_s5 + $0x1e8] sm:$0xff]  }
 0x36e   : > { %v6952_v9 = vpop.f32.mrf.mxu1  ;;  %v4394_v33 = vadd.f32 %v4320_v36, %v4282_v57  ;;  %v4396_v32 = vadd.f32 %v4328_v10, %v4286_v50  ;;  %v7632_v10 = vld [vmem:[%s10538_s5 + $0x130] sm:$0xff]   ;;  %v10858_v57 = vld [vmem:[#allocation16_spill] sm:$0xff] }
 0x36f   : > { %v4261_v47 = vmax.f32 %v4226_v22, %v4259_v7  ;;  %v6953_v52 = vadd.f32 %v6952_v9, %v6951_v41  ;;  %v4411_v20 = vmax.f32 %v4395_v5, 0.0  ;;  %v4231_v30 = vadd.f32 %v4230_v2, %v4166_v1  ;;  %v7634_v22 = vld [vmem:[%s10538_s5 + $0x168] sm:$0xff]  }
 0x370   : > { %v6954_v17 = vpop.f32.mrf.mxu1  ;;  %v4410_v54 = vmax.f32 %v4394_v33, 0.0  ;;  %v4412_v19 = vmax.f32 %v4396_v32, 0.0  ;;  %v4425_v23 = vpack.c.bf16 %v4409_v31, %v4409_v31  ;;  %v4348_v50 = vrot.slane %v10858_v57, %v4315_v11  ;;  %v7636_v31 = vld [vmem:[%s10538_s5 + $0x128] sm:$0xff]   ;;  %v7639_v32 = vld [vmem:[%s10538_s5 + $0x1e0] sm:$0xff]  }
 0x371   : > { %v10124_v25 = vmax.f32 %v4257_v60, %v4261_v47  ;;  %v4169_v24 = vadd.f32 %v6953_v52, %v4104_v43  ;;  %v4427_v53 = vpack.c.bf16 %v4411_v20, %v4411_v20  ;;  %v4264_v28 = vrot.slane %v4231_v30, 1  ;;  %v7637_v1 = vld [vmem:[%s10538_s5 + $0x1a8] sm:$0xff]   ;;  %v7640_v52 = vld [vmem:[%s10538_s5 + $0x120] sm:$0xff]  }
 0x372   : > { %v6955_v18 = vpop.f32.mrf.mxu1  ;;  %v4426_v12 = vpack.c.bf16 %v4410_v54, %v4410_v54  ;;  %v4428_v27 = vpack.c.bf16 %v4412_v19, %v4412_v19  ;;  %v4356_v11 = vrot.slane %v10858_v57, %v4323_v62  ;;  %v7641_v20 = vld [vmem:[%s10538_s5 + $0x1a0] sm:$0xff]   ;;  %v7642_v19 = vld [vmem:[%s10538_s5 + $0x158] sm:$0xff]  }
 0x373   : > { %v4234_v49 = vadd.f32 %v4233_v21, %v4169_v24  ;;  %v6956_v3 = vadd.f32 %v6955_v18, %v6954_v17  ;;  %v4289_v61 = vrot.slane %v10124_v25, 2  ;;  %v4293_v40 = vrot.slane %v10124_v25, 6  ;;  %v7645_v21 = vld [vmem:[%s10538_s5 + $0x198] sm:$0xff]   ;;  %v7647_v18 = vld [vmem:[%s10538_s5 + $0x1d0] sm:$0xff]  }
 0x374   : > { %5498 = vmatprep.mubr.bf16.mxu1 %v4426_v12  ;;  %5538 = vmatprep.mubr.bf16.mxu0 %v4428_v27  ;;  %v6957_v15 = vpop.f32.mrf.mxu1  ;;  %v4266_v42 = vmax.f32 %v4231_v30, %v4264_v28  ;;  %v7646_v28 = vld [vmem:[%s10538_s5 + $0x150] sm:$0xff]  }
 0x375   : > { %v4268_v0 = vrot.slane %v4234_v49, 1  ;;  %v4174_v4 = vadd.f32 %v6956_v3, %v10065_v14  ;;  %5499 = vmatmul.mubr.bf16.vlgmr.msra.gmra.mxu1 %v4425_v23  ;;  %5539 = vmatmul.mubr.bf16.vlgmr.msra.gmra.mxu0 %v4427_v53  ;;  %v4398_v35 = vadd.f32 %v4336_v59, %v4289_v61  ;;  %v4400_v2 = vadd.f32 %v4344_v29, %v4293_v40  ;;  %v7643_v59 = vld [vmem:[%s10538_s5 + $0x1d8] sm:$0xff]   ;;  %v7650_v3 = vld [vmem:[%s10538_s5 + $0x148] sm:$0xff]  }
 0x376   : > { %7017 = vmatpush3.bf16.msra.mxu1 %v7628_v55  ;;  %7039 = vmatpush3.bf16.msra.mxu0 %v7629_v46  ;;  %v6958_v36 = vpop.f32.mrf.mxu1  ;;  %v7644_v29 = vld [vmem:[%s10538_s5 + $0x118] sm:$0xff]   ;;  %v7648_v46 = vld [vmem:[%s10538_s5 + $0x110] sm:$0xff]   ;;  %v4291_v61 = vrot.slane %v10124_v25, 4  ;;  %v10860_v40 = vsub.s32 6, %v10036_v34 }
 0x377   : > { %v4270_v38 = vmax.f32 %v4234_v49, %v4268_v0  ;;  %v4239_v51 = vadd.f32 %v10095_v26, %v4174_v4  ;;  %v6959_v14 = vadd.f32 %v6958_v36, %v6957_v15  ;;  %7018 = vmatprep.subr.bf16.mxu1 %v7630_v44  ;;  %7040 = vmatprep.subr.bf16.mxu0 %v7631_v39  ;;  %v4414_v45 = vmax.f32 %v4398_v35, 0.0  ;;  %v10859_v23 = vld [vmem:[#allocation23_spill] sm:$0xff]  ;;  %v7651_v44 = vld [vmem:[%s10538_s5 + $0x1c8] sm:$0xff]  }
 0x378   : > { %v4416_v41 = vmax.f32 %v4400_v2, 0.0  ;;  %v7649_v49 = vld [vmem:[%s10538_s5 + $0x190] sm:$0xff]   ;;  %v4340_v15 = vrot.slane %v10086_v63, %v10860_v40  ;;  %v4352_v4 = vrot.slane %v10858_v57, %v4319_v13  ;;  %v4360_v2 = vrot.slane %v10858_v57, %v4327_v58  ;;  %v7654_v13 = vld [vmem:[%s10538_s5 + $0x140] sm:$0xff]   ;;  %v7685_v40 = vld [vmem:[%s10538_s5 + $0x288] sm:$0xff]  }
 0x379   : > { %v10160_v7 = vmax.f32 %v4266_v42, %v4270_v38  ;;  %v4177_v26 = vadd.f32 %v6959_v14, %v10073_v16  ;;  %v4430_v43 = vpack.c.bf16 %v4414_v45, %v4414_v45  ;;  %v4273_v9 = vrot.slane %v4239_v51, 1  ;;  %v7638_v16 = vld [vmem:[%s10538_s5 + $0x160] sm:$0xff]   ;;  %v7652_v42 = vld [vmem:[%s10538_s5 + $0x108] sm:$0xff]  }
 0x37a   : > { %7019 = vmatpush3.bf16.msra.mxu1 %v7632_v10  ;;  %7041 = vmatpush3.bf16.msra.mxu0 %v7633_v48  ;;  %v4432_v5 = vpack.c.bf16 %v4416_v41, %v4416_v41  ;;  %v7655_v58 = vld [vmem:[%s10538_s5 + $0x1c0] sm:$0xff]   ;;  %v4399_v10 = vadd.f32 %v4340_v15, %v4291_v61  ;;  %v4376_v61 = vrot.slane %v10858_v57, %v4343_v37 }
 0x37b   : > { %v4242_v33 = vadd.f32 %v10119_v56, %v4177_v26  ;;  %7020 = vmatprep.subr.bf16.mxu1 %v7634_v22  ;;  %5578 = vmatprep.mubr.bf16.mxu1 %v4430_v43  ;;  %v10180_v60 = vadd.f32 %v4348_v50, %v10160_v7  ;;  %v4298_v62 = vrot.slane %v10160_v7, 4  ;;  %v4331_v56 = vsub.s32 4, %v10036_v34  ;;  %v7657_v14 = vld [vmem:[%s10538_s5 + $0x180] sm:$0xff]  }
 0x37c   : > { %7042 = vmatprep.subr.bf16.mxu0 %v7635_v8  ;;  %5618 = vmatprep.mubr.bf16.mxu0 %v4432_v5  ;;  %v4275_v17 = vmax.f32 %v4239_v51, %v4273_v9  ;;  %v4296_v0 = vrot.slane %v10160_v7, 2  ;;  %v4300_v35 = vrot.slane %v10160_v7, 6  ;;  %v7656_v51 = vld [vmem:[%s10538_s5 + $0x100] sm:$0xff]   ;;  %v4415_v45 = vmax.f32 %v4399_v10, 0.0  ;;  %v7659_v8 = vld [vmem:[%s10538_s5 + $0x2f8] sm:$0xff]  }
 0x37d   : > { %v4277_v47 = vrot.slane %v4242_v33, 1  ;;  %v10190_v30 = vadd.f32 %v4356_v11, %v4298_v62  ;;  %v4364_v24 = vrot.slane %v10858_v57, %v4331_v56  ;;  %v4332_v39 = vrot.slane %v10086_v63, %v4331_v56  ;;  %v7653_v63 = vld [vmem:[%s10538_s5 + $0x188] sm:$0xff]   ;;  %v7660_v7 = vld [vmem:[%s10538_s5 + $0x238] sm:$0xff]   ;;  %v7663_v11 = vld [vmem:[%s10538_s5 + $0x2f0] sm:$0xff]  }
 0x37e   : > { %7021 = vmatpush3.bf16.msra.mxu1 %v7636_v31  ;;  %7043 = vmatpush3.bf16.msra.mxu0 %v7637_v1  ;;  %v4402_v48 = vadd.f32 %v4352_v4, %v4296_v0  ;;  %v4404_v38 = vadd.f32 %v4360_v2, %v4300_v35  ;;  %v4431_v43 = vpack.c.bf16 %v4415_v45, %v4415_v45  ;;  %v7661_v5 = vld [vmem:[%s10538_s5 + $0x2b8] sm:$0xff]   ;;  %v7662_v1 = vld [vmem:[%s10538_s5 + $0x270] sm:$0xff]   ;;  %v7667_v62 = vld [vmem:[%s10538_s5 + $0x2e8] sm:$0xff]   ;;  %v4417_v0 = vmax.f32 %v10180_v60, 0.0 }
 0x37f   : > { %v4279_v54 = vmax.f32 %v4242_v33, %v4277_v47  ;;  %7022 = vmatprep.subr.bf16.mxu1 %v7638_v16  ;;  %7044 = vmatprep.subr.bf16.mxu0 %v7639_v32  ;;  %v4397_v36 = vadd.f32 %v4332_v39, %v10124_v25  ;;  %v7658_v25 = vld [vmem:[%s10538_s5 + $0x278] sm:$0xff]   ;;  %v7664_v33 = vld [vmem:[%s10538_s5 + $0x230] sm:$0xff]   ;;  %v7666_v32 = vld [vmem:[%s10538_s5 + $0x268] sm:$0xff]   ;;  %v4419_v35 = vmax.f32 %v10190_v30, 0.0 }
 0x380   : > { %v4418_v41 = vmax.f32 %v4402_v48, 0.0  ;;  %v4420_v50 = vmax.f32 %v4404_v38, 0.0  ;;  %v7665_v16 = vld [vmem:[%s10538_s5 + $0x2b0] sm:$0xff]   ;;  %v7668_v47 = vld [vmem:[%s10538_s5 + $0x228] sm:$0xff]   ;;  %v7687_v15 = vld [vmem:[%s10538_s5 + $0x2c0] sm:$0xff]   ;;  %v4433_v60 = vpack.c.bf16 %v4417_v0, %v4417_v0 }
 0x381   : > { %v10199_v53 = vmax.f32 %v4275_v17, %v4279_v54  ;;  %v4413_v22 = vmax.f32 %v4397_v36, 0.0  ;;  %v7669_v56 = vld [vmem:[%s10538_s5 + $0x2a8] sm:$0xff]   ;;  %v7672_v17 = vld [vmem:[%s10538_s5 + $0x220] sm:$0xff]   ;;  %v7690_v4 = vld [vmem:[%s10538_s5 + $0x378] sm:$0xff]   ;;  %v4435_v36 = vpack.c.bf16 %v4419_v35, %v4419_v35 }
 0x382   : > { %7023 = vmatpush3.bf16.msra.mxu1 %v7640_v52  ;;  %7045 = vmatpush3.bf16.msra.mxu0 %v7641_v20  ;;  %v4434_v31 = vpack.c.bf16 %v4418_v41, %v4418_v41  ;;  %v4436_v9 = vpack.c.bf16 %v4420_v50, %v4420_v50  ;;  %v7670_v52 = vld [vmem:[%s10538_s5 + $0x260] sm:$0xff]   ;;  %v7691_v2 = vld [vmem:[%s10538_s5 + $0x3f8] sm:$0xff]   ;;  %v7694_v30 = vld [vmem:[%s10538_s5 + $0x370] sm:$0xff]  }
 0x383   : > { %7024 = vmatprep.subr.bf16.mxu1 %v7642_v19  ;;  %7046 = vmatprep.subr.bf16.mxu0 %v7643_v59  ;;  %v10214_v12 = vadd.f32 %v4364_v24, %v10199_v53  ;;  %v4305_v27 = vrot.slane %v10199_v53, 4  ;;  %v4429_v26 = vpack.c.bf16 %v4413_v22, %v4413_v22  ;;  %v7671_v20 = vld [vmem:[%s10538_s5 + $0x2e0] sm:$0xff]   ;;  %v7674_v19 = vld [vmem:[%s10538_s5 + $0x258] sm:$0xff]   ;;  %v4307_v39 = vrot.slane %v10199_v53, 6  ;;  %v7695_v48 = vld [vmem:[%s10538_s5 + $0x3f0] sm:$0xff]  }
 0x384   : > { %v7673_v54 = vld [vmem:[%s10538_s5 + $0x2a0] sm:$0xff]   ;;  %v7675_v59 = vld [vmem:[%s10538_s5 + $0x2d8] sm:$0xff]   ;;  %v7698_v22 = vld [vmem:[%s10538_s5 + $0x368] sm:$0xff]  }
 0x385   : > { %v10218_v55 = vadd.f32 %v10859_v23, %v4305_v27  ;;  %v7676_v24 = vld [vmem:[%s10538_s5 + $0x218] sm:$0xff]   ;;  %v7681_v27 = vld [vmem:[%s10538_s5 + $0x290] sm:$0xff]   ;;  %v7682_v23 = vld [vmem:[%s10538_s5 + $0x248] sm:$0xff]   ;;  %v4408_v37 = vadd.f32 %v4376_v61, %v4307_v39 }
 0x386   : > { %7025 = vmatpush3.bf16.msra.mxu1 %v7644_v29  ;;  %7047 = vmatpush3.bf16.msra.mxu0 %v7645_v21  ;;  %v7677_v29 = vld [vmem:[%s10538_s5 + $0x298] sm:$0xff]   ;;  %v7678_v21 = vld [vmem:[%s10538_s5 + $0x250] sm:$0xff]   ;;  %v7688_v34 = vld [vmem:[%s10538_s5 + $0x200] sm:$0xff]  }
 0x387   : > { %7026 = vmatprep.subr.bf16.mxu1 %v7646_v28  ;;  %7048 = vmatprep.subr.bf16.mxu0 %v7647_v18  ;;  %v7679_v28 = vld [vmem:[%s10538_s5 + $0x2d0] sm:$0xff]   ;;  %v7699_v45 = vld [vmem:[%s10538_s5 + $0x3e8] sm:$0xff]   ;;  %v7702_v41 = vld [vmem:[%s10538_s5 + $0x360] sm:$0xff]  }
 0x388   : > { %v7680_v18 = vld [vmem:[%s10538_s5 + $0x210] sm:$0xff]   ;;  %v7703_v50 = vld [vmem:[%s10538_s5 + $0x3e0] sm:$0xff]  }
 0x389   : > { %v4697_v39 = vld [vmem:[%s10539_s6] sm:$0x1] }
 0x38a   : > { %7027 = vmatpush3.bf16.msra.mxu1 %v7648_v46  ;;  %7049 = vmatpush3.bf16.msra.mxu0 %v7649_v49  ;;  %v7683_v46 = vld [vmem:[%s10538_s5 + $0x2c8] sm:$0xff]   ;;  %v4303_v49 = vrot.slane %v10199_v53, 2 }
 0x38b   : > { %7028 = vmatprep.subr.bf16.mxu1 %v7650_v3  ;;  %7050 = vmatprep.subr.bf16.mxu0 %v7651_v44  ;;  %v4368_v3 = vrot.slane %v10858_v57, %v4335_v6  ;;  %v7684_v44 = vld [vmem:[%s10538_s5 + $0x208] sm:$0xff]   ;;  %v7686_v6 = vld [vmem:[%s10538_s5 + $0x240] sm:$0xff]  }
 0x38c   : > { %v7689_v57 = vld [vmem:[%s10538_s5 + $0x280] sm:$0xff]  }
 0x38d   : > { %v4406_v53 = vadd.f32 %v4368_v3, %v4303_v49  ;;  %v7729_v49 = vld [vmem:[%s10540_s7] sm:$0xff]  }
 0x38e   : > { %7029 = vmatpush3.bf16.msra.mxu1 %v7652_v42  ;;  %7051 = vmatpush3.bf16.msra.mxu0 %v7653_v63  ;;  %v7692_v63 = vld [vmem:[%s10538_s5 + $0x338] sm:$0xff]  }
 0x38f   : > { %7030 = vmatprep.subr.bf16.mxu1 %v7654_v13  ;;  %7052 = vmatprep.subr.bf16.mxu0 %v7655_v58  ;;  %v4422_v42 = vmax.f32 %v4406_v53, 0.0  ;;  %v4424_v13 = vmax.f32 %v4408_v37, 0.0  ;;  %v7693_v58 = vld [vmem:[%s10538_s5 + $0x3b8] sm:$0xff]  }
 0x391   : > { %v4438_v10 = vpack.c.bf16 %v4422_v42, %v4422_v42  ;;  %v4440_v38 = vpack.c.bf16 %v4424_v13, %v4424_v13 }
 0x392   : > { %7031 = vmatpush3.bf16.msra.mxu1 %v7656_v51  ;;  %7053 = vmatpush3.bf16.msra.mxu0 %v7657_v14  ;;  %v7696_v51 = vld [vmem:[%s10538_s5 + $0x330] sm:$0xff]  }
 0x393   : > { %7060 = vmatprep.subr.bf16.mxu1 %v7658_v25  ;;  %7082 = vmatprep.subr.bf16.mxu0 %v7659_v8  ;;  %v7697_v14 = vld [vmem:[%s10538_s5 + $0x3b0] sm:$0xff]   ;;  %v7700_v25 = vld [vmem:[%s10538_s5 + $0x328] sm:$0xff]  }
 0x394   : > { %v7701_v8 = vld [vmem:[%s10538_s5 + $0x3a8] sm:$0xff]  }
 0x395   : > { %5579 = vmatmul.mubr.bf16.vlgmr.msra.gmra.mxu1 %v4429_v26  ;;  %5619 = vmatmul.mubr.bf16.vlgmr.msra.gmra.mxu0 %v4431_v43  ;;  %v7705_v26 = vld [vmem:[%s10538_s5 + $0x3a0] sm:$0xff]   ;;  %v7706_v43 = vld [vmem:[%s10538_s5 + $0x358] sm:$0xff]  }
 0x396   : > { %7061 = vmatpush3.bf16.msra.mxu1 %v7660_v7  ;;  %5658 = vmatprep.mubr.bf16.mxu1 %v4434_v31  ;;  %v7704_v7 = vld [vmem:[%s10538_s5 + $0x320] sm:$0xff]   ;;  %v7708_v31 = vld [vmem:[%s10538_s5 + $0x318] sm:$0xff]  }
 0x397   : > { %7083 = vmatpush3.bf16.msra.mxu0 %v7661_v5  ;;  %5698 = vmatprep.mubr.bf16.mxu0 %v4436_v9  ;;  %v7707_v5 = vld [vmem:[%s10538_s5 + $0x3d8] sm:$0xff]   ;;  %v7711_v9 = vld [vmem:[%s10538_s5 + $0x3d0] sm:$0xff]  }
 0x398   : > { %7062 = vmatprep.subr.bf16.mxu1 %v7662_v1  ;;  %7084 = vmatprep.subr.bf16.mxu0 %v7663_v11  ;;  %v7709_v1 = vld [vmem:[%s10538_s5 + $0x398] sm:$0xff]   ;;  %v7710_v11 = vld [vmem:[%s10538_s5 + $0x350] sm:$0xff]  }
 0x39a   : > { %7063 = vmatpush3.bf16.msra.mxu1 %v7664_v33  ;;  %v7712_v33 = vld [vmem:[%s10538_s5 + $0x310] sm:$0xff]  }
 0x39b   : > { %7085 = vmatpush3.bf16.msra.mxu0 %v7665_v16  ;;  %7064 = vmatprep.subr.bf16.mxu1 %v7666_v32  ;;  %v7713_v16 = vld [vmem:[%s10538_s5 + $0x390] sm:$0xff]   ;;  %v7714_v32 = vld [vmem:[%s10538_s5 + $0x348] sm:$0xff]  }
 0x39c   : > { %7086 = vmatprep.subr.bf16.mxu0 %v7667_v62  ;;  %v7715_v62 = vld [vmem:[%s10538_s5 + $0x3c8] sm:$0xff]  }
 0x39e   : > { %7065 = vmatpush3.bf16.msra.mxu1 %v7668_v47  ;;  %v7716_v47 = vld [vmem:[%s10538_s5 + $0x308] sm:$0xff]  }
 0x39f   : > { %7087 = vmatpush3.bf16.msra.mxu0 %v7669_v56  ;;  %7066 = vmatprep.subr.bf16.mxu1 %v7670_v52  ;;  %v7717_v56 = vld [vmem:[%s10538_s5 + $0x388] sm:$0xff]   ;;  %v7718_v52 = vld [vmem:[%s10538_s5 + $0x340] sm:$0xff]  }
 0x3a0   : > { %7088 = vmatprep.subr.bf16.mxu0 %v7671_v20  ;;  %v7719_v20 = vld [vmem:[%s10538_s5 + $0x3c0] sm:$0xff]  }
 0x3a2   : > { %7067 = vmatpush3.bf16.msra.mxu1 %v7672_v17  ;;  %v7720_v17 = vld [vmem:[%s10538_s5 + $0x300] sm:$0xff]  }
 0x3a3   : > { %7089 = vmatpush3.bf16.msra.mxu0 %v7673_v54  ;;  %7068 = vmatprep.subr.bf16.mxu1 %v7674_v19  ;;  %v7721_v54 = vld [vmem:[%s10538_s5 + $0x380] sm:$0xff]   ;;  %v4421_v19 = vmax.f32 %v10214_v12, 0.0  ;;  %v7723_v12 = vld [vmem:[%s10540_s7 + $0x30] sm:$0xff]  }
 0x3a4   : > { %7090 = vmatprep.subr.bf16.mxu0 %v7675_v59  ;;  %v4423_v59 = vmax.f32 %v10218_v55, 0.0  ;;  %v7724_v55 = vld [vmem:[%s10540_s7 + $0x28] sm:$0xff]  }
 0x3a6   : > { %7069 = vmatpush3.bf16.msra.mxu1 %v7676_v24  ;;  %v4437_v24 = vpack.c.bf16 %v4421_v19, %v4421_v19  ;;  %v10861_v19 = vlaneseq }
 0x3a7   : > { %7091 = vmatpush3.bf16.msra.mxu0 %v7677_v29  ;;  %7070 = vmatprep.subr.bf16.mxu1 %v7678_v21  ;;  %v4439_v29 = vpack.c.bf16 %v4423_v59, %v4423_v59  ;;  %v7722_v21 = vld [vmem:[%s10540_s7 + $0x38] sm:$0xff]  }
 0x3a8   : > { %7092 = vmatprep.subr.bf16.mxu0 %v7679_v28  ;;  %v7797_v28 = vmov 0.0   ;;  %v5894_v59 = vand.u32 127, %v10861_v19 }
 0x3aa   : > { %7071 = vmatpush3.bf16.msra.mxu1 %v7680_v18  ;;  %v7725_v18 = vld [vmem:[%s10540_s7 + $0x20] sm:$0xff]   ;;  %vm5895_vm6 = vcmp.lt.s32.totalorder %v5894_v59, 10 }
 0x3ab   : > { %7093 = vmatpush3.bf16.msra.mxu0 %v7681_v27  ;;  %7072 = vmatprep.subr.bf16.mxu1 %v7682_v23  ;;  %v7726_v27 = vld [vmem:[%s10540_s7 + $0x18] sm:$0xff]   ;;  %v7727_v23 = vld [vmem:[%s10540_s7 + $0x10] sm:$0xff]  }
 0x3ac   : > { %7094 = vmatprep.subr.bf16.mxu0 %v7683_v46  ;;  %v7728_v46 = vld [vmem:[%s10540_s7 + $0x8] sm:$0xff]  }
 0x3ae   : > { %7073 = vmatpush3.bf16.msra.mxu1 %v7684_v44 }
 0x3af   : > { %7095 = vmatpush3.bf16.msra.mxu0 %v7685_v40  ;;  %7074 = vmatprep.subr.bf16.mxu1 %v7686_v6 }
 0x3b0   : > { %7096 = vmatprep.subr.bf16.mxu0 %v7687_v15 }
 0x3b2   : > { %7075 = vmatpush3.bf16.msra.mxu1 %v7688_v34 }
 0x3b3   : > { %7097 = vmatpush3.bf16.msra.mxu0 %v7689_v57  ;;  %7104 = vmatprep.subr.bf16.mxu1 %v7690_v4 }
 0x3b4   : > { %7126 = vmatprep.subr.bf16.mxu0 %v7691_v2 }
 0x3b5   : > { %5659 = vmatmul.mubr.bf16.vlgmr.msra.gmra.mxu1 %v4433_v60 }
 0x3b6   : > { %5699 = vmatmul.mubr.bf16.vlgmr.msra.gmra.mxu0 %v4435_v36  ;;  %7105 = vmatpush3.bf16.msra.mxu1 %v7692_v63 }
 0x3b7   : > { %5738 = vmatprep.mubr.bf16.mxu1 %v4438_v10  ;;  %7127 = vmatpush3.bf16.msra.mxu0 %v7693_v58 }
 0x3b8   : > { %5778 = vmatprep.mubr.bf16.mxu0 %v4440_v38  ;;  %7106 = vmatprep.subr.bf16.mxu1 %v7694_v30 }
 0x3b9   : > { %7128 = vmatprep.subr.bf16.mxu0 %v7695_v48 }
 0x3ba   : > { %7107 = vmatpush3.bf16.msra.mxu1 %v7696_v51 }
 0x3bb   : > { %7129 = vmatpush3.bf16.msra.mxu0 %v7697_v14  ;;  %7108 = vmatprep.subr.bf16.mxu1 %v7698_v22 }
 0x3bc   : > { %7130 = vmatprep.subr.bf16.mxu0 %v7699_v45 }
 0x3be   : > { %7109 = vmatpush3.bf16.msra.mxu1 %v7700_v25 }
 0x3bf   : > { %7131 = vmatpush3.bf16.msra.mxu0 %v7701_v8  ;;  %7110 = vmatprep.subr.bf16.mxu1 %v7702_v41 }
 0x3c0   : > { %7132 = vmatprep.subr.bf16.mxu0 %v7703_v50 }
 0x3c2   : > { %7111 = vmatpush3.bf16.msra.mxu1 %v7704_v7 }
 0x3c3   : > { %7133 = vmatpush3.bf16.msra.mxu0 %v7705_v26  ;;  %7112 = vmatprep.subr.bf16.mxu1 %v7706_v43 }
 0x3c4   : > { %7134 = vmatprep.subr.bf16.mxu0 %v7707_v5 }
 0x3c6   : > { %7113 = vmatpush3.bf16.msra.mxu1 %v7708_v31 }
 0x3c7   : > { %7135 = vmatpush3.bf16.msra.mxu0 %v7709_v1  ;;  %7114 = vmatprep.subr.bf16.mxu1 %v7710_v11 }
 0x3c8   : > { %7136 = vmatprep.subr.bf16.mxu0 %v7711_v9 }
 0x3ca   : > { %7115 = vmatpush3.bf16.msra.mxu1 %v7712_v33 }
 0x3cb   : > { %7137 = vmatpush3.bf16.msra.mxu0 %v7713_v16  ;;  %7116 = vmatprep.subr.bf16.mxu1 %v7714_v32 }
 0x3cc   : > { %7138 = vmatprep.subr.bf16.mxu0 %v7715_v62 }
 0x3ce   : > { %7117 = vmatpush3.bf16.msra.mxu1 %v7716_v47 }
 0x3cf   : > { %7139 = vmatpush3.bf16.msra.mxu0 %v7717_v56  ;;  %7118 = vmatprep.subr.bf16.mxu1 %v7718_v52 }
 0x3d0   : > { %7140 = vmatprep.subr.bf16.mxu0 %v7719_v20 }
 0x3d2   : > { %7119 = vmatpush3.bf16.msra.mxu1 %v7720_v17 }
 0x3d3   : > { %7141 = vmatpush3.bf16.msra.mxu0 %v7721_v54  ;;  %7281 = vmatprep.subr.bf16.mxu1 %v7797_v28 }
 0x3d5   : > { %5739 = vmatmul.mubr.bf16.vlgmr.msra.gmra.mxu1 %v4437_v24  ;;  %v5804_v24 = vld [vmem:[%s10541_s8] sm:$0x1] }
 0x3d6   : > { %5779 = vmatmul.mubr.bf16.vlgmr.msra.gmra.mxu0 %v4439_v29  ;;  %7282 = vmatpush3.bf16.msra.mxu1 %v7722_v21 }
 0x3d7   : > { %7283 = vmatprep.subr.bf16.mxu1 %v7797_v28  ;;  %7297 = vmatprep.mubr.msk.bf16.mxu1 %vm7798_vm5, %v7797_v28 }
 0x3da   : > { %7284 = vmatpush3.bf16.msra.mxu1 %v7723_v12 }
 0x3db   : > { %7285 = vmatprep.subr.bf16.mxu1 %v7797_v28 }
 0x3de   : > { %7286 = vmatpush3.bf16.msra.mxu1 %v7724_v55 }
 0x3df   : > { %7287 = vmatprep.subr.bf16.mxu1 %v7797_v28 }
 0x3e2   : > { %7288 = vmatpush3.bf16.msra.mxu1 %v7725_v18 }
 0x3e3   : > { %7289 = vmatprep.subr.bf16.mxu1 %v7797_v28 }
 0x3e6   : > { %7290 = vmatpush3.bf16.msra.mxu1 %v7726_v27 }
 0x3e7   : > { %7291 = vmatprep.subr.bf16.mxu1 %v7797_v28 }
 0x3ea   : > { %7292 = vmatpush3.bf16.msra.mxu1 %v7727_v23 }
 0x3eb   : > { %7293 = vmatprep.subr.bf16.mxu1 %v7797_v28 }
 0x3ee   : > { %7294 = vmatpush3.bf16.msra.mxu1 %v7728_v46 }
 0x3ef   : > { %7295 = vmatprep.subr.bf16.mxu1 %v7797_v28 }
 0x3f2   : > { %7296 = vmatpush3.bf16.msra.mxu1 %v7729_v49 }
 0x435   : > { %v6988_v3 = vpop.f32.mrf.mxu1  ;;  %v7010_v44 = vpop.f32.mrf.mxu0 }
 0x437   : > { %v6989_v61 = vpop.f32.mrf.mxu1  ;;  %v7011_v40 = vpop.f32.mrf.mxu0 }
 0x438   : > { %v6990_v6 = vadd.f32 %v6989_v61, %v6988_v3  ;;  %v7012_v15 = vadd.f32 %v7011_v40, %v7010_v44 }
 0x439   : > { %v6991_v53 = vpop.f32.mrf.mxu1  ;;  %v7013_v34 = vpop.f32.mrf.mxu0 }
 0x43a   : > { %v5501_v37 = vadd.f32 %v6990_v6, %v4697_v39 }
 0x43b   : > { %v6992_v57 = vpop.f32.mrf.mxu1  ;;  %v7014_v0 = vpop.f32.mrf.mxu0 }
 0x43c   : > { %v5541_v4 = vadd.f32 %v7012_v15, %v5501_v37 }
 0x455   : > { %v7032_v35 = vpop.f32.mrf.mxu1  ;;  %v7054_v2 = vpop.f32.mrf.mxu0 }
 0x457   : > { %v7033_v42 = vpop.f32.mrf.mxu1  ;;  %v7055_v63 = vpop.f32.mrf.mxu0 }
 0x458   : > { %v7034_v25 = vadd.f32 %v7033_v42, %v7032_v35  ;;  %v7056_v41 = vadd.f32 %v7055_v63, %v7054_v2 }
 0x459   : > { %v7035_v13 = vpop.f32.mrf.mxu1  ;;  %v7057_v60 = vpop.f32.mrf.mxu0 }
 0x45a   : > { %v5581_v8 = vadd.f32 %v7034_v25, %v5541_v4 }
 0x45b   : > { %v7036_v58 = vpop.f32.mrf.mxu1  ;;  %v7058_v36 = vpop.f32.mrf.mxu0 }
 0x45c   : > { %v5621_v7 = vadd.f32 %v7056_v41, %v5581_v8 }
 0x475   : > { %v7076_v30 = vpop.f32.mrf.mxu1 }
 0x476   : > { %v7098_v10 = vpop.f32.mrf.mxu0 }
 0x477   : > { %v7077_v48 = vpop.f32.mrf.mxu1 }
 0x478   : > { %v7099_v38 = vpop.f32.mrf.mxu0  ;;  %v7078_v50 = vadd.f32 %v7077_v48, %v7076_v30 }
 0x479   : > { %v7079_v51 = vpop.f32.mrf.mxu1  ;;  %v7100_v5 = vadd.f32 %v7099_v38, %v7098_v10 }
 0x47a   : > { %v7101_v14 = vpop.f32.mrf.mxu0  ;;  %v5661_v26 = vadd.f32 %v7078_v50, %v5621_v7 }
 0x47b   : > { %v7080_v22 = vpop.f32.mrf.mxu1 }
 0x47c   : > { %v7102_v45 = vpop.f32.mrf.mxu0  ;;  %v5701_v11 = vadd.f32 %v7100_v5, %v5661_v26 }
 0x495   : > { %v7120_v43 = vpop.f32.mrf.mxu1 }
 0x496   : > { %v7142_v31 = vpop.f32.mrf.mxu0 }
 0x497   : > { %v7121_v1 = vpop.f32.mrf.mxu1 }
 0x498   : > { %v7122_v9 = vadd.f32 %v7121_v1, %v7120_v43  ;;  %v7143_v33 = vpop.f32.mrf.mxu0 }
 0x499   : > { %v7123_v16 = vpop.f32.mrf.mxu1  ;;  %v7144_v62 = vadd.f32 %v7143_v33, %v7142_v31 }
 0x49a   : > { %v5741_v32 = vadd.f32 %v7122_v9, %v5701_v11  ;;  %v7145_v47 = vpop.f32.mrf.mxu0 }
 0x49b   : > { %v7124_v56 = vpop.f32.mrf.mxu1 }
 0x49c   : > { %v5781_v52 = vadd.f32 %v7144_v62, %v5741_v32  ;;  %v7146_v20 = vpop.f32.mrf.mxu0 }
 0x49e   : > { %v5786_v17 = vmax.f32 %v5781_v52, 0.0 }
 0x4a0   : > { %v5787_v54 = vpack.c.bf16 %v5786_v17, %v5786_v17 }
 0x4a2   : > { %7298 = vmatmul.mubr.bf16.vlgmr.msra.gmra.mxu1 %v5787_v54 }
 0x562   : > { %v5887_v29 = vpop.f32.mrf.mxu1 }
 0x563   : > { %v5888_v21 = vadd.f32 %v5887_v29, %v5804_v24 }
 0x564   : > { %v7299_v28 = vpop.f32.mrf.mxu1 }
 0x565   : > { %v5896_v12 = vsel %vm5895_vm6, %v5888_v21, -1e+30 }
 0x566   : > { %v5890_v55 = vpop.f32.mrf.mxu1  ;;  %v5898_v18 = vsel %vm5897_vm7, %v5896_v12, -inf }
 0x567   : > { %5899 = vmax.xlane.f32.xlu0 %v5898_v18 }
 0x568   : > { %v7300_v27 = vpop.f32.mrf.mxu1 }
 0x5f0   : > { %v5900_v23 = vpop.xlane.xlu0 %5899 }
 0x5f1   : > { %v5901_v46 = vsub.f32 %v5896_v12, %v5900_v23 }
 0x5f3   : > { %v5902_v49 = vmul.f32 1.442695, %v5901_v46 }
 0x5f5   : > { %7730 = vpow2.f32 %v5902_v49 }
 0x602   : > { %v7731_v3 = vpop.eup %7730 }
 0x603   : > { %v5904_v44 = vsel %vm5897_vm7, %v7731_v3, 0.0 }
 0x604   : > { %5905 = vadd.xlane.f32.xlu0 %v5904_v44 }
 0x68d   : > { %v5906_v39 = vpop.xlane.xlu0 %5905 }
 0x68e   : > { %7732 = vlog2.f32 %v5906_v39 }
 0x69b   : > { %v7733_v61 = vpop.eup %7732 }
 0x69c   : > { %v5908_v40 = vmul.f32 0.6931472, %v7733_v61 }
 0x69e   : > { %v5909_v6 = vsub.f32 %v5901_v46, %v5908_v40 }
 0x6a0   : > { %5910 = vst [vmem:[%s324_s14] sm:$0x1] %v5909_v6 }
 0x6a1   : > { %7747 = shalt.err (!%p7744_p3)
}
 0x6a2   : > { %s7748_s27 = scalar_lea.hbm %s5922_s22, 16  ;;  %s7752_s14 = scalar_lea.hbm %s10542_s9, 32 }
 0x6a3   : > { %p7749_p4 = scmp.ne.s32.totalorder %s5922_s22, %s7748_s27  ;;  %p7753_p9 = scmp.lt.s32.totalorder %s5922_s22, %s10542_s9 }
 0x6a4   : > { %p7754_p10 = scmp.lt.s32.totalorder %s7752_s14, %s7748_s27 }
 0x6a5   : > { %p7750_p7 = pnand %p7749_p4, %p7888_p5 }
 0x6a6   : > { %p7755_p11 = por %p7754_p10, %p7753_p9 }
 0x6a7   : > { %p7751_p8 = pneg %p7750_p7 }
 0x6a9   : > { %p7756_p12 = pnand %p7755_p11, %p7751_p8 }
 0x6ab   : > { %7759 = shalt.err (!%p7756_p12)
}
 0x6ac   : > { %7302 = dma.vmem_to_hbm [thread:$0]  (%p7888_p5), %s5925_s16, 16, %s5922_s22, %s5912_s23  }
 0x6ad PF: > { %p7308_p13 = scmp.ge.s32.totalorder %s7794_s12, 2  ;;  %s5936_s24 = sand.u32 1, %s7782_s30  }
 0x6ae   : > { %s5937_s25 = scalar_lea.sflag [#allocation3], %s5936_s24 }
 0x6af   : > { %p7305_p0 = pnand %p7308_p13, %p7892_p6 }
 0x6b1   : > { %p7306_p1 = pneg %p7305_p0 }
 0x6b3   : > { %7777 = dma.done.wait (%p7306_p1), %s5937_s25, 16  }
 0x6b4   : > { %7779 = vsyncadd (%p7306_p1), %s5937_s25, 4294967280  ;;  %p19_p2 = scmp.ge.s32.totalorder %s7875_s15, 4   ;;  %s10862_s30 = smov %s7786_s10 }
 0x6b5   : > { %s10863_s10 = smov %s7790_s11  ;;  %s10864_s11 = smov %s7886_s18 }
 0x6b6   : > { %s10865_s12 = smov %s7875_s15  ;;  %21 = sbr.rel (!%p19_p2) target bundleno = 3 (0x3), region = 91 }
 0x6bb   :  { %5941 = vsyncpa [#allocation3], 1 }
 0x6bc   :  { %5943 = vsyncpa [#allocation3 + $0x1], 1 }

</bundles_post_ra>
